<compile_context>
chip_gen: v6e
topology: v6e:2x2x1
jax: 0.10.0
libtpu: 0.0.40
codegen_flags: <defaults>
</compile_context>

<pallas_src>
import math

import numpy as np
import jax
import jax.numpy as jnp
from jax.experimental import pallas as pl
from jax.experimental.pallas import tpu as pltpu

# ----------------------------- model config ---------------------------------
B = 2                 # batch
C_IN = 4              # input channels
H_IN = W_IN = 16      # input spatial
C1, C2 = 16, 32       # backbone channels
HIDDEN = 32           # transformer hidden dim
NUM_HEADS = 4
HEAD_DIM = HIDDEN // NUM_HEADS
FFN_DIM = 64
NUM_QUERIES = 8
NUM_CLASSES = 8
H1 = H_IN // 2                          # conv1 output spatial (8)
L_ENC = (H_IN // 4) * (W_IN // 4)       # 16 encoder tokens per image
OUT_W = NUM_CLASSES + 4                 # packed output width
LANES = 128

# ----------------------------- slab layouts ---------------------------------
# matrix slab: each matrix occupies [off : off+K] rows (off multiple of 8),
# lanes 0:N, zero-padded to 128 lanes.
_W_ENTRIES = (
    ("conv1_w", 3 * 3 * C_IN, C1),
    ("sel2",    9 * L_ENC,    H1 * H1),          # conv2 gather matrix
    ("conv2_w", 3 * 3 * C1,   C2),
    ("in_w",    C2,     HIDDEN),
    ("e_wqkv",  HIDDEN, 3 * HIDDEN),
    ("e_wo",    HIDDEN, HIDDEN),
    ("e_fw1",   HIDDEN, FFN_DIM),
    ("e_fw2",   FFN_DIM, HIDDEN),
    ("s_wqkv",  HIDDEN, 3 * HIDDEN),
    ("s_wo",    HIDDEN, HIDDEN),
    ("c_wq",    HIDDEN, HIDDEN),
    ("c_wkv",   HIDDEN, 2 * HIDDEN),
    ("c_wo",    HIDDEN, HIDDEN),
    ("d_fw1",   HIDDEN, FFN_DIM),
    ("d_fw2",   FFN_DIM, HIDDEN),
    ("h1_w",    HIDDEN, NUM_CLASSES + HIDDEN),
    ("h2_w",    HIDDEN, 4),
)
W_LAYOUT = {}
_off = 0
for _name, _k, _n in _W_ENTRIES:
    W_LAYOUT[_name] = (_off, _k, _n)
    _off += ((_k + 7) // 8) * 8
W_ROWS = ((_off + 7) // 8) * 8

# vector slab: pos (16 rows) + qemb (8 rows) + one row per bias/gamma/beta.
_V_ENTRIES = (
    ("pos",     L_ENC,       HIDDEN),
    ("qemb",    NUM_QUERIES, HIDDEN),
    ("conv1_b", 1, C1),
    ("conv2_b", 1, C2),
    ("in_b",    1, HIDDEN),
    ("e_bqkv",  1, 3 * HIDDEN),
    ("e_bo",    1, HIDDEN),
    ("e_g1",    1, HIDDEN),
    ("e_b1",    1, HIDDEN),
    ("e_fb1",   1, FFN_DIM),
    ("e_fb2",   1, HIDDEN),
    ("e_g2",    1, HIDDEN),
    ("e_b2",    1, HIDDEN),
    ("s_bqkv",  1, 3 * HIDDEN),
    ("s_bo",    1, HIDDEN),
    ("d_g1",    1, HIDDEN),
    ("d_b1",    1, HIDDEN),
    ("c_bq",    1, HIDDEN),
    ("c_bkv",   1, 2 * HIDDEN),
    ("c_bo",    1, HIDDEN),
    ("d_g2",    1, HIDDEN),
    ("d_b2",    1, HIDDEN),
    ("d_fb1",   1, FFN_DIM),
    ("d_fb2",   1, HIDDEN),
    ("d_g3",    1, HIDDEN),
    ("d_b3",    1, HIDDEN),
    ("h1_b",    1, NUM_CLASSES + HIDDEN),
    ("h2_b",    1, 4),
)
V_LAYOUT = {}
_off = 0
for _name, _r, _n in _V_ENTRIES:
    V_LAYOUT[_name] = (_off, _r, _n)
    _off += _r
V_ROWS = ((_off + 7) // 8) * 8


# ----------------------------- in-kernel math helpers ------------------------
def _dot(a, b):
    return jnp.dot(a, b, preferred_element_type=jnp.float32)


def _layernorm(x, g, b, eps=1e-5):
    # one-pass: the two cross-lane reductions are independent
    mu = jnp.mean(x, axis=-1, keepdims=True)
    ms = jnp.mean(x * x, axis=-1, keepdims=True)
    var = ms - mu * mu
    return (x - mu) * jax.lax.rsqrt(var + eps) * g + b


def _softmax(s):
    m = jnp.max(s, axis=-1, keepdims=True)
    p = jnp.exp(s - m)
    return p * pl.reciprocal(jnp.sum(p, axis=-1, keepdims=True), approx=True)


def _mha(q_src, k_src, v_src, q_off, k_off, v_off, wo, bo):
    """Multi-head attention + folded output projection, single image.

    q/k/v are read per-head directly from packed activations (q_src/k_src/
    v_src with static column offsets).  1/sqrt(HEAD_DIM) is pre-folded into
    the Q weights/biases, so no scale multiply here.
    """
    proj = None
    for h in range(NUM_HEADS):
        a, b_ = h * HEAD_DIM, (h + 1) * HEAD_DIM
        qh = q_src[:, q_off + a:q_off + b_]
        kh = k_src[:, k_off + a:k_off + b_]
        vh = v_src[:, v_off + a:v_off + b_]
        s = jax.lax.dot_general(qh, kh, (((1,), (1,)), ((), ())),
                                preferred_element_type=jnp.float32)
        p = _softmax(s)
        oh = _dot(p, vh)                       # [Lq, HEAD_DIM]
        c = _dot(oh, wo[a:b_, :])              # [Lq, HIDDEN]  (per-head fold)
        proj = c if proj is None else proj + c
    return proj + bo


# ----------------------------- fused Pallas kernel ---------------------------
def _rtdetr_kernel(p1_ref, w_ref, v_ref, out_ref):
    """conv1 + conv2 + encoder layer + decoder layer + heads, one image."""

    def W(name):                                  # matrix view from weight slab
        o, k, n = W_LAYOUT[name]
        return w_ref[o:o + k, 0:n]

    def Wsub(name, r0, nrows, n):                 # sub-rows of a slab matrix
        o, _, _ = W_LAYOUT[name]
        return w_ref[o + r0:o + r0 + nrows, 0:n]

    def V(name):                                  # vector view from vector slab
        o, r, n = V_LAYOUT[name]
        return v_ref[o:o + r, 0:n]

    # ---- backbone stage 1: conv1 as im2col matmul + bias + ReLU ----
    f1 = jnp.maximum(_dot(p1_ref[0], W("conv1_w")) + V("conv1_b"), 0.0)   # [64, C1]

    # ---- backbone stage 2: conv2 via 9 gather-matmul taps (OOB rows are zero
    #      rows in sel2 -> implicit zero padding), all VMEM resident ----
    acc = None
    for t in range(9):
        g = _dot(Wsub("sel2", t * L_ENC, L_ENC, H1 * H1), f1)             # [L, C1]
        c = _dot(g, Wsub("conv2_w", t * C1, C1, C2))                      # [L, C2]
        acc = c if acc is None else acc + c
    f2 = jnp.maximum(acc + V("conv2_b"), 0.0)                             # [L, C2]

    # ---- encoder (AIFI-style): input proj + pos + MHA + LN + FFN + LN ----
    src = _dot(f2, W("in_w")) + V("in_b") + V("pos")                      # [L, HIDDEN]
    qkv = _dot(src, W("e_wqkv")) + V("e_bqkv")                            # [L, 3*HIDDEN]
    attn = _mha(qkv, qkv, qkv, 0, HIDDEN, 2 * HIDDEN, W("e_wo"), V("e_bo"))
    src = _layernorm(src + attn, V("e_g1"), V("e_b1"))
    hid = jnp.maximum(_dot(src, W("e_fw1")) + V("e_fb1"), 0.0)
    memory = _layernorm(src + _dot(hid, W("e_fw2")) + V("e_fb2"),
                        V("e_g2"), V("e_b2"))                             # [L, HIDDEN]

    # ---- decoder: self-attn, cross-attn, FFN (residual + LN fused) ----
    tgt = V("qemb")                                                       # [Nq, HIDDEN]
    qkv = _dot(tgt, W("s_wqkv")) + V("s_bqkv")
    attn = _mha(qkv, qkv, qkv, 0, HIDDEN, 2 * HIDDEN, W("s_wo"), V("s_bo"))
    tgt = _layernorm(tgt + attn, V("d_g1"), V("d_b1"))

    q = _dot(tgt, W("c_wq")) + V("c_bq")                                  # [Nq, HIDDEN]
    kv = _dot(memory, W("c_wkv")) + V("c_bkv")                            # [L, 2*HIDDEN]
    attn = _mha(q, kv, kv, 0, 0, HIDDEN, W("c_wo"), V("c_bo"))
    tgt = _layernorm(tgt + attn, V("d_g2"), V("d_b2"))

    hid = jnp.maximum(_dot(tgt, W("d_fw1")) + V("d_fb1"), 0.0)
    tgt = _layernorm(tgt + _dot(hid, W("d_fw2")) + V("d_fb2"),
                     V("d_g3"), V("d_b3"))

    # ---- prediction heads -> single lane-packed output store ----
    head1 = _dot(tgt, W("h1_w")) + V("h1_b")                              # [Nq, NUM_CLASSES+HIDDEN]
    logits = head1[:, :NUM_CLASSES]
    box_h = jnp.maximum(head1[:, NUM_CLASSES:], 0.0)
    boxes = jax.nn.sigmoid(_dot(box_h, W("h2_w")) + V("h2_b"))            # [Nq, 4]
    out_ref[0] = jnp.concatenate([logits, boxes], axis=-1)                # [Nq, OUT_W]


# ----------------------------- kernel wrapper --------------------------------
def rtdetr_core(patches1, wslab, vslab):
    """Whole network for all images; grid is 'parallel' over batch (v7x 2 TCs)."""
    Bsz, P, K = patches1.shape
    bytes_accessed = int((patches1.size + wslab.size + vslab.size
                          + Bsz * NUM_QUERIES * OUT_W) * 4)
    return pl.pallas_call(
        _rtdetr_kernel,
        out_shape=jax.ShapeDtypeStruct((Bsz, NUM_QUERIES, OUT_W), jnp.float32),
        grid=(Bsz,),
        in_specs=[
            pl.BlockSpec((1, P, K), lambda bb: (bb, 0, 0)),
            pl.BlockSpec((W_ROWS, LANES), lambda bb: (0, 0)),   # constant -> fetched once
            pl.BlockSpec((V_ROWS, LANES), lambda bb: (0, 0)),
        ],
        out_specs=pl.BlockSpec((1, NUM_QUERIES, OUT_W), lambda bb: (bb, 0, 0)),
        compiler_params=pltpu.CompilerParams(dimension_semantics=("parallel",)),
        cost_estimate=pl.CostEstimate(flops=int(1.2e6 * Bsz),
                                      transcendentals=int(2e3 * Bsz),
                                      bytes_accessed=bytes_accessed),
    )(patches1, wslab, vslab)


# ----------------------------- glue helpers ---------------------------------
def im2col(x, ksize, stride, pad):
    """x: NHWC -> patches [B, Ho*Wo, k*k*C] (pure XLA data reshuffle, no compute)."""
    Bsz, H, W, C = x.shape
    xp = jnp.pad(x, ((0, 0), (pad, pad), (pad, pad), (0, 0)))
    Ho = (H + 2 * pad - ksize) // stride + 1
    Wo = (W + 2 * pad - ksize) // stride + 1
    cols = []
    for i in range(ksize):
        for j in range(ksize):
            cols.append(xp[:, i:i + Ho * stride:stride, j:j + Wo * stride:stride, :])
    return jnp.concatenate(cols, axis=-1).reshape(Bsz, Ho * Wo, ksize * ksize * C)


def _conv2_gather_matrix():
    """0/1 matrix [9*L_ENC, H1*H1]: rows (tap, out_pos) select the conv1 output
    row feeding that tap; all-zero rows implement the zero padding."""
    HO = H_IN // 4
    sel = np.zeros((9 * HO * HO, H1 * H1), np.float32)
    for ki in range(3):
        for kj in range(3):
            t = ki * 3 + kj
            for oy in range(HO):
                for ox in range(HO):
                    iy, ix = 2 * oy + ki - 1, 2 * ox + kj - 1
                    if 0 <= iy < H1 and 0 <= ix < H1:
                        sel[t * HO * HO + oy * HO + ox, iy * H1 + ix] = 1.0
    return jnp.asarray(sel)


# ----------------------------- parameter init -------------------------------
def init_params(key):
    keys = iter(jax.random.split(key, 128))

    def dense(kin, kout, scale=0.05):
        return (jax.random.normal(next(keys), (kin, kout), jnp.float32) * scale,
                jnp.zeros((kout,), jnp.float32))

    def attn_block():
        wq, bq = dense(HIDDEN, HIDDEN)
        wk, bk = dense(HIDDEN, HIDDEN)
        wv, bv = dense(HIDDEN, HIDDEN)
        wo, bo = dense(HIDDEN, HIDDEN)
        return dict(wq=wq, bq=bq, wk=wk, bk=bk, wv=wv, bv=bv, wo=wo, bo=bo)

    def ffn_block():
        w1, b1 = dense(HIDDEN, FFN_DIM)
        w2, b2 = dense(FFN_DIM, HIDDEN)
        return dict(w1=w1, b1=b1, w2=w2, b2=b2)

    def ln_block():
        return dict(g=jnp.ones((HIDDEN,), jnp.float32),
                    b=jnp.zeros((HIDDEN,), jnp.float32))

    p = {}
    p["conv1_w"], p["conv1_b"] = dense(3 * 3 * C_IN, C1)
    p["conv2_w"], p["conv2_b"] = dense(3 * 3 * C1, C2)
    p["in_proj_w"], p["in_proj_b"] = dense(C2, HIDDEN)
    p["pos_embed"] = jax.random.normal(next(keys), (1, L_ENC, HIDDEN), jnp.float32) * 0.05
    p["enc_attn"] = attn_block()
    p["enc_ln1"] = ln_block()
    p["enc_ffn"] = ffn_block()
    p["enc_ln2"] = ln_block()
    p["query_embed"] = jax.random.normal(next(keys), (NUM_QUERIES, HIDDEN), jnp.float32) * 0.05
    p["dec_self_attn"] = attn_block()
    p["dec_ln1"] = ln_block()
    p["dec_cross_attn"] = attn_block()
    p["dec_ln2"] = ln_block()
    p["dec_ffn"] = ffn_block()
    p["dec_ln3"] = ln_block()
    p["cls_w"], p["cls_b"] = dense(HIDDEN, NUM_CLASSES)
    p["box_w1"], p["box_b1"] = dense(HIDDEN, HIDDEN)
    p["box_w2"], p["box_b2"] = dense(HIDDEN, 4)
    return p


def prepare_params(p):
    """One-time fusion: QKV/KV/head concat, attention scale folded into Q,
    then everything packed into two contiguous VMEM slabs."""
    scale = 1.0 / math.sqrt(HEAD_DIM)
    ea, da, ca = p["enc_attn"], p["dec_self_attn"], p["dec_cross_attn"]

    def cat_w(*ws):
        return jnp.concatenate(ws, axis=1)

    def cat_b(*bs):
        return jnp.concatenate(bs, axis=0)

    mats = {
        "conv1_w": p["conv1_w"],
        "sel2": _conv2_gather_matrix(),
        "conv2_w": p["conv2_w"],
        "in_w": p["in_proj_w"],
        "e_wqkv": cat_w(ea["wq"] * scale, ea["wk"], ea["wv"]),
        "e_wo": ea["wo"],
        "e_fw1": p["enc_ffn"]["w1"], "e_fw2": p["enc_ffn"]["w2"],
        "s_wqkv": cat_w(da["wq"] * scale, da["wk"], da["wv"]),
        "s_wo": da["wo"],
        "c_wq": ca["wq"] * scale,
        "c_wkv": cat_w(ca["wk"], ca["wv"]),
        "c_wo": ca["wo"],
        "d_fw1": p["dec_ffn"]["w1"], "d_fw2": p["dec_ffn"]["w2"],
        "h1_w": cat_w(p["cls_w"], p["box_w1"]),
        "h2_w": p["box_w2"],
    }
    vecs = {
        "pos": p["pos_embed"][0],
        "qemb": p["query_embed"],
        "conv1_b": p["conv1_b"].reshape(1, -1),
        "conv2_b": p["conv2_b"].reshape(1, -1),
        "in_b": p["in_proj_b"].reshape(1, -1),
        "e_bqkv": cat_b(ea["bq"] * scale, ea["bk"], ea["bv"]).reshape(1, -1),
        "e_bo": ea["bo"].reshape(1, -1),
        "e_g1": p["enc_ln1"]["g"].reshape(1, -1), "e_b1": p["enc_ln1"]["b"].reshape(1, -1),
        "e_fb1": p["enc_ffn"]["b1"].reshape(1, -1), "e_fb2": p["enc_ffn"]["b2"].reshape(1, -1),
        "e_g2": p["enc_ln2"]["g"].reshape(1, -1), "e_b2": p["enc_ln2"]["b"].reshape(1, -1),
        "s_bqkv": cat_b(da["bq"] * scale, da["bk"], da["bv"]).reshape(1, -1),
        "s_bo": da["bo"].reshape(1, -1),
        "d_g1": p["dec_ln1"]["g"].reshape(1, -1), "d_b1": p["dec_ln1"]["b"].reshape(1, -1),
        "c_bq": (ca["bq"] * scale).reshape(1, -1),
        "c_bkv": cat_b(ca["bk"], ca["bv"]).reshape(1, -1),
        "c_bo": ca["bo"].reshape(1, -1),
        "d_g2": p["dec_ln2"]["g"].reshape(1, -1), "d_b2": p["dec_ln2"]["b"].reshape(1, -1),
        "d_fb1": p["dec_ffn"]["b1"].reshape(1, -1), "d_fb2": p["dec_ffn"]["b2"].reshape(1, -1),
        "d_g3": p["dec_ln3"]["g"].reshape(1, -1), "d_b3": p["dec_ln3"]["b"].reshape(1, -1),
        "h1_b": cat_b(p["cls_b"], p["box_b1"]).reshape(1, -1),
        "h2_b": p["box_b2"].reshape(1, -1),
    }

    wslab = jnp.zeros((W_ROWS, LANES), jnp.float32)
    for name, (off, k, n) in W_LAYOUT.items():
        wslab = wslab.at[off:off + k, :n].set(mats[name])
    vslab = jnp.zeros((V_ROWS, LANES), jnp.float32)
    for name, (off, r, n) in V_LAYOUT.items():
        vslab = vslab.at[off:off + r, :n].set(vecs[name])
    return {"wslab": wslab, "vslab": vslab}


# ----------------------------- forward pass ---------------------------------
def rtdetr_forward(fp, x_nchw):
    # TODO(synk): training-time multi_scale F.interpolate branch not implemented
    #             (eval/inference semantics: backbone -> encoder -> decoder).
    x = jnp.transpose(x_nchw, (0, 2, 3, 1))                      # NCHW -> NHWC
    patches1 = im2col(x, 3, 2, 1)                                # [B, 64, 9*C_IN]
    out = rtdetr_core(patches1, fp["wslab"], fp["vslab"])        # [B, Nq, OUT_W]
    return {"pred_logits": out[..., :NUM_CLASSES],
            "pred_boxes": out[..., NUM_CLASSES:]}


# --------------------------------- main --------------------------------------
if __name__ == "__main__":
    key = jax.random.PRNGKey(0)
    pkey, xkey = jax.random.split(key)
    params = init_params(pkey)
    fparams = prepare_params(params)
    x = jax.random.normal(xkey, (B, C_IN, H_IN, W_IN), jnp.float32)   # NCHW like PyTorch

    out = jax.jit(rtdetr_forward)(fparams, x)
    out = jax.block_until_ready(out)

    assert out["pred_logits"].shape == (B, NUM_QUERIES, NUM_CLASSES)
    assert out["pred_boxes"].shape == (B, NUM_QUERIES, 4)
    assert bool(jnp.all(jnp.isfinite(out["pred_logits"])))
    assert bool(jnp.all((out["pred_boxes"] >= 0.0) & (out["pred_boxes"] <= 1.0)))
    print("KERNEL_OK")
</pallas_src>

<mosaic_0001>
module attributes {stable_mosaic.version = 11 : i64} {
  func.func @_rtdetr_kernel(%arg0: i32, %arg1: memref<1x64x36xf32, #tpu.memory_space<vmem>>, %arg2: memref<840x128xf32, #tpu.memory_space<vmem>>, %arg3: memref<56x128xf32, #tpu.memory_space<vmem>>, %arg4: memref<1x8x12xf32, #tpu.memory_space<vmem>>) attributes {dimension_semantics = [#tpu.dimension_semantics<parallel>], iteration_bounds = array<i64: 2>, scalar_prefetch = 0 : i64, scratch_operands = 0 : i64, tpu.core_type = #tpu.core_type<tc>, window_params = [{transform_indices = @transform_0, window_bounds = array<i64: 1, 64, 36>}, {pipeline_mode = #tpu.pipeline_mode<synchronous>, transform_indices = @transform_1, window_bounds = array<i64: 840, 128>}, {pipeline_mode = #tpu.pipeline_mode<synchronous>, transform_indices = @transform_2, window_bounds = array<i64: 56, 128>}, {transform_indices = @transform_3, window_bounds = array<i64: 1, 8, 12>}]} {
    %c0 = arith.constant 0 : index
    %c0_0 = arith.constant 0 : index
    %c0_1 = arith.constant 0 : index
    %0 = vector.load %arg1[%c0, %c0_0, %c0_1] : memref<1x64x36xf32, #tpu.memory_space<vmem>>, vector<1x64x36xf32>
    %1 = vector.shape_cast %0 : vector<1x64x36xf32> to vector<64x36xf32>
    %c0_2 = arith.constant 0 : index
    %c0_3 = arith.constant 0 : index
    %2 = vector.load %arg2[%c0_2, %c0_3] : memref<840x128xf32, #tpu.memory_space<vmem>>, vector<36x16xf32>
    %cst = arith.constant dense<0.000000e+00> : vector<64x16xf32>
    %3 = tpu.matmul %1, %2, %cst {dimension_numbers = #tpu.dot_dimension_numbers<[1], [0], [0], [1], [0, 0, 1, 1], [], []>} : vector<64x36xf32>, vector<36x16xf32>, vector<64x16xf32> -> vector<64x16xf32>
    %c24 = arith.constant 24 : index
    %c0_4 = arith.constant 0 : index
    %4 = vector.load %arg3[%c24, %c0_4] : memref<56x128xf32, #tpu.memory_space<vmem>>, vector<1x16xf32>
    %5 = vector.broadcast %4 : vector<1x16xf32> to vector<64x16xf32>
    %6 = arith.addf %3, %5 : vector<64x16xf32>
    %cst_5 = arith.constant 0.000000e+00 : f32
    %7 = vector.broadcast %cst_5 : f32 to vector<64x16xf32>
    %8 = arith.maximumf %6, %7 : vector<64x16xf32>
    %c40 = arith.constant 40 : index
    %c0_6 = arith.constant 0 : index
    %9 = vector.load %arg2[%c40, %c0_6] : memref<840x128xf32, #tpu.memory_space<vmem>>, vector<16x64xf32>
    %cst_7 = arith.constant dense<0.000000e+00> : vector<16x16xf32>
    %10 = tpu.matmul %9, %8, %cst_7 {dimension_numbers = #tpu.dot_dimension_numbers<[1], [0], [0], [1], [0, 0, 1, 1], [], []>} : vector<16x64xf32>, vector<64x16xf32>, vector<16x16xf32> -> vector<16x16xf32>
    %c184 = arith.constant 184 : index
    %c0_8 = arith.constant 0 : index
    %11 = vector.load %arg2[%c184, %c0_8] : memref<840x128xf32, #tpu.memory_space<vmem>>, vector<16x32xf32>
    %cst_9 = arith.constant dense<0.000000e+00> : vector<16x32xf32>
    %12 = tpu.matmul %10, %11, %cst_9 {dimension_numbers = #tpu.dot_dimension_numbers<[1], [0], [0], [1], [0, 0, 1, 1], [], []>} : vector<16x16xf32>, vector<16x32xf32>, vector<16x32xf32> -> vector<16x32xf32>
    %c56 = arith.constant 56 : index
    %c0_10 = arith.constant 0 : index
    %13 = vector.load %arg2[%c56, %c0_10] : memref<840x128xf32, #tpu.memory_space<vmem>>, vector<16x64xf32>
    %cst_11 = arith.constant dense<0.000000e+00> : vector<16x16xf32>
    %14 = tpu.matmul %13, %8, %cst_11 {dimension_numbers = #tpu.dot_dimension_numbers<[1], [0], [0], [1], [0, 0, 1, 1], [], []>} : vector<16x64xf32>, vector<64x16xf32>, vector<16x16xf32> -> vector<16x16xf32>
    %c200 = arith.constant 200 : index
    %c0_12 = arith.constant 0 : index
    %15 = vector.load %arg2[%c200, %c0_12] : memref<840x128xf32, #tpu.memory_space<vmem>>, vector<16x32xf32>
    %cst_13 = arith.constant dense<0.000000e+00> : vector<16x32xf32>
    %16 = tpu.matmul %14, %15, %cst_13 {dimension_numbers = #tpu.dot_dimension_numbers<[1], [0], [0], [1], [0, 0, 1, 1], [], []>} : vector<16x16xf32>, vector<16x32xf32>, vector<16x32xf32> -> vector<16x32xf32>
    %17 = arith.addf %12, %16 : vector<16x32xf32>
    %c72 = arith.constant 72 : index
    %c0_14 = arith.constant 0 : index
    %18 = vector.load %arg2[%c72, %c0_14] : memref<840x128xf32, #tpu.memory_space<vmem>>, vector<16x64xf32>
    %cst_15 = arith.constant dense<0.000000e+00> : vector<16x16xf32>
    %19 = tpu.matmul %18, %8, %cst_15 {dimension_numbers = #tpu.dot_dimension_numbers<[1], [0], [0], [1], [0, 0, 1, 1], [], []>} : vector<16x64xf32>, vector<64x16xf32>, vector<16x16xf32> -> vector<16x16xf32>
    %c216 = arith.constant 216 : index
    %c0_16 = arith.constant 0 : index
    %20 = vector.load %arg2[%c216, %c0_16] : memref<840x128xf32, #tpu.memory_space<vmem>>, vector<16x32xf32>
    %cst_17 = arith.constant dense<0.000000e+00> : vector<16x32xf32>
    %21 = tpu.matmul %19, %20, %cst_17 {dimension_numbers = #tpu.dot_dimension_numbers<[1], [0], [0], [1], [0, 0, 1, 1], [], []>} : vector<16x16xf32>, vector<16x32xf32>, vector<16x32xf32> -> vector<16x32xf32>
    %22 = arith.addf %17, %21 : vector<16x32xf32>
    %c88 = arith.constant 88 : index
    %c0_18 = arith.constant 0 : index
    %23 = vector.load %arg2[%c88, %c0_18] : memref<840x128xf32, #tpu.memory_space<vmem>>, vector<16x64xf32>
    %cst_19 = arith.constant dense<0.000000e+00> : vector<16x16xf32>
    %24 = tpu.matmul %23, %8, %cst_19 {dimension_numbers = #tpu.dot_dimension_numbers<[1], [0], [0], [1], [0, 0, 1, 1], [], []>} : vector<16x64xf32>, vector<64x16xf32>, vector<16x16xf32> -> vector<16x16xf32>
    %c232 = arith.constant 232 : index
    %c0_20 = arith.constant 0 : index
    %25 = vector.load %arg2[%c232, %c0_20] : memref<840x128xf32, #tpu.memory_space<vmem>>, vector<16x32xf32>
    %cst_21 = arith.constant dense<0.000000e+00> : vector<16x32xf32>
    %26 = tpu.matmul %24, %25, %cst_21 {dimension_numbers = #tpu.dot_dimension_numbers<[1], [0], [0], [1], [0, 0, 1, 1], [], []>} : vector<16x16xf32>, vector<16x32xf32>, vector<16x32xf32> -> vector<16x32xf32>
    %27 = arith.addf %22, %26 : vector<16x32xf32>
    %c104 = arith.constant 104 : index
    %c0_22 = arith.constant 0 : index
    %28 = vector.load %arg2[%c104, %c0_22] : memref<840x128xf32, #tpu.memory_space<vmem>>, vector<16x64xf32>
    %cst_23 = arith.constant dense<0.000000e+00> : vector<16x16xf32>
    %29 = tpu.matmul %28, %8, %cst_23 {dimension_numbers = #tpu.dot_dimension_numbers<[1], [0], [0], [1], [0, 0, 1, 1], [], []>} : vector<16x64xf32>, vector<64x16xf32>, vector<16x16xf32> -> vector<16x16xf32>
    %c248 = arith.constant 248 : index
    %c0_24 = arith.constant 0 : index
    %30 = vector.load %arg2[%c248, %c0_24] : memref<840x128xf32, #tpu.memory_space<vmem>>, vector<16x32xf32>
    %cst_25 = arith.constant dense<0.000000e+00> : vector<16x32xf32>
    %31 = tpu.matmul %29, %30, %cst_25 {dimension_numbers = #tpu.dot_dimension_numbers<[1], [0], [0], [1], [0, 0, 1, 1], [], []>} : vector<16x16xf32>, vector<16x32xf32>, vector<16x32xf32> -> vector<16x32xf32>
    %32 = arith.addf %27, %31 : vector<16x32xf32>
    %c120 = arith.constant 120 : index
    %c0_26 = arith.constant 0 : index
    %33 = vector.load %arg2[%c120, %c0_26] : memref<840x128xf32, #tpu.memory_space<vmem>>, vector<16x64xf32>
    %cst_27 = arith.constant dense<0.000000e+00> : vector<16x16xf32>
    %34 = tpu.matmul %33, %8, %cst_27 {dimension_numbers = #tpu.dot_dimension_numbers<[1], [0], [0], [1], [0, 0, 1, 1], [], []>} : vector<16x64xf32>, vector<64x16xf32>, vector<16x16xf32> -> vector<16x16xf32>
    %c264 = arith.constant 264 : index
    %c0_28 = arith.constant 0 : index
    %35 = vector.load %arg2[%c264, %c0_28] : memref<840x128xf32, #tpu.memory_space<vmem>>, vector<16x32xf32>
    %cst_29 = arith.constant dense<0.000000e+00> : vector<16x32xf32>
    %36 = tpu.matmul %34, %35, %cst_29 {dimension_numbers = #tpu.dot_dimension_numbers<[1], [0], [0], [1], [0, 0, 1, 1], [], []>} : vector<16x16xf32>, vector<16x32xf32>, vector<16x32xf32> -> vector<16x32xf32>
    %37 = arith.addf %32, %36 : vector<16x32xf32>
    %c136 = arith.constant 136 : index
    %c0_30 = arith.constant 0 : index
    %38 = vector.load %arg2[%c136, %c0_30] : memref<840x128xf32, #tpu.memory_space<vmem>>, vector<16x64xf32>
    %cst_31 = arith.constant dense<0.000000e+00> : vector<16x16xf32>
    %39 = tpu.matmul %38, %8, %cst_31 {dimension_numbers = #tpu.dot_dimension_numbers<[1], [0], [0], [1], [0, 0, 1, 1], [], []>} : vector<16x64xf32>, vector<64x16xf32>, vector<16x16xf32> -> vector<16x16xf32>
    %c280 = arith.constant 280 : index
    %c0_32 = arith.constant 0 : index
    %40 = vector.load %arg2[%c280, %c0_32] : memref<840x128xf32, #tpu.memory_space<vmem>>, vector<16x32xf32>
    %cst_33 = arith.constant dense<0.000000e+00> : vector<16x32xf32>
    %41 = tpu.matmul %39, %40, %cst_33 {dimension_numbers = #tpu.dot_dimension_numbers<[1], [0], [0], [1], [0, 0, 1, 1], [], []>} : vector<16x16xf32>, vector<16x32xf32>, vector<16x32xf32> -> vector<16x32xf32>
    %42 = arith.addf %37, %41 : vector<16x32xf32>
    %c152 = arith.constant 152 : index
    %c0_34 = arith.constant 0 : index
    %43 = vector.load %arg2[%c152, %c0_34] : memref<840x128xf32, #tpu.memory_space<vmem>>, vector<16x64xf32>
    %cst_35 = arith.constant dense<0.000000e+00> : vector<16x16xf32>
    %44 = tpu.matmul %43, %8, %cst_35 {dimension_numbers = #tpu.dot_dimension_numbers<[1], [0], [0], [1], [0, 0, 1, 1], [], []>} : vector<16x64xf32>, vector<64x16xf32>, vector<16x16xf32> -> vector<16x16xf32>
    %c296 = arith.constant 296 : index
    %c0_36 = arith.constant 0 : index
    %45 = vector.load %arg2[%c296, %c0_36] : memref<840x128xf32, #tpu.memory_space<vmem>>, vector<16x32xf32>
    %cst_37 = arith.constant dense<0.000000e+00> : vector<16x32xf32>
    %46 = tpu.matmul %44, %45, %cst_37 {dimension_numbers = #tpu.dot_dimension_numbers<[1], [0], [0], [1], [0, 0, 1, 1], [], []>} : vector<16x16xf32>, vector<16x32xf32>, vector<16x32xf32> -> vector<16x32xf32>
    %47 = arith.addf %42, %46 : vector<16x32xf32>
    %c168 = arith.constant 168 : index
    %c0_38 = arith.constant 0 : index
    %48 = vector.load %arg2[%c168, %c0_38] : memref<840x128xf32, #tpu.memory_space<vmem>>, vector<16x64xf32>
    %cst_39 = arith.constant dense<0.000000e+00> : vector<16x16xf32>
    %49 = tpu.matmul %48, %8, %cst_39 {dimension_numbers = #tpu.dot_dimension_numbers<[1], [0], [0], [1], [0, 0, 1, 1], [], []>} : vector<16x64xf32>, vector<64x16xf32>, vector<16x16xf32> -> vector<16x16xf32>
    %c312 = arith.constant 312 : index
    %c0_40 = arith.constant 0 : index
    %50 = vector.load %arg2[%c312, %c0_40] : memref<840x128xf32, #tpu.memory_space<vmem>>, vector<16x32xf32>
    %cst_41 = arith.constant dense<0.000000e+00> : vector<16x32xf32>
    %51 = tpu.matmul %49, %50, %cst_41 {dimension_numbers = #tpu.dot_dimension_numbers<[1], [0], [0], [1], [0, 0, 1, 1], [], []>} : vector<16x16xf32>, vector<16x32xf32>, vector<16x32xf32> -> vector<16x32xf32>
    %52 = arith.addf %47, %51 : vector<16x32xf32>
    %c25 = arith.constant 25 : index
    %c0_42 = arith.constant 0 : index
    %53 = vector.load %arg3[%c25, %c0_42] : memref<56x128xf32, #tpu.memory_space<vmem>>, vector<1x32xf32>
    %54 = vector.broadcast %53 : vector<1x32xf32> to vector<16x32xf32>
    %55 = arith.addf %52, %54 : vector<16x32xf32>
    %cst_43 = arith.constant 0.000000e+00 : f32
    %56 = vector.broadcast %cst_43 : f32 to vector<16x32xf32>
    %57 = arith.maximumf %55, %56 : vector<16x32xf32>
    %c328 = arith.constant 328 : index
    %c0_44 = arith.constant 0 : index
    %58 = vector.load %arg2[%c328, %c0_44] : memref<840x128xf32, #tpu.memory_space<vmem>>, vector<32x32xf32>
    %cst_45 = arith.constant dense<0.000000e+00> : vector<16x32xf32>
    %59 = tpu.matmul %57, %58, %cst_45 {dimension_numbers = #tpu.dot_dimension_numbers<[1], [0], [0], [1], [0, 0, 1, 1], [], []>} : vector<16x32xf32>, vector<32x32xf32>, vector<16x32xf32> -> vector<16x32xf32>
    %c26 = arith.constant 26 : index
    %c0_46 = arith.constant 0 : index
    %60 = vector.load %arg3[%c26, %c0_46] : memref<56x128xf32, #tpu.memory_space<vmem>>, vector<1x32xf32>
    %61 = vector.broadcast %60 : vector<1x32xf32> to vector<16x32xf32>
    %62 = arith.addf %59, %61 : vector<16x32xf32>
    %c0_47 = arith.constant 0 : index
    %c0_48 = arith.constant 0 : index
    %63 = vector.load %arg3[%c0_47, %c0_48] : memref<56x128xf32, #tpu.memory_space<vmem>>, vector<16x32xf32>
    %64 = arith.addf %62, %63 : vector<16x32xf32>
    %c360 = arith.constant 360 : index
    %c0_49 = arith.constant 0 : index
    %65 = vector.load %arg2[%c360, %c0_49] : memref<840x128xf32, #tpu.memory_space<vmem>>, vector<32x96xf32>
    %cst_50 = arith.constant dense<0.000000e+00> : vector<16x96xf32>
    %66 = tpu.matmul %64, %65, %cst_50 {dimension_numbers = #tpu.dot_dimension_numbers<[1], [0], [0], [1], [0, 0, 1, 1], [], []>} : vector<16x32xf32>, vector<32x96xf32>, vector<16x96xf32> -> vector<16x96xf32>
    %c27 = arith.constant 27 : index
    %c0_51 = arith.constant 0 : index
    %67 = vector.load %arg3[%c27, %c0_51] : memref<56x128xf32, #tpu.memory_space<vmem>>, vector<1x96xf32>
    %68 = vector.broadcast %67 : vector<1x96xf32> to vector<16x96xf32>
    %69 = arith.addf %66, %68 : vector<16x96xf32>
    %c392 = arith.constant 392 : index
    %c0_52 = arith.constant 0 : index
    %70 = vector.load %arg2[%c392, %c0_52] : memref<840x128xf32, #tpu.memory_space<vmem>>, vector<32x32xf32>
    %c28 = arith.constant 28 : index
    %c0_53 = arith.constant 0 : index
    %71 = vector.load %arg3[%c28, %c0_53] : memref<56x128xf32, #tpu.memory_space<vmem>>, vector<1x32xf32>
    %72 = vector.extract_strided_slice %69 {offsets = [0, 0], sizes = [16, 8], strides = [1, 1]} : vector<16x96xf32> to vector<16x8xf32>
    %73 = vector.extract_strided_slice %69 {offsets = [0, 32], sizes = [16, 8], strides = [1, 1]} : vector<16x96xf32> to vector<16x8xf32>
    %74 = vector.extract_strided_slice %69 {offsets = [0, 64], sizes = [16, 8], strides = [1, 1]} : vector<16x96xf32> to vector<16x8xf32>
    %cst_54 = arith.constant dense<0.000000e+00> : vector<16x16xf32>
    %75 = tpu.matmul %72, %73, %cst_54 {dimension_numbers = #tpu.dot_dimension_numbers<[1], [1], [0], [0], [0, 0, 1, 0], [], []>} : vector<16x8xf32>, vector<16x8xf32>, vector<16x16xf32> -> vector<16x16xf32>
    %cst_55 = arith.constant dense<0xFF800000> : vector<16xf32>
    %76 = vector.multi_reduction <maximumf>, %75, %cst_55 [1] : vector<16x16xf32> to vector<16xf32>
    %77 = vector.shape_cast %76 : vector<16xf32> to vector<16x1xf32>
    %78 = vector.broadcast %77 : vector<16x1xf32> to vector<16x16xf32>
    %79 = arith.subf %75, %78 : vector<16x16xf32>
    %80 = math.exp %79 : vector<16x16xf32>
    %cst_56 = arith.constant dense<0.000000e+00> : vector<16xf32>
    %81 = vector.multi_reduction <add>, %80, %cst_56 [1] : vector<16x16xf32> to vector<16xf32>
    %82 = vector.shape_cast %81 : vector<16xf32> to vector<16x1xf32>
    %83 = tpu.reciprocal %82 {approx = true} : vector<16x1xf32> -> vector<16x1xf32>
    %84 = vector.broadcast %83 : vector<16x1xf32> to vector<16x16xf32>
    %85 = arith.mulf %80, %84 : vector<16x16xf32>
    %cst_57 = arith.constant dense<0.000000e+00> : vector<16x8xf32>
    %86 = tpu.matmul %85, %74, %cst_57 {dimension_numbers = #tpu.dot_dimension_numbers<[1], [0], [0], [1], [0, 0, 1, 1], [], []>} : vector<16x16xf32>, vector<16x8xf32>, vector<16x8xf32> -> vector<16x8xf32>
    %87 = vector.extract_strided_slice %70 {offsets = [0, 0], sizes = [8, 32], strides = [1, 1]} : vector<32x32xf32> to vector<8x32xf32>
    %cst_58 = arith.constant dense<0.000000e+00> : vector<16x32xf32>
    %88 = tpu.matmul %86, %87, %cst_58 {dimension_numbers = #tpu.dot_dimension_numbers<[1], [0], [0], [1], [0, 0, 1, 1], [], []>} : vector<16x8xf32>, vector<8x32xf32>, vector<16x32xf32> -> vector<16x32xf32>
    %89 = vector.extract_strided_slice %69 {offsets = [0, 8], sizes = [16, 8], strides = [1, 1]} : vector<16x96xf32> to vector<16x8xf32>
    %90 = vector.extract_strided_slice %69 {offsets = [0, 40], sizes = [16, 8], strides = [1, 1]} : vector<16x96xf32> to vector<16x8xf32>
    %91 = vector.extract_strided_slice %69 {offsets = [0, 72], sizes = [16, 8], strides = [1, 1]} : vector<16x96xf32> to vector<16x8xf32>
    %cst_59 = arith.constant dense<0.000000e+00> : vector<16x16xf32>
    %92 = tpu.matmul %89, %90, %cst_59 {dimension_numbers = #tpu.dot_dimension_numbers<[1], [1], [0], [0], [0, 0, 1, 0], [], []>} : vector<16x8xf32>, vector<16x8xf32>, vector<16x16xf32> -> vector<16x16xf32>
    %cst_60 = arith.constant dense<0xFF800000> : vector<16xf32>
    %93 = vector.multi_reduction <maximumf>, %92, %cst_60 [1] : vector<16x16xf32> to vector<16xf32>
    %94 = vector.shape_cast %93 : vector<16xf32> to vector<16x1xf32>
    %95 = vector.broadcast %94 : vector<16x1xf32> to vector<16x16xf32>
    %96 = arith.subf %92, %95 : vector<16x16xf32>
    %97 = math.exp %96 : vector<16x16xf32>
    %cst_61 = arith.constant dense<0.000000e+00> : vector<16xf32>
    %98 = vector.multi_reduction <add>, %97, %cst_61 [1] : vector<16x16xf32> to vector<16xf32>
    %99 = vector.shape_cast %98 : vector<16xf32> to vector<16x1xf32>
    %100 = tpu.reciprocal %99 {approx = true} : vector<16x1xf32> -> vector<16x1xf32>
    %101 = vector.broadcast %100 : vector<16x1xf32> to vector<16x16xf32>
    %102 = arith.mulf %97, %101 : vector<16x16xf32>
    %cst_62 = arith.constant dense<0.000000e+00> : vector<16x8xf32>
    %103 = tpu.matmul %102, %91, %cst_62 {dimension_numbers = #tpu.dot_dimension_numbers<[1], [0], [0], [1], [0, 0, 1, 1], [], []>} : vector<16x16xf32>, vector<16x8xf32>, vector<16x8xf32> -> vector<16x8xf32>
    %104 = vector.extract_strided_slice %70 {offsets = [8, 0], sizes = [8, 32], strides = [1, 1]} : vector<32x32xf32> to vector<8x32xf32>
    %cst_63 = arith.constant dense<0.000000e+00> : vector<16x32xf32>
    %105 = tpu.matmul %103, %104, %cst_63 {dimension_numbers = #tpu.dot_dimension_numbers<[1], [0], [0], [1], [0, 0, 1, 1], [], []>} : vector<16x8xf32>, vector<8x32xf32>, vector<16x32xf32> -> vector<16x32xf32>
    %106 = arith.addf %88, %105 : vector<16x32xf32>
    %107 = vector.extract_strided_slice %69 {offsets = [0, 16], sizes = [16, 8], strides = [1, 1]} : vector<16x96xf32> to vector<16x8xf32>
    %108 = vector.extract_strided_slice %69 {offsets = [0, 48], sizes = [16, 8], strides = [1, 1]} : vector<16x96xf32> to vector<16x8xf32>
    %109 = vector.extract_strided_slice %69 {offsets = [0, 80], sizes = [16, 8], strides = [1, 1]} : vector<16x96xf32> to vector<16x8xf32>
    %cst_64 = arith.constant dense<0.000000e+00> : vector<16x16xf32>
    %110 = tpu.matmul %107, %108, %cst_64 {dimension_numbers = #tpu.dot_dimension_numbers<[1], [1], [0], [0], [0, 0, 1, 0], [], []>} : vector<16x8xf32>, vector<16x8xf32>, vector<16x16xf32> -> vector<16x16xf32>
    %cst_65 = arith.constant dense<0xFF800000> : vector<16xf32>
    %111 = vector.multi_reduction <maximumf>, %110, %cst_65 [1] : vector<16x16xf32> to vector<16xf32>
    %112 = vector.shape_cast %111 : vector<16xf32> to vector<16x1xf32>
    %113 = vector.broadcast %112 : vector<16x1xf32> to vector<16x16xf32>
    %114 = arith.subf %110, %113 : vector<16x16xf32>
    %115 = math.exp %114 : vector<16x16xf32>
    %cst_66 = arith.constant dense<0.000000e+00> : vector<16xf32>
    %116 = vector.multi_reduction <add>, %115, %cst_66 [1] : vector<16x16xf32> to vector<16xf32>
    %117 = vector.shape_cast %116 : vector<16xf32> to vector<16x1xf32>
    %118 = tpu.reciprocal %117 {approx = true} : vector<16x1xf32> -> vector<16x1xf32>
    %119 = vector.broadcast %118 : vector<16x1xf32> to vector<16x16xf32>
    %120 = arith.mulf %115, %119 : vector<16x16xf32>
    %cst_67 = arith.constant dense<0.000000e+00> : vector<16x8xf32>
    %121 = tpu.matmul %120, %109, %cst_67 {dimension_numbers = #tpu.dot_dimension_numbers<[1], [0], [0], [1], [0, 0, 1, 1], [], []>} : vector<16x16xf32>, vector<16x8xf32>, vector<16x8xf32> -> vector<16x8xf32>
    %122 = vector.extract_strided_slice %70 {offsets = [16, 0], sizes = [8, 32], strides = [1, 1]} : vector<32x32xf32> to vector<8x32xf32>
    %cst_68 = arith.constant dense<0.000000e+00> : vector<16x32xf32>
    %123 = tpu.matmul %121, %122, %cst_68 {dimension_numbers = #tpu.dot_dimension_numbers<[1], [0], [0], [1], [0, 0, 1, 1], [], []>} : vector<16x8xf32>, vector<8x32xf32>, vector<16x32xf32> -> vector<16x32xf32>
    %124 = arith.addf %106, %123 : vector<16x32xf32>
    %125 = vector.extract_strided_slice %69 {offsets = [0, 24], sizes = [16, 8], strides = [1, 1]} : vector<16x96xf32> to vector<16x8xf32>
    %126 = vector.extract_strided_slice %69 {offsets = [0, 56], sizes = [16, 8], strides = [1, 1]} : vector<16x96xf32> to vector<16x8xf32>
    %127 = vector.extract_strided_slice %69 {offsets = [0, 88], sizes = [16, 8], strides = [1, 1]} : vector<16x96xf32> to vector<16x8xf32>
    %cst_69 = arith.constant dense<0.000000e+00> : vector<16x16xf32>
    %128 = tpu.matmul %125, %126, %cst_69 {dimension_numbers = #tpu.dot_dimension_numbers<[1], [1], [0], [0], [0, 0, 1, 0], [], []>} : vector<16x8xf32>, vector<16x8xf32>, vector<16x16xf32> -> vector<16x16xf32>
    %cst_70 = arith.constant dense<0xFF800000> : vector<16xf32>
    %129 = vector.multi_reduction <maximumf>, %128, %cst_70 [1] : vector<16x16xf32> to vector<16xf32>
    %130 = vector.shape_cast %129 : vector<16xf32> to vector<16x1xf32>
    %131 = vector.broadcast %130 : vector<16x1xf32> to vector<16x16xf32>
    %132 = arith.subf %128, %131 : vector<16x16xf32>
    %133 = math.exp %132 : vector<16x16xf32>
    %cst_71 = arith.constant dense<0.000000e+00> : vector<16xf32>
    %134 = vector.multi_reduction <add>, %133, %cst_71 [1] : vector<16x16xf32> to vector<16xf32>
    %135 = vector.shape_cast %134 : vector<16xf32> to vector<16x1xf32>
    %136 = tpu.reciprocal %135 {approx = true} : vector<16x1xf32> -> vector<16x1xf32>
    %137 = vector.broadcast %136 : vector<16x1xf32> to vector<16x16xf32>
    %138 = arith.mulf %133, %137 : vector<16x16xf32>
    %cst_72 = arith.constant dense<0.000000e+00> : vector<16x8xf32>
    %139 = tpu.matmul %138, %127, %cst_72 {dimension_numbers = #tpu.dot_dimension_numbers<[1], [0], [0], [1], [0, 0, 1, 1], [], []>} : vector<16x16xf32>, vector<16x8xf32>, vector<16x8xf32> -> vector<16x8xf32>
    %140 = vector.extract_strided_slice %70 {offsets = [24, 0], sizes = [8, 32], strides = [1, 1]} : vector<32x32xf32> to vector<8x32xf32>
    %cst_73 = arith.constant dense<0.000000e+00> : vector<16x32xf32>
    %141 = tpu.matmul %139, %140, %cst_73 {dimension_numbers = #tpu.dot_dimension_numbers<[1], [0], [0], [1], [0, 0, 1, 1], [], []>} : vector<16x8xf32>, vector<8x32xf32>, vector<16x32xf32> -> vector<16x32xf32>
    %142 = arith.addf %124, %141 : vector<16x32xf32>
    %143 = vector.broadcast %71 : vector<1x32xf32> to vector<16x32xf32>
    %144 = arith.addf %142, %143 : vector<16x32xf32>
    %145 = arith.addf %64, %144 : vector<16x32xf32>
    %c29 = arith.constant 29 : index
    %c0_74 = arith.constant 0 : index
    %146 = vector.load %arg3[%c29, %c0_74] : memref<56x128xf32, #tpu.memory_space<vmem>>, vector<1x32xf32>
    %c30 = arith.constant 30 : index
    %c0_75 = arith.constant 0 : index
    %147 = vector.load %arg3[%c30, %c0_75] : memref<56x128xf32, #tpu.memory_space<vmem>>, vector<1x32xf32>
    %cst_76 = arith.constant dense<0.000000e+00> : vector<16xf32>
    %148 = vector.multi_reduction <add>, %145, %cst_76 [1] : vector<16x32xf32> to vector<16xf32>
    %149 = vector.shape_cast %148 : vector<16xf32> to vector<16x1xf32>
    %cst_77 = arith.constant 3.200000e+01 : f32
    %150 = vector.broadcast %cst_77 : f32 to vector<16x1xf32>
    %151 = arith.divf %149, %150 : vector<16x1xf32>
    %152 = arith.mulf %145, %145 : vector<16x32xf32>
    %cst_78 = arith.constant dense<0.000000e+00> : vector<16xf32>
    %153 = vector.multi_reduction <add>, %152, %cst_78 [1] : vector<16x32xf32> to vector<16xf32>
    %154 = vector.shape_cast %153 : vector<16xf32> to vector<16x1xf32>
    %cst_79 = arith.constant 3.200000e+01 : f32
    %155 = vector.broadcast %cst_79 : f32 to vector<16x1xf32>
    %156 = arith.divf %154, %155 : vector<16x1xf32>
    %157 = arith.mulf %151, %151 : vector<16x1xf32>
    %158 = arith.subf %156, %157 : vector<16x1xf32>
    %159 = vector.broadcast %151 : vector<16x1xf32> to vector<16x32xf32>
    %160 = arith.subf %145, %159 : vector<16x32xf32>
    %cst_80 = arith.constant 9.99999974E-6 : f32
    %161 = vector.broadcast %cst_80 : f32 to vector<16x1xf32>
    %162 = arith.addf %158, %161 : vector<16x1xf32>
    %163 = math.rsqrt %162 : vector<16x1xf32>
    %164 = vector.broadcast %163 : vector<16x1xf32> to vector<16x32xf32>
    %165 = arith.mulf %160, %164 : vector<16x32xf32>
    %166 = vector.broadcast %146 : vector<1x32xf32> to vector<16x32xf32>
    %167 = arith.mulf %165, %166 : vector<16x32xf32>
    %168 = vector.broadcast %147 : vector<1x32xf32> to vector<16x32xf32>
    %169 = arith.addf %167, %168 : vector<16x32xf32>
    %c424 = arith.constant 424 : index
    %c0_81 = arith.constant 0 : index
    %170 = vector.load %arg2[%c424, %c0_81] : memref<840x128xf32, #tpu.memory_space<vmem>>, vector<32x64xf32>
    %cst_82 = arith.constant dense<0.000000e+00> : vector<16x64xf32>
    %171 = tpu.matmul %169, %170, %cst_82 {dimension_numbers = #tpu.dot_dimension_numbers<[1], [0], [0], [1], [0, 0, 1, 1], [], []>} : vector<16x32xf32>, vector<32x64xf32>, vector<16x64xf32> -> vector<16x64xf32>
    %c31 = arith.constant 31 : index
    %c0_83 = arith.constant 0 : index
    %172 = vector.load %arg3[%c31, %c0_83] : memref<56x128xf32, #tpu.memory_space<vmem>>, vector<1x64xf32>
    %173 = vector.broadcast %172 : vector<1x64xf32> to vector<16x64xf32>
    %174 = arith.addf %171, %173 : vector<16x64xf32>
    %cst_84 = arith.constant 0.000000e+00 : f32
    %175 = vector.broadcast %cst_84 : f32 to vector<16x64xf32>
    %176 = arith.maximumf %174, %175 : vector<16x64xf32>
    %c456 = arith.constant 456 : index
    %c0_85 = arith.constant 0 : index
    %177 = vector.load %arg2[%c456, %c0_85] : memref<840x128xf32, #tpu.memory_space<vmem>>, vector<64x32xf32>
    %cst_86 = arith.constant dense<0.000000e+00> : vector<16x32xf32>
    %178 = tpu.matmul %176, %177, %cst_86 {dimension_numbers = #tpu.dot_dimension_numbers<[1], [0], [0], [1], [0, 0, 1, 1], [], []>} : vector<16x64xf32>, vector<64x32xf32>, vector<16x32xf32> -> vector<16x32xf32>
    %179 = arith.addf %169, %178 : vector<16x32xf32>
    %c32 = arith.constant 32 : index
    %c0_87 = arith.constant 0 : index
    %180 = vector.load %arg3[%c32, %c0_87] : memref<56x128xf32, #tpu.memory_space<vmem>>, vector<1x32xf32>
    %181 = vector.broadcast %180 : vector<1x32xf32> to vector<16x32xf32>
    %182 = arith.addf %179, %181 : vector<16x32xf32>
    %c33 = arith.constant 33 : index
    %c0_88 = arith.constant 0 : index
    %183 = vector.load %arg3[%c33, %c0_88] : memref<56x128xf32, #tpu.memory_space<vmem>>, vector<1x32xf32>
    %c34 = arith.constant 34 : index
    %c0_89 = arith.constant 0 : index
    %184 = vector.load %arg3[%c34, %c0_89] : memref<56x128xf32, #tpu.memory_space<vmem>>, vector<1x32xf32>
    %cst_90 = arith.constant dense<0.000000e+00> : vector<16xf32>
    %185 = vector.multi_reduction <add>, %182, %cst_90 [1] : vector<16x32xf32> to vector<16xf32>
    %186 = vector.shape_cast %185 : vector<16xf32> to vector<16x1xf32>
    %cst_91 = arith.constant 3.200000e+01 : f32
    %187 = vector.broadcast %cst_91 : f32 to vector<16x1xf32>
    %188 = arith.divf %186, %187 : vector<16x1xf32>
    %189 = arith.mulf %182, %182 : vector<16x32xf32>
    %cst_92 = arith.constant dense<0.000000e+00> : vector<16xf32>
    %190 = vector.multi_reduction <add>, %189, %cst_92 [1] : vector<16x32xf32> to vector<16xf32>
    %191 = vector.shape_cast %190 : vector<16xf32> to vector<16x1xf32>
    %cst_93 = arith.constant 3.200000e+01 : f32
    %192 = vector.broadcast %cst_93 : f32 to vector<16x1xf32>
    %193 = arith.divf %191, %192 : vector<16x1xf32>
    %194 = arith.mulf %188, %188 : vector<16x1xf32>
    %195 = arith.subf %193, %194 : vector<16x1xf32>
    %196 = vector.broadcast %188 : vector<16x1xf32> to vector<16x32xf32>
    %197 = arith.subf %182, %196 : vector<16x32xf32>
    %cst_94 = arith.constant 9.99999974E-6 : f32
    %198 = vector.broadcast %cst_94 : f32 to vector<16x1xf32>
    %199 = arith.addf %195, %198 : vector<16x1xf32>
    %200 = math.rsqrt %199 : vector<16x1xf32>
    %201 = vector.broadcast %200 : vector<16x1xf32> to vector<16x32xf32>
    %202 = arith.mulf %197, %201 : vector<16x32xf32>
    %203 = vector.broadcast %183 : vector<1x32xf32> to vector<16x32xf32>
    %204 = arith.mulf %202, %203 : vector<16x32xf32>
    %205 = vector.broadcast %184 : vector<1x32xf32> to vector<16x32xf32>
    %206 = arith.addf %204, %205 : vector<16x32xf32>
    %c16 = arith.constant 16 : index
    %c0_95 = arith.constant 0 : index
    %207 = vector.load %arg3[%c16, %c0_95] : memref<56x128xf32, #tpu.memory_space<vmem>>, vector<8x32xf32>
    %c520 = arith.constant 520 : index
    %c0_96 = arith.constant 0 : index
    %208 = vector.load %arg2[%c520, %c0_96] : memref<840x128xf32, #tpu.memory_space<vmem>>, vector<32x96xf32>
    %cst_97 = arith.constant dense<0.000000e+00> : vector<8x96xf32>
    %209 = tpu.matmul %207, %208, %cst_97 {dimension_numbers = #tpu.dot_dimension_numbers<[1], [0], [0], [1], [0, 0, 1, 1], [], []>} : vector<8x32xf32>, vector<32x96xf32>, vector<8x96xf32> -> vector<8x96xf32>
    %c35 = arith.constant 35 : index
    %c0_98 = arith.constant 0 : index
    %210 = vector.load %arg3[%c35, %c0_98] : memref<56x128xf32, #tpu.memory_space<vmem>>, vector<1x96xf32>
    %211 = vector.broadcast %210 : vector<1x96xf32> to vector<8x96xf32>
    %212 = arith.addf %209, %211 : vector<8x96xf32>
    %c552 = arith.constant 552 : index
    %c0_99 = arith.constant 0 : index
    %213 = vector.load %arg2[%c552, %c0_99] : memref<840x128xf32, #tpu.memory_space<vmem>>, vector<32x32xf32>
    %c36 = arith.constant 36 : index
    %c0_100 = arith.constant 0 : index
    %214 = vector.load %arg3[%c36, %c0_100] : memref<56x128xf32, #tpu.memory_space<vmem>>, vector<1x32xf32>
    %215 = vector.extract_strided_slice %212 {offsets = [0, 0], sizes = [8, 8], strides = [1, 1]} : vector<8x96xf32> to vector<8x8xf32>
    %216 = vector.extract_strided_slice %212 {offsets = [0, 32], sizes = [8, 8], strides = [1, 1]} : vector<8x96xf32> to vector<8x8xf32>
    %217 = vector.extract_strided_slice %212 {offsets = [0, 64], sizes = [8, 8], strides = [1, 1]} : vector<8x96xf32> to vector<8x8xf32>
    %cst_101 = arith.constant dense<0.000000e+00> : vector<8x8xf32>
    %218 = tpu.matmul %215, %216, %cst_101 {dimension_numbers = #tpu.dot_dimension_numbers<[1], [1], [0], [0], [0, 0, 1, 0], [], []>} : vector<8x8xf32>, vector<8x8xf32>, vector<8x8xf32> -> vector<8x8xf32>
    %cst_102 = arith.constant dense<0xFF800000> : vector<8xf32>
    %219 = vector.multi_reduction <maximumf>, %218, %cst_102 [1] : vector<8x8xf32> to vector<8xf32>
    %220 = vector.shape_cast %219 : vector<8xf32> to vector<8x1xf32>
    %221 = vector.broadcast %220 : vector<8x1xf32> to vector<8x8xf32>
    %222 = arith.subf %218, %221 : vector<8x8xf32>
    %223 = math.exp %222 : vector<8x8xf32>
    %cst_103 = arith.constant dense<0.000000e+00> : vector<8xf32>
    %224 = vector.multi_reduction <add>, %223, %cst_103 [1] : vector<8x8xf32> to vector<8xf32>
    %225 = vector.shape_cast %224 : vector<8xf32> to vector<8x1xf32>
    %226 = tpu.reciprocal %225 {approx = true} : vector<8x1xf32> -> vector<8x1xf32>
    %227 = vector.broadcast %226 : vector<8x1xf32> to vector<8x8xf32>
    %228 = arith.mulf %223, %227 : vector<8x8xf32>
    %cst_104 = arith.constant dense<0.000000e+00> : vector<8x8xf32>
    %229 = tpu.matmul %228, %217, %cst_104 {dimension_numbers = #tpu.dot_dimension_numbers<[1], [0], [0], [1], [0, 0, 1, 1], [], []>} : vector<8x8xf32>, vector<8x8xf32>, vector<8x8xf32> -> vector<8x8xf32>
    %230 = vector.extract_strided_slice %213 {offsets = [0, 0], sizes = [8, 32], strides = [1, 1]} : vector<32x32xf32> to vector<8x32xf32>
    %cst_105 = arith.constant dense<0.000000e+00> : vector<8x32xf32>
    %231 = tpu.matmul %229, %230, %cst_105 {dimension_numbers = #tpu.dot_dimension_numbers<[1], [0], [0], [1], [0, 0, 1, 1], [], []>} : vector<8x8xf32>, vector<8x32xf32>, vector<8x32xf32> -> vector<8x32xf32>
    %232 = vector.extract_strided_slice %212 {offsets = [0, 8], sizes = [8, 8], strides = [1, 1]} : vector<8x96xf32> to vector<8x8xf32>
    %233 = vector.extract_strided_slice %212 {offsets = [0, 40], sizes = [8, 8], strides = [1, 1]} : vector<8x96xf32> to vector<8x8xf32>
    %234 = vector.extract_strided_slice %212 {offsets = [0, 72], sizes = [8, 8], strides = [1, 1]} : vector<8x96xf32> to vector<8x8xf32>
    %cst_106 = arith.constant dense<0.000000e+00> : vector<8x8xf32>
    %235 = tpu.matmul %232, %233, %cst_106 {dimension_numbers = #tpu.dot_dimension_numbers<[1], [1], [0], [0], [0, 0, 1, 0], [], []>} : vector<8x8xf32>, vector<8x8xf32>, vector<8x8xf32> -> vector<8x8xf32>
    %cst_107 = arith.constant dense<0xFF800000> : vector<8xf32>
    %236 = vector.multi_reduction <maximumf>, %235, %cst_107 [1] : vector<8x8xf32> to vector<8xf32>
    %237 = vector.shape_cast %236 : vector<8xf32> to vector<8x1xf32>
    %238 = vector.broadcast %237 : vector<8x1xf32> to vector<8x8xf32>
    %239 = arith.subf %235, %238 : vector<8x8xf32>
    %240 = math.exp %239 : vector<8x8xf32>
    %cst_108 = arith.constant dense<0.000000e+00> : vector<8xf32>
    %241 = vector.multi_reduction <add>, %240, %cst_108 [1] : vector<8x8xf32> to vector<8xf32>
    %242 = vector.shape_cast %241 : vector<8xf32> to vector<8x1xf32>
    %243 = tpu.reciprocal %242 {approx = true} : vector<8x1xf32> -> vector<8x1xf32>
    %244 = vector.broadcast %243 : vector<8x1xf32> to vector<8x8xf32>
    %245 = arith.mulf %240, %244 : vector<8x8xf32>
    %cst_109 = arith.constant dense<0.000000e+00> : vector<8x8xf32>
    %246 = tpu.matmul %245, %234, %cst_109 {dimension_numbers = #tpu.dot_dimension_numbers<[1], [0], [0], [1], [0, 0, 1, 1], [], []>} : vector<8x8xf32>, vector<8x8xf32>, vector<8x8xf32> -> vector<8x8xf32>
    %247 = vector.extract_strided_slice %213 {offsets = [8, 0], sizes = [8, 32], strides = [1, 1]} : vector<32x32xf32> to vector<8x32xf32>
    %cst_110 = arith.constant dense<0.000000e+00> : vector<8x32xf32>
    %248 = tpu.matmul %246, %247, %cst_110 {dimension_numbers = #tpu.dot_dimension_numbers<[1], [0], [0], [1], [0, 0, 1, 1], [], []>} : vector<8x8xf32>, vector<8x32xf32>, vector<8x32xf32> -> vector<8x32xf32>
    %249 = arith.addf %231, %248 : vector<8x32xf32>
    %250 = vector.extract_strided_slice %212 {offsets = [0, 16], sizes = [8, 8], strides = [1, 1]} : vector<8x96xf32> to vector<8x8xf32>
    %251 = vector.extract_strided_slice %212 {offsets = [0, 48], sizes = [8, 8], strides = [1, 1]} : vector<8x96xf32> to vector<8x8xf32>
    %252 = vector.extract_strided_slice %212 {offsets = [0, 80], sizes = [8, 8], strides = [1, 1]} : vector<8x96xf32> to vector<8x8xf32>
    %cst_111 = arith.constant dense<0.000000e+00> : vector<8x8xf32>
    %253 = tpu.matmul %250, %251, %cst_111 {dimension_numbers = #tpu.dot_dimension_numbers<[1], [1], [0], [0], [0, 0, 1, 0], [], []>} : vector<8x8xf32>, vector<8x8xf32>, vector<8x8xf32> -> vector<8x8xf32>
    %cst_112 = arith.constant dense<0xFF800000> : vector<8xf32>
    %254 = vector.multi_reduction <maximumf>, %253, %cst_112 [1] : vector<8x8xf32> to vector<8xf32>
    %255 = vector.shape_cast %254 : vector<8xf32> to vector<8x1xf32>
    %256 = vector.broadcast %255 : vector<8x1xf32> to vector<8x8xf32>
    %257 = arith.subf %253, %256 : vector<8x8xf32>
    %258 = math.exp %257 : vector<8x8xf32>
    %cst_113 = arith.constant dense<0.000000e+00> : vector<8xf32>
    %259 = vector.multi_reduction <add>, %258, %cst_113 [1] : vector<8x8xf32> to vector<8xf32>
    %260 = vector.shape_cast %259 : vector<8xf32> to vector<8x1xf32>
    %261 = tpu.reciprocal %260 {approx = true} : vector<8x1xf32> -> vector<8x1xf32>
    %262 = vector.broadcast %261 : vector<8x1xf32> to vector<8x8xf32>
    %263 = arith.mulf %258, %262 : vector<8x8xf32>
    %cst_114 = arith.constant dense<0.000000e+00> : vector<8x8xf32>
    %264 = tpu.matmul %263, %252, %cst_114 {dimension_numbers = #tpu.dot_dimension_numbers<[1], [0], [0], [1], [0, 0, 1, 1], [], []>} : vector<8x8xf32>, vector<8x8xf32>, vector<8x8xf32> -> vector<8x8xf32>
    %265 = vector.extract_strided_slice %213 {offsets = [16, 0], sizes = [8, 32], strides = [1, 1]} : vector<32x32xf32> to vector<8x32xf32>
    %cst_115 = arith.constant dense<0.000000e+00> : vector<8x32xf32>
    %266 = tpu.matmul %264, %265, %cst_115 {dimension_numbers = #tpu.dot_dimension_numbers<[1], [0], [0], [1], [0, 0, 1, 1], [], []>} : vector<8x8xf32>, vector<8x32xf32>, vector<8x32xf32> -> vector<8x32xf32>
    %267 = arith.addf %249, %266 : vector<8x32xf32>
    %268 = vector.extract_strided_slice %212 {offsets = [0, 24], sizes = [8, 8], strides = [1, 1]} : vector<8x96xf32> to vector<8x8xf32>
    %269 = vector.extract_strided_slice %212 {offsets = [0, 56], sizes = [8, 8], strides = [1, 1]} : vector<8x96xf32> to vector<8x8xf32>
    %270 = vector.extract_strided_slice %212 {offsets = [0, 88], sizes = [8, 8], strides = [1, 1]} : vector<8x96xf32> to vector<8x8xf32>
    %cst_116 = arith.constant dense<0.000000e+00> : vector<8x8xf32>
    %271 = tpu.matmul %268, %269, %cst_116 {dimension_numbers = #tpu.dot_dimension_numbers<[1], [1], [0], [0], [0, 0, 1, 0], [], []>} : vector<8x8xf32>, vector<8x8xf32>, vector<8x8xf32> -> vector<8x8xf32>
    %cst_117 = arith.constant dense<0xFF800000> : vector<8xf32>
    %272 = vector.multi_reduction <maximumf>, %271, %cst_117 [1] : vector<8x8xf32> to vector<8xf32>
    %273 = vector.shape_cast %272 : vector<8xf32> to vector<8x1xf32>
    %274 = vector.broadcast %273 : vector<8x1xf32> to vector<8x8xf32>
    %275 = arith.subf %271, %274 : vector<8x8xf32>
    %276 = math.exp %275 : vector<8x8xf32>
    %cst_118 = arith.constant dense<0.000000e+00> : vector<8xf32>
    %277 = vector.multi_reduction <add>, %276, %cst_118 [1] : vector<8x8xf32> to vector<8xf32>
    %278 = vector.shape_cast %277 : vector<8xf32> to vector<8x1xf32>
    %279 = tpu.reciprocal %278 {approx = true} : vector<8x1xf32> -> vector<8x1xf32>
    %280 = vector.broadcast %279 : vector<8x1xf32> to vector<8x8xf32>
    %281 = arith.mulf %276, %280 : vector<8x8xf32>
    %cst_119 = arith.constant dense<0.000000e+00> : vector<8x8xf32>
    %282 = tpu.matmul %281, %270, %cst_119 {dimension_numbers = #tpu.dot_dimension_numbers<[1], [0], [0], [1], [0, 0, 1, 1], [], []>} : vector<8x8xf32>, vector<8x8xf32>, vector<8x8xf32> -> vector<8x8xf32>
    %283 = vector.extract_strided_slice %213 {offsets = [24, 0], sizes = [8, 32], strides = [1, 1]} : vector<32x32xf32> to vector<8x32xf32>
    %cst_120 = arith.constant dense<0.000000e+00> : vector<8x32xf32>
    %284 = tpu.matmul %282, %283, %cst_120 {dimension_numbers = #tpu.dot_dimension_numbers<[1], [0], [0], [1], [0, 0, 1, 1], [], []>} : vector<8x8xf32>, vector<8x32xf32>, vector<8x32xf32> -> vector<8x32xf32>
    %285 = arith.addf %267, %284 : vector<8x32xf32>
    %286 = vector.broadcast %214 : vector<1x32xf32> to vector<8x32xf32>
    %287 = arith.addf %285, %286 : vector<8x32xf32>
    %288 = arith.addf %207, %287 : vector<8x32xf32>
    %c37 = arith.constant 37 : index
    %c0_121 = arith.constant 0 : index
    %289 = vector.load %arg3[%c37, %c0_121] : memref<56x128xf32, #tpu.memory_space<vmem>>, vector<1x32xf32>
    %c38 = arith.constant 38 : index
    %c0_122 = arith.constant 0 : index
    %290 = vector.load %arg3[%c38, %c0_122] : memref<56x128xf32, #tpu.memory_space<vmem>>, vector<1x32xf32>
    %cst_123 = arith.constant dense<0.000000e+00> : vector<8xf32>
    %291 = vector.multi_reduction <add>, %288, %cst_123 [1] : vector<8x32xf32> to vector<8xf32>
    %292 = vector.shape_cast %291 : vector<8xf32> to vector<8x1xf32>
    %cst_124 = arith.constant 3.200000e+01 : f32
    %293 = vector.broadcast %cst_124 : f32 to vector<8x1xf32>
    %294 = arith.divf %292, %293 : vector<8x1xf32>
    %295 = arith.mulf %288, %288 : vector<8x32xf32>
    %cst_125 = arith.constant dense<0.000000e+00> : vector<8xf32>
    %296 = vector.multi_reduction <add>, %295, %cst_125 [1] : vector<8x32xf32> to vector<8xf32>
    %297 = vector.shape_cast %296 : vector<8xf32> to vector<8x1xf32>
    %cst_126 = arith.constant 3.200000e+01 : f32
    %298 = vector.broadcast %cst_126 : f32 to vector<8x1xf32>
    %299 = arith.divf %297, %298 : vector<8x1xf32>
    %300 = arith.mulf %294, %294 : vector<8x1xf32>
    %301 = arith.subf %299, %300 : vector<8x1xf32>
    %302 = vector.broadcast %294 : vector<8x1xf32> to vector<8x32xf32>
    %303 = arith.subf %288, %302 : vector<8x32xf32>
    %cst_127 = arith.constant 9.99999974E-6 : f32
    %304 = vector.broadcast %cst_127 : f32 to vector<8x1xf32>
    %305 = arith.addf %301, %304 : vector<8x1xf32>
    %306 = math.rsqrt %305 : vector<8x1xf32>
    %307 = vector.broadcast %306 : vector<8x1xf32> to vector<8x32xf32>
    %308 = arith.mulf %303, %307 : vector<8x32xf32>
    %309 = vector.broadcast %289 : vector<1x32xf32> to vector<8x32xf32>
    %310 = arith.mulf %308, %309 : vector<8x32xf32>
    %311 = vector.broadcast %290 : vector<1x32xf32> to vector<8x32xf32>
    %312 = arith.addf %310, %311 : vector<8x32xf32>
    %c584 = arith.constant 584 : index
    %c0_128 = arith.constant 0 : index
    %313 = vector.load %arg2[%c584, %c0_128] : memref<840x128xf32, #tpu.memory_space<vmem>>, vector<32x32xf32>
    %cst_129 = arith.constant dense<0.000000e+00> : vector<8x32xf32>
    %314 = tpu.matmul %312, %313, %cst_129 {dimension_numbers = #tpu.dot_dimension_numbers<[1], [0], [0], [1], [0, 0, 1, 1], [], []>} : vector<8x32xf32>, vector<32x32xf32>, vector<8x32xf32> -> vector<8x32xf32>
    %c39 = arith.constant 39 : index
    %c0_130 = arith.constant 0 : index
    %315 = vector.load %arg3[%c39, %c0_130] : memref<56x128xf32, #tpu.memory_space<vmem>>, vector<1x32xf32>
    %316 = vector.broadcast %315 : vector<1x32xf32> to vector<8x32xf32>
    %317 = arith.addf %314, %316 : vector<8x32xf32>
    %c616 = arith.constant 616 : index
    %c0_131 = arith.constant 0 : index
    %318 = vector.load %arg2[%c616, %c0_131] : memref<840x128xf32, #tpu.memory_space<vmem>>, vector<32x64xf32>
    %cst_132 = arith.constant dense<0.000000e+00> : vector<16x64xf32>
    %319 = tpu.matmul %206, %318, %cst_132 {dimension_numbers = #tpu.dot_dimension_numbers<[1], [0], [0], [1], [0, 0, 1, 1], [], []>} : vector<16x32xf32>, vector<32x64xf32>, vector<16x64xf32> -> vector<16x64xf32>
    %c40_133 = arith.constant 40 : index
    %c0_134 = arith.constant 0 : index
    %320 = vector.load %arg3[%c40_133, %c0_134] : memref<56x128xf32, #tpu.memory_space<vmem>>, vector<1x64xf32>
    %321 = vector.broadcast %320 : vector<1x64xf32> to vector<16x64xf32>
    %322 = arith.addf %319, %321 : vector<16x64xf32>
    %c648 = arith.constant 648 : index
    %c0_135 = arith.constant 0 : index
    %323 = vector.load %arg2[%c648, %c0_135] : memref<840x128xf32, #tpu.memory_space<vmem>>, vector<32x32xf32>
    %c41 = arith.constant 41 : index
    %c0_136 = arith.constant 0 : index
    %324 = vector.load %arg3[%c41, %c0_136] : memref<56x128xf32, #tpu.memory_space<vmem>>, vector<1x32xf32>
    %325 = vector.extract_strided_slice %317 {offsets = [0, 0], sizes = [8, 8], strides = [1, 1]} : vector<8x32xf32> to vector<8x8xf32>
    %326 = vector.extract_strided_slice %322 {offsets = [0, 0], sizes = [16, 8], strides = [1, 1]} : vector<16x64xf32> to vector<16x8xf32>
    %327 = vector.extract_strided_slice %322 {offsets = [0, 32], sizes = [16, 8], strides = [1, 1]} : vector<16x64xf32> to vector<16x8xf32>
    %cst_137 = arith.constant dense<0.000000e+00> : vector<8x16xf32>
    %328 = tpu.matmul %325, %326, %cst_137 {dimension_numbers = #tpu.dot_dimension_numbers<[1], [1], [0], [0], [0, 0, 1, 0], [], []>} : vector<8x8xf32>, vector<16x8xf32>, vector<8x16xf32> -> vector<8x16xf32>
    %cst_138 = arith.constant dense<0xFF800000> : vector<8xf32>
    %329 = vector.multi_reduction <maximumf>, %328, %cst_138 [1] : vector<8x16xf32> to vector<8xf32>
    %330 = vector.shape_cast %329 : vector<8xf32> to vector<8x1xf32>
    %331 = vector.broadcast %330 : vector<8x1xf32> to vector<8x16xf32>
    %332 = arith.subf %328, %331 : vector<8x16xf32>
    %333 = math.exp %332 : vector<8x16xf32>
    %cst_139 = arith.constant dense<0.000000e+00> : vector<8xf32>
    %334 = vector.multi_reduction <add>, %333, %cst_139 [1] : vector<8x16xf32> to vector<8xf32>
    %335 = vector.shape_cast %334 : vector<8xf32> to vector<8x1xf32>
    %336 = tpu.reciprocal %335 {approx = true} : vector<8x1xf32> -> vector<8x1xf32>
    %337 = vector.broadcast %336 : vector<8x1xf32> to vector<8x16xf32>
    %338 = arith.mulf %333, %337 : vector<8x16xf32>
    %cst_140 = arith.constant dense<0.000000e+00> : vector<8x8xf32>
    %339 = tpu.matmul %338, %327, %cst_140 {dimension_numbers = #tpu.dot_dimension_numbers<[1], [0], [0], [1], [0, 0, 1, 1], [], []>} : vector<8x16xf32>, vector<16x8xf32>, vector<8x8xf32> -> vector<8x8xf32>
    %340 = vector.extract_strided_slice %323 {offsets = [0, 0], sizes = [8, 32], strides = [1, 1]} : vector<32x32xf32> to vector<8x32xf32>
    %cst_141 = arith.constant dense<0.000000e+00> : vector<8x32xf32>
    %341 = tpu.matmul %339, %340, %cst_141 {dimension_numbers = #tpu.dot_dimension_numbers<[1], [0], [0], [1], [0, 0, 1, 1], [], []>} : vector<8x8xf32>, vector<8x32xf32>, vector<8x32xf32> -> vector<8x32xf32>
    %342 = vector.extract_strided_slice %317 {offsets = [0, 8], sizes = [8, 8], strides = [1, 1]} : vector<8x32xf32> to vector<8x8xf32>
    %343 = vector.extract_strided_slice %322 {offsets = [0, 8], sizes = [16, 8], strides = [1, 1]} : vector<16x64xf32> to vector<16x8xf32>
    %344 = vector.extract_strided_slice %322 {offsets = [0, 40], sizes = [16, 8], strides = [1, 1]} : vector<16x64xf32> to vector<16x8xf32>
    %cst_142 = arith.constant dense<0.000000e+00> : vector<8x16xf32>
    %345 = tpu.matmul %342, %343, %cst_142 {dimension_numbers = #tpu.dot_dimension_numbers<[1], [1], [0], [0], [0, 0, 1, 0], [], []>} : vector<8x8xf32>, vector<16x8xf32>, vector<8x16xf32> -> vector<8x16xf32>
    %cst_143 = arith.constant dense<0xFF800000> : vector<8xf32>
    %346 = vector.multi_reduction <maximumf>, %345, %cst_143 [1] : vector<8x16xf32> to vector<8xf32>
    %347 = vector.shape_cast %346 : vector<8xf32> to vector<8x1xf32>
    %348 = vector.broadcast %347 : vector<8x1xf32> to vector<8x16xf32>
    %349 = arith.subf %345, %348 : vector<8x16xf32>
    %350 = math.exp %349 : vector<8x16xf32>
    %cst_144 = arith.constant dense<0.000000e+00> : vector<8xf32>
    %351 = vector.multi_reduction <add>, %350, %cst_144 [1] : vector<8x16xf32> to vector<8xf32>
    %352 = vector.shape_cast %351 : vector<8xf32> to vector<8x1xf32>
    %353 = tpu.reciprocal %352 {approx = true} : vector<8x1xf32> -> vector<8x1xf32>
    %354 = vector.broadcast %353 : vector<8x1xf32> to vector<8x16xf32>
    %355 = arith.mulf %350, %354 : vector<8x16xf32>
    %cst_145 = arith.constant dense<0.000000e+00> : vector<8x8xf32>
    %356 = tpu.matmul %355, %344, %cst_145 {dimension_numbers = #tpu.dot_dimension_numbers<[1], [0], [0], [1], [0, 0, 1, 1], [], []>} : vector<8x16xf32>, vector<16x8xf32>, vector<8x8xf32> -> vector<8x8xf32>
    %357 = vector.extract_strided_slice %323 {offsets = [8, 0], sizes = [8, 32], strides = [1, 1]} : vector<32x32xf32> to vector<8x32xf32>
    %cst_146 = arith.constant dense<0.000000e+00> : vector<8x32xf32>
    %358 = tpu.matmul %356, %357, %cst_146 {dimension_numbers = #tpu.dot_dimension_numbers<[1], [0], [0], [1], [0, 0, 1, 1], [], []>} : vector<8x8xf32>, vector<8x32xf32>, vector<8x32xf32> -> vector<8x32xf32>
    %359 = arith.addf %341, %358 : vector<8x32xf32>
    %360 = vector.extract_strided_slice %317 {offsets = [0, 16], sizes = [8, 8], strides = [1, 1]} : vector<8x32xf32> to vector<8x8xf32>
    %361 = vector.extract_strided_slice %322 {offsets = [0, 16], sizes = [16, 8], strides = [1, 1]} : vector<16x64xf32> to vector<16x8xf32>
    %362 = vector.extract_strided_slice %322 {offsets = [0, 48], sizes = [16, 8], strides = [1, 1]} : vector<16x64xf32> to vector<16x8xf32>
    %cst_147 = arith.constant dense<0.000000e+00> : vector<8x16xf32>
    %363 = tpu.matmul %360, %361, %cst_147 {dimension_numbers = #tpu.dot_dimension_numbers<[1], [1], [0], [0], [0, 0, 1, 0], [], []>} : vector<8x8xf32>, vector<16x8xf32>, vector<8x16xf32> -> vector<8x16xf32>
    %cst_148 = arith.constant dense<0xFF800000> : vector<8xf32>
    %364 = vector.multi_reduction <maximumf>, %363, %cst_148 [1] : vector<8x16xf32> to vector<8xf32>
    %365 = vector.shape_cast %364 : vector<8xf32> to vector<8x1xf32>
    %366 = vector.broadcast %365 : vector<8x1xf32> to vector<8x16xf32>
    %367 = arith.subf %363, %366 : vector<8x16xf32>
    %368 = math.exp %367 : vector<8x16xf32>
    %cst_149 = arith.constant dense<0.000000e+00> : vector<8xf32>
    %369 = vector.multi_reduction <add>, %368, %cst_149 [1] : vector<8x16xf32> to vector<8xf32>
    %370 = vector.shape_cast %369 : vector<8xf32> to vector<8x1xf32>
    %371 = tpu.reciprocal %370 {approx = true} : vector<8x1xf32> -> vector<8x1xf32>
    %372 = vector.broadcast %371 : vector<8x1xf32> to vector<8x16xf32>
    %373 = arith.mulf %368, %372 : vector<8x16xf32>
    %cst_150 = arith.constant dense<0.000000e+00> : vector<8x8xf32>
    %374 = tpu.matmul %373, %362, %cst_150 {dimension_numbers = #tpu.dot_dimension_numbers<[1], [0], [0], [1], [0, 0, 1, 1], [], []>} : vector<8x16xf32>, vector<16x8xf32>, vector<8x8xf32> -> vector<8x8xf32>
    %375 = vector.extract_strided_slice %323 {offsets = [16, 0], sizes = [8, 32], strides = [1, 1]} : vector<32x32xf32> to vector<8x32xf32>
    %cst_151 = arith.constant dense<0.000000e+00> : vector<8x32xf32>
    %376 = tpu.matmul %374, %375, %cst_151 {dimension_numbers = #tpu.dot_dimension_numbers<[1], [0], [0], [1], [0, 0, 1, 1], [], []>} : vector<8x8xf32>, vector<8x32xf32>, vector<8x32xf32> -> vector<8x32xf32>
    %377 = arith.addf %359, %376 : vector<8x32xf32>
    %378 = vector.extract_strided_slice %317 {offsets = [0, 24], sizes = [8, 8], strides = [1, 1]} : vector<8x32xf32> to vector<8x8xf32>
    %379 = vector.extract_strided_slice %322 {offsets = [0, 24], sizes = [16, 8], strides = [1, 1]} : vector<16x64xf32> to vector<16x8xf32>
    %380 = vector.extract_strided_slice %322 {offsets = [0, 56], sizes = [16, 8], strides = [1, 1]} : vector<16x64xf32> to vector<16x8xf32>
    %cst_152 = arith.constant dense<0.000000e+00> : vector<8x16xf32>
    %381 = tpu.matmul %378, %379, %cst_152 {dimension_numbers = #tpu.dot_dimension_numbers<[1], [1], [0], [0], [0, 0, 1, 0], [], []>} : vector<8x8xf32>, vector<16x8xf32>, vector<8x16xf32> -> vector<8x16xf32>
    %cst_153 = arith.constant dense<0xFF800000> : vector<8xf32>
    %382 = vector.multi_reduction <maximumf>, %381, %cst_153 [1] : vector<8x16xf32> to vector<8xf32>
    %383 = vector.shape_cast %382 : vector<8xf32> to vector<8x1xf32>
    %384 = vector.broadcast %383 : vector<8x1xf32> to vector<8x16xf32>
    %385 = arith.subf %381, %384 : vector<8x16xf32>
    %386 = math.exp %385 : vector<8x16xf32>
    %cst_154 = arith.constant dense<0.000000e+00> : vector<8xf32>
    %387 = vector.multi_reduction <add>, %386, %cst_154 [1] : vector<8x16xf32> to vector<8xf32>
    %388 = vector.shape_cast %387 : vector<8xf32> to vector<8x1xf32>
    %389 = tpu.reciprocal %388 {approx = true} : vector<8x1xf32> -> vector<8x1xf32>
    %390 = vector.broadcast %389 : vector<8x1xf32> to vector<8x16xf32>
    %391 = arith.mulf %386, %390 : vector<8x16xf32>
    %cst_155 = arith.constant dense<0.000000e+00> : vector<8x8xf32>
    %392 = tpu.matmul %391, %380, %cst_155 {dimension_numbers = #tpu.dot_dimension_numbers<[1], [0], [0], [1], [0, 0, 1, 1], [], []>} : vector<8x16xf32>, vector<16x8xf32>, vector<8x8xf32> -> vector<8x8xf32>
    %393 = vector.extract_strided_slice %323 {offsets = [24, 0], sizes = [8, 32], strides = [1, 1]} : vector<32x32xf32> to vector<8x32xf32>
    %cst_156 = arith.constant dense<0.000000e+00> : vector<8x32xf32>
    %394 = tpu.matmul %392, %393, %cst_156 {dimension_numbers = #tpu.dot_dimension_numbers<[1], [0], [0], [1], [0, 0, 1, 1], [], []>} : vector<8x8xf32>, vector<8x32xf32>, vector<8x32xf32> -> vector<8x32xf32>
    %395 = arith.addf %377, %394 : vector<8x32xf32>
    %396 = vector.broadcast %324 : vector<1x32xf32> to vector<8x32xf32>
    %397 = arith.addf %395, %396 : vector<8x32xf32>
    %398 = arith.addf %312, %397 : vector<8x32xf32>
    %c42 = arith.constant 42 : index
    %c0_157 = arith.constant 0 : index
    %399 = vector.load %arg3[%c42, %c0_157] : memref<56x128xf32, #tpu.memory_space<vmem>>, vector<1x32xf32>
    %c43 = arith.constant 43 : index
    %c0_158 = arith.constant 0 : index
    %400 = vector.load %arg3[%c43, %c0_158] : memref<56x128xf32, #tpu.memory_space<vmem>>, vector<1x32xf32>
    %cst_159 = arith.constant dense<0.000000e+00> : vector<8xf32>
    %401 = vector.multi_reduction <add>, %398, %cst_159 [1] : vector<8x32xf32> to vector<8xf32>
    %402 = vector.shape_cast %401 : vector<8xf32> to vector<8x1xf32>
    %cst_160 = arith.constant 3.200000e+01 : f32
    %403 = vector.broadcast %cst_160 : f32 to vector<8x1xf32>
    %404 = arith.divf %402, %403 : vector<8x1xf32>
    %405 = arith.mulf %398, %398 : vector<8x32xf32>
    %cst_161 = arith.constant dense<0.000000e+00> : vector<8xf32>
    %406 = vector.multi_reduction <add>, %405, %cst_161 [1] : vector<8x32xf32> to vector<8xf32>
    %407 = vector.shape_cast %406 : vector<8xf32> to vector<8x1xf32>
    %cst_162 = arith.constant 3.200000e+01 : f32
    %408 = vector.broadcast %cst_162 : f32 to vector<8x1xf32>
    %409 = arith.divf %407, %408 : vector<8x1xf32>
    %410 = arith.mulf %404, %404 : vector<8x1xf32>
    %411 = arith.subf %409, %410 : vector<8x1xf32>
    %412 = vector.broadcast %404 : vector<8x1xf32> to vector<8x32xf32>
    %413 = arith.subf %398, %412 : vector<8x32xf32>
    %cst_163 = arith.constant 9.99999974E-6 : f32
    %414 = vector.broadcast %cst_163 : f32 to vector<8x1xf32>
    %415 = arith.addf %411, %414 : vector<8x1xf32>
    %416 = math.rsqrt %415 : vector<8x1xf32>
    %417 = vector.broadcast %416 : vector<8x1xf32> to vector<8x32xf32>
    %418 = arith.mulf %413, %417 : vector<8x32xf32>
    %419 = vector.broadcast %399 : vector<1x32xf32> to vector<8x32xf32>
    %420 = arith.mulf %418, %419 : vector<8x32xf32>
    %421 = vector.broadcast %400 : vector<1x32xf32> to vector<8x32xf32>
    %422 = arith.addf %420, %421 : vector<8x32xf32>
    %c680 = arith.constant 680 : index
    %c0_164 = arith.constant 0 : index
    %423 = vector.load %arg2[%c680, %c0_164] : memref<840x128xf32, #tpu.memory_space<vmem>>, vector<32x64xf32>
    %cst_165 = arith.constant dense<0.000000e+00> : vector<8x64xf32>
    %424 = tpu.matmul %422, %423, %cst_165 {dimension_numbers = #tpu.dot_dimension_numbers<[1], [0], [0], [1], [0, 0, 1, 1], [], []>} : vector<8x32xf32>, vector<32x64xf32>, vector<8x64xf32> -> vector<8x64xf32>
    %c44 = arith.constant 44 : index
    %c0_166 = arith.constant 0 : index
    %425 = vector.load %arg3[%c44, %c0_166] : memref<56x128xf32, #tpu.memory_space<vmem>>, vector<1x64xf32>
    %426 = vector.broadcast %425 : vector<1x64xf32> to vector<8x64xf32>
    %427 = arith.addf %424, %426 : vector<8x64xf32>
    %cst_167 = arith.constant 0.000000e+00 : f32
    %428 = vector.broadcast %cst_167 : f32 to vector<8x64xf32>
    %429 = arith.maximumf %427, %428 : vector<8x64xf32>
    %c712 = arith.constant 712 : index
    %c0_168 = arith.constant 0 : index
    %430 = vector.load %arg2[%c712, %c0_168] : memref<840x128xf32, #tpu.memory_space<vmem>>, vector<64x32xf32>
    %cst_169 = arith.constant dense<0.000000e+00> : vector<8x32xf32>
    %431 = tpu.matmul %429, %430, %cst_169 {dimension_numbers = #tpu.dot_dimension_numbers<[1], [0], [0], [1], [0, 0, 1, 1], [], []>} : vector<8x64xf32>, vector<64x32xf32>, vector<8x32xf32> -> vector<8x32xf32>
    %432 = arith.addf %422, %431 : vector<8x32xf32>
    %c45 = arith.constant 45 : index
    %c0_170 = arith.constant 0 : index
    %433 = vector.load %arg3[%c45, %c0_170] : memref<56x128xf32, #tpu.memory_space<vmem>>, vector<1x32xf32>
    %434 = vector.broadcast %433 : vector<1x32xf32> to vector<8x32xf32>
    %435 = arith.addf %432, %434 : vector<8x32xf32>
    %c46 = arith.constant 46 : index
    %c0_171 = arith.constant 0 : index
    %436 = vector.load %arg3[%c46, %c0_171] : memref<56x128xf32, #tpu.memory_space<vmem>>, vector<1x32xf32>
    %c47 = arith.constant 47 : index
    %c0_172 = arith.constant 0 : index
    %437 = vector.load %arg3[%c47, %c0_172] : memref<56x128xf32, #tpu.memory_space<vmem>>, vector<1x32xf32>
    %cst_173 = arith.constant dense<0.000000e+00> : vector<8xf32>
    %438 = vector.multi_reduction <add>, %435, %cst_173 [1] : vector<8x32xf32> to vector<8xf32>
    %439 = vector.shape_cast %438 : vector<8xf32> to vector<8x1xf32>
    %cst_174 = arith.constant 3.200000e+01 : f32
    %440 = vector.broadcast %cst_174 : f32 to vector<8x1xf32>
    %441 = arith.divf %439, %440 : vector<8x1xf32>
    %442 = arith.mulf %435, %435 : vector<8x32xf32>
    %cst_175 = arith.constant dense<0.000000e+00> : vector<8xf32>
    %443 = vector.multi_reduction <add>, %442, %cst_175 [1] : vector<8x32xf32> to vector<8xf32>
    %444 = vector.shape_cast %443 : vector<8xf32> to vector<8x1xf32>
    %cst_176 = arith.constant 3.200000e+01 : f32
    %445 = vector.broadcast %cst_176 : f32 to vector<8x1xf32>
    %446 = arith.divf %444, %445 : vector<8x1xf32>
    %447 = arith.mulf %441, %441 : vector<8x1xf32>
    %448 = arith.subf %446, %447 : vector<8x1xf32>
    %449 = vector.broadcast %441 : vector<8x1xf32> to vector<8x32xf32>
    %450 = arith.subf %435, %449 : vector<8x32xf32>
    %cst_177 = arith.constant 9.99999974E-6 : f32
    %451 = vector.broadcast %cst_177 : f32 to vector<8x1xf32>
    %452 = arith.addf %448, %451 : vector<8x1xf32>
    %453 = math.rsqrt %452 : vector<8x1xf32>
    %454 = vector.broadcast %453 : vector<8x1xf32> to vector<8x32xf32>
    %455 = arith.mulf %450, %454 : vector<8x32xf32>
    %456 = vector.broadcast %436 : vector<1x32xf32> to vector<8x32xf32>
    %457 = arith.mulf %455, %456 : vector<8x32xf32>
    %458 = vector.broadcast %437 : vector<1x32xf32> to vector<8x32xf32>
    %459 = arith.addf %457, %458 : vector<8x32xf32>
    %c776 = arith.constant 776 : index
    %c0_178 = arith.constant 0 : index
    %460 = vector.load %arg2[%c776, %c0_178] : memref<840x128xf32, #tpu.memory_space<vmem>>, vector<32x40xf32>
    %cst_179 = arith.constant dense<0.000000e+00> : vector<8x40xf32>
    %461 = tpu.matmul %459, %460, %cst_179 {dimension_numbers = #tpu.dot_dimension_numbers<[1], [0], [0], [1], [0, 0, 1, 1], [], []>} : vector<8x32xf32>, vector<32x40xf32>, vector<8x40xf32> -> vector<8x40xf32>
    %c48 = arith.constant 48 : index
    %c0_180 = arith.constant 0 : index
    %462 = vector.load %arg3[%c48, %c0_180] : memref<56x128xf32, #tpu.memory_space<vmem>>, vector<1x40xf32>
    %463 = vector.broadcast %462 : vector<1x40xf32> to vector<8x40xf32>
    %464 = arith.addf %461, %463 : vector<8x40xf32>
    %465 = vector.extract_strided_slice %464 {offsets = [0, 0], sizes = [8, 8], strides = [1, 1]} : vector<8x40xf32> to vector<8x8xf32>
    %466 = vector.extract_strided_slice %464 {offsets = [0, 8], sizes = [8, 32], strides = [1, 1]} : vector<8x40xf32> to vector<8x32xf32>
    %cst_181 = arith.constant 0.000000e+00 : f32
    %467 = vector.broadcast %cst_181 : f32 to vector<8x32xf32>
    %468 = arith.maximumf %466, %467 : vector<8x32xf32>
    %c808 = arith.constant 808 : index
    %c0_182 = arith.constant 0 : index
    %469 = vector.load %arg2[%c808, %c0_182] : memref<840x128xf32, #tpu.memory_space<vmem>>, vector<32x4xf32>
    %cst_183 = arith.constant dense<0.000000e+00> : vector<8x4xf32>
    %470 = tpu.matmul %468, %469, %cst_183 {dimension_numbers = #tpu.dot_dimension_numbers<[1], [0], [0], [1], [0, 0, 1, 1], [], []>} : vector<8x32xf32>, vector<32x4xf32>, vector<8x4xf32> -> vector<8x4xf32>
    %c49 = arith.constant 49 : index
    %c0_184 = arith.constant 0 : index
    %471 = vector.load %arg3[%c49, %c0_184] : memref<56x128xf32, #tpu.memory_space<vmem>>, vector<1x4xf32>
    %472 = vector.broadcast %471 : vector<1x4xf32> to vector<8x4xf32>
    %473 = arith.addf %470, %472 : vector<8x4xf32>
    %474 = arith.negf %473 : vector<8x4xf32>
    %475 = math.exp %474 : vector<8x4xf32>
    %cst_185 = arith.constant 1.000000e+00 : f32
    %476 = vector.broadcast %cst_185 : f32 to vector<8x4xf32>
    %477 = arith.addf %476, %475 : vector<8x4xf32>
    %478 = arith.divf %476, %477 : vector<8x4xf32>
    %479 = tpu.concatenate %465, %478 in 1 : vector<8x8xf32>, vector<8x4xf32> -> vector<8x12xf32>
    %c0_186 = arith.constant 0 : index
    %c0_187 = arith.constant 0 : index
    %c0_188 = arith.constant 0 : index
    %480 = vector.load %arg4[%c0_186, %c0_187, %c0_188] : memref<1x8x12xf32, #tpu.memory_space<vmem>>, vector<1x8x12xf32>
    %481 = vector.shape_cast %480 : vector<1x8x12xf32> to vector<8x12xf32>
    %482 = vector.shape_cast %479 : vector<8x12xf32> to vector<1x8x12xf32>
    tpu.vector_store %arg4[%c0_186, %c0_187, %c0_188], %482 {strides = array<i32>} : memref<1x8x12xf32, #tpu.memory_space<vmem>>, vector<1x8x12xf32>,
    return
  }
  func.func @transform_0(%arg0: i32) -> (i32, i32, i32) {
    %c0_i32 = arith.constant 0 : i32
    %c0_i32_0 = arith.constant 0 : i32
    %c0_i32_1 = arith.constant 0 : i32
    return %arg0, %c0_i32, %c0_i32_0 : i32, i32, i32
  }
  func.func @transform_1(%arg0: i32) -> (i32, i32) {
    %c0_i32 = arith.constant 0 : i32
    %c0_i32_0 = arith.constant 0 : i32
    %c0_i32_1 = arith.constant 0 : i32
    return %c0_i32, %c0_i32_0 : i32, i32
  }
  func.func @transform_2(%arg0: i32) -> (i32, i32) {
    %c0_i32 = arith.constant 0 : i32
    %c0_i32_0 = arith.constant 0 : i32
    %c0_i32_1 = arith.constant 0 : i32
    return %c0_i32, %c0_i32_0 : i32, i32
  }
  func.func @transform_3(%arg0: i32) -> (i32, i32, i32) {
    %c0_i32 = arith.constant 0 : i32
    %c0_i32_0 = arith.constant 0 : i32
    %c0_i32_1 = arith.constant 0 : i32
    return %arg0, %c0_i32, %c0_i32_0 : i32, i32, i32
  }
}

</mosaic_0001>

<bundles_post_ra>
// kernel: rtdetr_forward.1
= control target key start
LH: loop header
LB: loop body
LE: loop exit
PB: predicated region body
PF: predicated region fallthrough
CT: control target
= control target key end

     0   :  { %s7371_s12 = smov 0   ;;  %s8412_s0 = inlined_call_operand.vmem [shape: f32[2,64,36], index: 0, kind: input, shape index: {}]   ;;  %s8413_s1 = inlined_call_operand.vmem [shape: f32[840,128], index: 1, kind: input, shape index: {}]   ;;  %s8414_s2 = inlined_call_operand.vmem [shape: f32[56,128], index: 2, kind: input, shape index: {}]   ;;  %s8415_s3 = inlined_call_operand.vmem [shape: f32[2,8,12], index: 3, kind: output, shape index: {}]  }
   0x1 LB: > { %s6146_s13 = sadd.s32 4294967295, %s7335_s12   ;;  %p6150_p0 = scmp.ge.s32.totalorder %s7335_s12, 1  ;;  %s7335_s12 = sphi %s7371_s12, %s13_s12  }
   0x2   : > { %p137_p1 = scmp.lt.s32.totalorder %s7335_s12, 3 }
   0x4   : > { %p138_p2 = pnand %p6150_p0, %p137_p1 }
   0x5   : > { %p160_p3 = scmp.lt.s32.totalorder (!%p138_p2), %s6146_s13, 1  ;;  %s7337_s28 = smov (!%p138_p2), 88  }
   0x6   : > { %141 = sbr.rel (%p138_p2) target bundleno = 10988 (0x2aec), region = 32  ;;  %s7338_s29 = smov (!%p138_p2), 96  }
   0x7   : > { %s7339_s30 = smov (!%p138_p2), 120   ;;  %s7340_s4 = smov (!%p138_p2), 64  }
   0x8   : > { %s7341_s5 = smov (!%p138_p2), 56   ;;  %s7342_s6 = smov (!%p138_p2), 80  }
   0x9   : > { %s7343_s7 = smov (!%p138_p2), 112   ;;  %s7344_s8 = smov (!%p138_p2), 72  }
   0xa   : > { %s7345_s9 = smov (!%p138_p2), 104   ;;  %s7346_s16 = smov (!%p138_p2), 48  }
   0xb   : > { %v181_v0 = vld [vmem:[%s8413_s1 + $0x20] sm:$0xf]  ;;  %vm212_vm0 = vcmask 1043456   ;;  %v180_v1 = vld [vmem:[%s8413_s1 + $0x18] sm:$0xff]  ;;  %v179_v2 = vld [vmem:[%s8413_s1 + $0x10] sm:$0xff]  ;;  %s8417_s13 = smov (!%p160_p3, %s6146_s13), 1 }
   0xc   : > { %6620 = vmatprep.subr.msk.mxu0 %vm212_vm0, %v181_v0  ;;  %v178_v3 = vld [vmem:[%s8413_s1 + $0x8] sm:$0xff]  ;;  %s6312_s22 = sshll.u32 %s8417_s13, 6  ;;  %vm187_vm1 = vcmask 293888   ;;  %v177_v4 = vld [vmem:[%s8413_s1] sm:$0xff]  ;;  %vm331_vm2 = vcmask 523264   ;;  %v415_v13 = vld [vmem:[%s8413_s1 + $0x38] sm:$0xff] }
   0xd   : > { %6621 = vmatpush3.msk.msra.mxu0 %vm212_vm0, %v181_v0  ;;  %s164_s25 = scalar_lea.vmem %s8412_s0, %s6312_s22  ;;  %v329_v14 = vld [vmem:[%s8413_s1 + $0x28] sm:$0xff]  ;;  %v6154_v21 = vld [vmem:[%s8414_s2 + $0x18] ss:$0 sm:$0xff]  ;;  %v416_v40 = vld [vmem:[%s8413_s1 + $0x40] sm:$0xff]  ;;  %vm500_vm3 = vcmask 130048   ;;  %vm1857_vm4 = vcmask 261120  }
   0xe   : > { %6622 = vmatprep.subr.mxu0 %v180_v1  ;;  %v169_v5 = vld [vmem:[%s164_s25] sm:$0xff]  ;;  %v170_v6 = vld [vmem:[%s164_s25 + $0x8] sm:$0xff]  ;;  %v171_v7 = vld [vmem:[%s164_s25 + $0x10] sm:$0xff]  ;;  %6658 = vmatprep.mubr.msk.f32.mxu1 %vm331_vm2, %v329_v14  ;;  %vm2044_vm5 = vcmask 64512   ;;  %s7347_s17 = smov 40   ;;  %vm7349_vm6 = vmmov 0  }
   0xf   : > { %6623 = vmatpush3.msra.mxu0 %v180_v1  ;;  %6630 = vmatprep.mubr.msk.f32.mxu0 %vm187_vm1, %v169_v5  ;;  %v172_v8 = vld [vmem:[%s164_s25 + $0x18] sm:$0xff]  ;;  %v173_v9 = vld [vmem:[%s164_s25 + $0x20] sm:$0xff]  ;;  %v174_v10 = vld [vmem:[%s164_s25 + $0x28] sm:$0xff]  ;;  %s7350_s22 = smov 8   ;;  %s6153_s23 = sshll.u32 %s8417_s13, 3  ;;  %vm6091_vm7 = vcmask 97280  }
  0x10   : > { %6624 = vmatprep.subr.mxu0 %v179_v2  ;;  %v175_v11 = vld [vmem:[%s164_s25 + $0x30] sm:$0xff]  ;;  %v176_v12 = vld [vmem:[%s164_s25 + $0x38] sm:$0xff]  ;;  %v1083_v44 = vld [vmem:[%s8413_s1 + $0x100] sm:$0xff] }
  0x11   : > { %6625 = vmatpush3.msra.mxu0 %v179_v2  ;;  %v330_v41 = vld [vmem:[%s8413_s1 + $0x30] sm:$0xff]  ;;  %v831_v42 = vld [vmem:[%s8413_s1 + $0x58] sm:$0xff]  ;;  %v832_v45 = vld [vmem:[%s8413_s1 + $0x60] sm:$0xff] }
  0x12   : > { %6626 = vmatprep.subr.mxu0 %v178_v3  ;;  %v499_v43 = vld [vmem:[%s8413_s1 + $0xd0] sm:$0xff]  ;;  %v1082_v46 = vld [vmem:[%s8413_s1 + $0xf8] sm:$0xff]  ;;  %v498_v47 = vld [vmem:[%s8413_s1 + $0xc8] sm:$0xff] }
  0x13   : > { %6627 = vmatpush3.msra.mxu0 %v178_v3  ;;  %v414_v48 = vld [vmem:[%s8413_s1 + $0xc0] sm:$0xff]  ;;  %v413_v53 = vld [vmem:[%s8413_s1 + $0xb8] sm:$0xff]  ;;  %v663_v54 = vld [vmem:[%s8413_s1 + $0x48] sm:$0xff] }
  0x14   : > { %6628 = vmatprep.subr.mxu0 %v177_v4  ;;  %v664_v55 = vld [vmem:[%s8413_s1 + $0x50] sm:$0xff]  ;;  %v747_v56 = vld [vmem:[%s8413_s1 + $0xe0] sm:$0xff]  ;;  %v746_v57 = vld [vmem:[%s8413_s1 + $0xd8] sm:$0xff] }
  0x15   : > { %6629 = vmatpush3.msra.mxu0 %v177_v4  ;;  %v915_v58 = vld [vmem:[%s8413_s1 + $0xf0] sm:$0xff]  ;;  %v914_v5 = vld [vmem:[%s8413_s1 + $0xe8] sm:$0xff] }
  0x16   : > { %6631 = vmatmul.mubr.msk.f32.vlgmr.msra.gmra.mxu0 %vm187_vm1, %v170_v6  ;;  %v999_v6 = vld [vmem:[%s8413_s1 + $0x68] sm:$0xff] }
  0x17   : > { %6633 = vmatprep.mubr.msk.f32.mxu0 %vm187_vm1, %v171_v7  ;;  %v1000_v7 = vld [vmem:[%s8413_s1 + $0x70] sm:$0xff] }
  0x1a   : > { %6634 = vmatmul.mubr.msk.f32.gmra.mxu0 %vm187_vm1, %v172_v8  ;;  %v1251_v8 = vld [vmem:[%s8413_s1 + $0x110] sm:$0xff] }
  0x1b   : > { %6636 = vmatprep.mubr.msk.f32.mxu0 %vm187_vm1, %v173_v9  ;;  %v1250_v9 = vld [vmem:[%s8413_s1 + $0x108] sm:$0xff] }
  0x1e   : > { %6637 = vmatmul.mubr.msk.f32.gmra.mxu0 %vm187_vm1, %v174_v10 }
  0x1f   : > { %6639 = vmatprep.mubr.msk.f32.mxu0 %vm187_vm1, %v175_v11 }
  0x22   : > { %6640 = vmatmul.mubr.msk.f32.gmra.mxu0 %vm187_vm1, %v176_v12 }
  0x23   : > { %6677 = vmatprep.mubr.msk.f32.mxu0 %vm331_vm2, %v415_v13 }
  0xd6   : > { %v6632_v15 = vpop.f32.mrf.mxu0 }
  0xd7   : > { %v288_v34 = vadd.f32 %v6632_v15, %v6154_v21 }
  0xd8   : > { %v282_v16 = vpop.f32.mrf.mxu0 }
  0xd9   : > { %v283_v36 = vadd.f32 %v6154_v21, %v282_v16  ;;  %v7451_v38 = vmax.f32 %v288_v34, 0.0  ;;  %v1335_v34 = vld [vmem:[%s8413_s1 + $0x88] sm:$0xff] }
  0xda   : > { %v6635_v17 = vpop.f32.mrf.mxu0 }
  0xdb   : > { %v298_v30 = vadd.f32 %v6635_v17, %v6154_v21  ;;  %v7457_v39 = vmax.f32 %v283_v36, 0.0  ;;  %v1336_v36 = vld [vmem:[%s8413_s1 + $0x90] sm:$0xff] }
  0xdc   : > { %v292_v18 = vpop.f32.mrf.mxu0 }
  0xdd   : > { %v293_v32 = vadd.f32 %v6154_v21, %v292_v18  ;;  %v7439_v35 = vmax.f32 %v298_v30, 0.0 }
  0xde   : > { %v6638_v19 = vpop.f32.mrf.mxu0 }
  0xdf   : > { %v308_v25 = vadd.f32 %v6638_v19, %v6154_v21  ;;  %v7445_v37 = vmax.f32 %v293_v32, 0.0 }
  0xe0   : > { %v302_v20 = vpop.f32.mrf.mxu0 }
  0xe1   : > { %v303_v28 = vadd.f32 %v6154_v21, %v302_v20  ;;  %v7427_v31 = vmax.f32 %v308_v25, 0.0  ;;  %v1167_v20 = vld [vmem:[%s8413_s1 + $0x78] sm:$0xff] }
  0xe2   : > { %v6641_v22 = vpop.f32.mrf.mxu0 }
  0xe3   : > { %v318_v23 = vadd.f32 %v6641_v22, %v6154_v21  ;;  %v7433_v33 = vmax.f32 %v303_v28, 0.0  ;;  %v1419_v22 = vld [vmem:[%s8413_s1 + $0x120] sm:$0xff] }
  0xe4   : > { %v312_v24 = vpop.f32.mrf.mxu0 }
  0xe5   : > { %v7419_v26 = vmax.f32 %v318_v23, 0.0  ;;  %v313_v27 = vadd.f32 %v6154_v21, %v312_v24  ;;  %v1168_v21 = vld [vmem:[%s8413_s1 + $0x80] sm:$0xff]  ;;  %v1418_v23 = vld [vmem:[%s8413_s1 + $0x118] sm:$0xff] }
  0xe7   : > { %v7421_v29 = vmax.f32 %v313_v27, 0.0  ;;  %6642 = vmatprep.subr.mxu1 %v7419_v26  ;;  %6661 = vmatprep.subr.mxu0 %v7419_v26 }
  0xe8   : > { %6643 = vmatpush3.msra.mxu1 %v7419_v26  ;;  %6662 = vmatpush3.msra.mxu0 %v7419_v26 }
  0xe9   : > { %6644 = vmatprep.subr.mxu1 %v7421_v29  ;;  %6663 = vmatprep.subr.mxu0 %v7421_v29 }
  0xea   : > { %6645 = vmatpush3.msra.mxu1 %v7421_v29  ;;  %6664 = vmatpush3.msra.mxu0 %v7421_v29 }
  0xeb   : > { %6646 = vmatprep.subr.mxu1 %v7427_v31  ;;  %6665 = vmatprep.subr.mxu0 %v7427_v31 }
  0xec   : > { %6647 = vmatpush3.msra.mxu1 %v7427_v31  ;;  %6666 = vmatpush3.msra.mxu0 %v7427_v31 }
  0xed   : > { %6648 = vmatprep.subr.mxu1 %v7433_v33  ;;  %6667 = vmatprep.subr.mxu0 %v7433_v33 }
  0xee   : > { %6649 = vmatpush3.msra.mxu1 %v7433_v33  ;;  %6668 = vmatpush3.msra.mxu0 %v7433_v33 }
  0xef   : > { %6650 = vmatprep.subr.mxu1 %v7439_v35  ;;  %6669 = vmatprep.subr.mxu0 %v7439_v35 }
  0xf0   : > { %6651 = vmatpush3.msra.mxu1 %v7439_v35  ;;  %6670 = vmatpush3.msra.mxu0 %v7439_v35 }
  0xf1   : > { %6652 = vmatprep.subr.mxu1 %v7445_v37  ;;  %6671 = vmatprep.subr.mxu0 %v7445_v37 }
  0xf2   : > { %6653 = vmatpush3.msra.mxu1 %v7445_v37  ;;  %6672 = vmatpush3.msra.mxu0 %v7445_v37 }
  0xf3   : > { %6654 = vmatprep.subr.mxu1 %v7451_v38  ;;  %6673 = vmatprep.subr.mxu0 %v7451_v38 }
  0xf4   : > { %6655 = vmatpush3.msra.mxu1 %v7451_v38  ;;  %6674 = vmatpush3.msra.mxu0 %v7451_v38 }
  0xf5   : > { %6656 = vmatprep.subr.mxu1 %v7457_v39  ;;  %6675 = vmatprep.subr.mxu0 %v7457_v39 }
  0xf6   : > { %6657 = vmatpush3.msra.mxu1 %v7457_v39  ;;  %6676 = vmatpush3.msra.mxu0 %v7457_v39 }
  0xf7   : > { %6678 = vmatmul.mubr.msk.f32.vlgmr.msra.gmra.mxu0 %vm331_vm2, %v416_v40  ;;  %6720 = vmatprep.subr.mxu0 %v7419_v26  ;;  %v1587_v40 = vld [vmem:[%s8413_s1 + $0x130] sm:$0xff] }
  0xf8   : > { %6721 = vmatpush3.msra.mxu0 %v7419_v26  ;;  %6659 = vmatmul.mubr.msk.f32.vlgmr.msra.gmra.mxu1 %vm331_vm2, %v330_v41  ;;  %v1586_v41 = vld [vmem:[%s8413_s1 + $0x128] sm:$0xff] }
  0xf9   : > { %6722 = vmatprep.subr.mxu0 %v7421_v29  ;;  %6736 = vmatprep.mubr.msk.f32.mxu0 %vm331_vm2, %v831_v42 }
  0xfa   : > { %6723 = vmatpush3.msra.mxu0 %v7421_v29  ;;  %6680 = vmatprep.subr.mxu1 %v499_v43 }
  0xfb   : > { %6724 = vmatprep.subr.mxu0 %v7427_v31  ;;  %6681 = vmatpush3.msra.mxu1 %v499_v43 }
  0xfc   : > { %6725 = vmatpush3.msra.mxu0 %v7427_v31  ;;  %6682 = vmatprep.subr.mxu1 %v498_v47 }
  0xfd   : > { %6726 = vmatprep.subr.mxu0 %v7433_v33  ;;  %6683 = vmatpush3.msra.mxu1 %v498_v47 }
  0xfe   : > { %6727 = vmatpush3.msra.mxu0 %v7433_v33  ;;  %6687 = vmatprep.subr.mxu1 %v414_v48 }
  0xff   : > { %6728 = vmatprep.subr.mxu0 %v7439_v35 }
 0x100   : > { %6729 = vmatpush3.msra.mxu0 %v7439_v35 }
 0x101   : > { %6730 = vmatprep.subr.mxu0 %v7445_v37 }
 0x102   : > { %6731 = vmatpush3.msra.mxu0 %v7445_v37 }
 0x103   : > { %6732 = vmatprep.subr.mxu0 %v7451_v38 }
 0x104   : > { %6733 = vmatpush3.msra.mxu0 %v7451_v38 }
 0x105   : > { %6734 = vmatprep.subr.mxu0 %v7457_v39 }
 0x106   : > { %6735 = vmatpush3.msra.mxu0 %v7457_v39 }
 0x107   : > { %6765 = vmatprep.subr.mxu0 %v1083_v44  ;;  %6737 = vmatmul.mubr.msk.f32.vlgmr.msra.gmra.mxu0 %vm331_vm2, %v832_v45 }
 0x108   : > { %6766 = vmatpush3.msra.mxu0 %v1083_v44 }
 0x109   : > { %6767 = vmatprep.subr.mxu0 %v1082_v46 }
 0x10a   : > { %6768 = vmatpush3.msra.mxu0 %v1082_v46 }
 0x10b   : > { %6772 = vmatprep.subr.mxu0 %v7419_v26 }
 0x1b7   : > { %v6679_v49 = vpop.f32.mrf.mxu0 }
 0x1b8   : > { %v6660_v50 = vpop.f32.mrf.mxu1 }
 0x1b9   : > { %v489_v51 = vpop.f32.mrf.mxu0 }
 0x1ba   : > { %6684 = vmatprep.mubr.msk.f32.mxu1 %vm500_vm3, %v489_v51  ;;  %v404_v52 = vpop.f32.mrf.mxu1 }
 0x1bb   : > { %6685 = vmatmul.mubr.msk.f32.vlgmr.msra.gmra.mxu1 %vm500_vm3, %v6679_v49  ;;  %v1504_v49 = vld [vmem:[%s8413_s1 + $0xa0] sm:$0xff] }
 0x1bc   : > { %6688 = vmatpush3.msra.mxu1 %v414_v48  ;;  %6691 = vmatprep.mubr.msk.f32.mxu1 %vm500_vm3, %v404_v52  ;;  %v1503_v48 = vld [vmem:[%s8413_s1 + $0x98] sm:$0xff] }
 0x1bd   : > { %6689 = vmatprep.subr.mxu1 %v413_v53 }
 0x1be   : > { %6690 = vmatpush3.msra.mxu1 %v413_v53 }
 0x1bf   : > { %6694 = vmatprep.subr.mxu1 %v7419_v26  ;;  %6692 = vmatmul.mubr.msk.f32.vlgmr.msra.gmra.mxu1 %vm500_vm3, %v6660_v50 }
 0x1c0   : > { %6695 = vmatpush3.msra.mxu1 %v7419_v26  ;;  %6710 = vmatprep.mubr.msk.f32.mxu1 %vm331_vm2, %v663_v54 }
 0x1c1   : > { %6696 = vmatprep.subr.mxu1 %v7421_v29 }
 0x1c2   : > { %6697 = vmatpush3.msra.mxu1 %v7421_v29 }
 0x1c3   : > { %6698 = vmatprep.subr.mxu1 %v7427_v31 }
 0x1c4   : > { %6699 = vmatpush3.msra.mxu1 %v7427_v31 }
 0x1c5   : > { %6700 = vmatprep.subr.mxu1 %v7433_v33 }
 0x1c6   : > { %6701 = vmatpush3.msra.mxu1 %v7433_v33 }
 0x1c7   : > { %6702 = vmatprep.subr.mxu1 %v7439_v35  ;;  %v6738_v1 = vpop.f32.mrf.mxu0 }
 0x1c8   : > { %6703 = vmatpush3.msra.mxu1 %v7439_v35 }
 0x1c9   : > { %6704 = vmatprep.subr.mxu1 %v7445_v37  ;;  %v905_v4 = vpop.f32.mrf.mxu0 }
 0x1ca   : > { %6705 = vmatpush3.msra.mxu1 %v7445_v37 }
 0x1cb   : > { %6706 = vmatprep.subr.mxu1 %v7451_v38 }
 0x1cc   : > { %6707 = vmatpush3.msra.mxu1 %v7451_v38 }
 0x1cd   : > { %6708 = vmatprep.subr.mxu1 %v7457_v39 }
 0x1ce   : > { %6709 = vmatpush3.msra.mxu1 %v7457_v39 }
 0x1cf   : > { %6711 = vmatmul.mubr.msk.f32.vlgmr.msra.gmra.mxu1 %vm331_vm2, %v664_v55  ;;  %6713 = vmatprep.subr.mxu1 %v747_v56 }
 0x1d0   : > { %6714 = vmatpush3.msra.mxu1 %v747_v56  ;;  %v1671_v56 = vld [vmem:[%s8413_s1 + $0xa8] sm:$0xff] }
 0x1d1   : > { %6715 = vmatprep.subr.mxu1 %v746_v57 }
 0x1d2   : > { %6716 = vmatpush3.msra.mxu1 %v746_v57 }
 0x1d3   : > { %6739 = vmatprep.subr.mxu1 %v915_v58 }
 0x27b   : > { %v6686_v59 = vpop.f32.mrf.mxu1 }
 0x27d   : > { %v573_v60 = vpop.f32.mrf.mxu1 }
 0x27f   : > { %v6693_v61 = vpop.f32.mrf.mxu1 }
 0x280   : > { %v660_v62 = vadd.f32 %v6693_v61, %v6686_v59  ;;  %v1850_v59 = vld [vmem:[%s8413_s1 + $0x158] sm:$0xff]  ;;  %v1848_v61 = vld [vmem:[%s8413_s1 + $0x148] sm:$0xff] }
 0x281   : > { %v654_v63 = vpop.f32.mrf.mxu1 }
 0x282   : > { %v655_v0 = vadd.f32 %v654_v63, %v573_v60  ;;  %v1849_v60 = vld [vmem:[%s8413_s1 + $0x150] sm:$0xff] }
 0x28f   : > { %v6712_v2 = vpop.f32.mrf.mxu1 }
 0x291   : > { %v737_v3 = vpop.f32.mrf.mxu1 }
 0x292   : > { %6717 = vmatprep.mubr.msk.f32.mxu1 %vm500_vm3, %v737_v3 }
 0x293   : > { %6718 = vmatmul.mubr.msk.f32.vlgmr.msra.gmra.mxu1 %vm500_vm3, %v6712_v2 }
 0x294   : > { %6740 = vmatpush3.msra.mxu1 %v915_v58  ;;  %6743 = vmatprep.mubr.msk.f32.mxu1 %vm500_vm3, %v905_v4  ;;  %v1851_v58 = vld [vmem:[%s8413_s1 + $0x160] sm:$0xff] }
 0x295   : > { %6741 = vmatprep.subr.mxu1 %v914_v5 }
 0x296   : > { %6742 = vmatpush3.msra.mxu1 %v914_v5 }
 0x297   : > { %6746 = vmatprep.subr.mxu1 %v7419_v26  ;;  %6744 = vmatmul.mubr.msk.f32.vlgmr.msra.gmra.mxu1 %vm500_vm3, %v6738_v1 }
 0x298   : > { %6747 = vmatpush3.msra.mxu1 %v7419_v26  ;;  %6762 = vmatprep.mubr.msk.f32.mxu1 %vm331_vm2, %v999_v6 }
 0x299   : > { %6748 = vmatprep.subr.mxu1 %v7421_v29 }
 0x29a   : > { %6749 = vmatpush3.msra.mxu1 %v7421_v29 }
 0x29b   : > { %6750 = vmatprep.subr.mxu1 %v7427_v31 }
 0x29c   : > { %6751 = vmatpush3.msra.mxu1 %v7427_v31 }
 0x29d   : > { %6752 = vmatprep.subr.mxu1 %v7433_v33 }
 0x29e   : > { %6753 = vmatpush3.msra.mxu1 %v7433_v33 }
 0x29f   : > { %6754 = vmatprep.subr.mxu1 %v7439_v35 }
 0x2a0   : > { %6755 = vmatpush3.msra.mxu1 %v7439_v35 }
 0x2a1   : > { %6756 = vmatprep.subr.mxu1 %v7445_v37 }
 0x2a2   : > { %6757 = vmatpush3.msra.mxu1 %v7445_v37 }
 0x2a3   : > { %6758 = vmatprep.subr.mxu1 %v7451_v38 }
 0x2a4   : > { %6759 = vmatpush3.msra.mxu1 %v7451_v38 }
 0x2a5   : > { %6760 = vmatprep.subr.mxu1 %v7457_v39 }
 0x2a6   : > { %6761 = vmatpush3.msra.mxu1 %v7457_v39 }
 0x2a7   : > { %6763 = vmatmul.mubr.msk.f32.vlgmr.msra.gmra.mxu1 %vm331_vm2, %v1000_v7  ;;  %6791 = vmatprep.subr.mxu1 %v1251_v8  ;;  %v1946_v7 = vld [vmem:[%s8413_s1 + $0x180] sm:$0xff] }
 0x2a8   : > { %6792 = vmatpush3.msra.mxu1 %v1251_v8  ;;  %v1945_v8 = vld [vmem:[%s8413_s1 + $0x178] sm:$0xff] }
 0x2a9   : > { %6793 = vmatprep.subr.mxu1 %v1250_v9 }
 0x2aa   : > { %6794 = vmatpush3.msra.mxu1 %v1250_v9  ;;  %v1944_v9 = vld [vmem:[%s8413_s1 + $0x170] sm:$0xff] }
 0x2ab   : > { %6798 = vmatprep.subr.mxu1 %v7419_v26 }
 0x353   : > { %v6719_v10 = vpop.f32.mrf.mxu1 }
 0x354   : > { %v830_v11 = vadd.f32 %v6719_v10, %v660_v62  ;;  %v1943_v10 = vld [vmem:[%s8413_s1 + $0x168] sm:$0xff] }
 0x355   : > { %v820_v12 = vpop.f32.mrf.mxu1 }
 0x356   : > { %v829_v13 = vadd.f32 %v820_v12, %v655_v0  ;;  %v6200_v0 = vld [vmem:[%s8414_s2 + $0x19] ss:$0 sm:$0xff] }
 0x357   : > { %v6745_v14 = vpop.f32.mrf.mxu1 }
 0x358   : > { %v998_v15 = vadd.f32 %v6745_v14, %v830_v11  ;;  %v6201_v11 = vld [vmem:[%s8414_s2 + $0x1a] ss:$0 sm:$0xff] }
 0x359   : > { %v988_v16 = vpop.f32.mrf.mxu1 }
 0x35a   : > { %v997_v17 = vadd.f32 %v988_v16, %v829_v13  ;;  %v1940_v16 = vld [vmem:[%s8414_s2 + $0x8] sm:$0xff] }
 0x367   : > { %v6764_v18 = vpop.f32.mrf.mxu1 }
 0x369   : > { %v1073_v19 = vpop.f32.mrf.mxu1 }
 0x36a   : > { %6769 = vmatprep.mubr.msk.f32.mxu0 %vm500_vm3, %v1073_v19 }
 0x36b   : > { %6770 = vmatmul.mubr.msk.f32.vlgmr.msra.gmra.mxu0 %vm500_vm3, %v6764_v18 }
 0x36c   : > { %6773 = vmatpush3.msra.mxu0 %v7419_v26  ;;  %6788 = vmatprep.mubr.msk.f32.mxu0 %vm331_vm2, %v1167_v20  ;;  %v6204_v20 = vld [vmem:[%s8414_s2 + $0x1b] ss:$0 sm:$0xff] }
 0x36d   : > { %6774 = vmatprep.subr.mxu0 %v7421_v29 }
 0x36e   : > { %6775 = vmatpush3.msra.mxu0 %v7421_v29 }
 0x36f   : > { %6776 = vmatprep.subr.mxu0 %v7427_v31 }
 0x370   : > { %6777 = vmatpush3.msra.mxu0 %v7427_v31 }
 0x371   : > { %6778 = vmatprep.subr.mxu0 %v7433_v33 }
 0x372   : > { %6779 = vmatpush3.msra.mxu0 %v7433_v33 }
 0x373   : > { %6780 = vmatprep.subr.mxu0 %v7439_v35 }
 0x374   : > { %6781 = vmatpush3.msra.mxu0 %v7439_v35 }
 0x375   : > { %6782 = vmatprep.subr.mxu0 %v7445_v37 }
 0x376   : > { %6783 = vmatpush3.msra.mxu0 %v7445_v37 }
 0x377   : > { %6784 = vmatprep.subr.mxu0 %v7451_v38 }
 0x378   : > { %6785 = vmatpush3.msra.mxu0 %v7451_v38 }
 0x379   : > { %6786 = vmatprep.subr.mxu0 %v7457_v39 }
 0x37a   : > { %6787 = vmatpush3.msra.mxu0 %v7457_v39 }
 0x37b   : > { %6789 = vmatmul.mubr.msk.f32.vlgmr.msra.gmra.mxu0 %vm331_vm2, %v1168_v21  ;;  %6817 = vmatprep.subr.mxu0 %v1419_v22 }
 0x37c   : > { %6818 = vmatpush3.msra.mxu0 %v1419_v22 }
 0x37d   : > { %6819 = vmatprep.subr.mxu0 %v1418_v23 }
 0x37e   : > { %6820 = vmatpush3.msra.mxu0 %v1418_v23 }
 0x37f   : > { %6824 = vmatprep.subr.mxu0 %v7419_v26 }
 0x42b   : > { %v6771_v24 = vpop.f32.mrf.mxu0 }
 0x42c   : > { %v1166_v25 = vadd.f32 %v6771_v24, %v998_v15  ;;  %v1939_v15 = vld [vmem:[%s8414_s2] sm:$0xff] }
 0x42d   : > { %v1156_v27 = vpop.f32.mrf.mxu0 }
 0x42e   : > { %v1165_v28 = vadd.f32 %v1156_v27, %v997_v17 }
 0x43b   : > { %v6790_v30 = vpop.f32.mrf.mxu0 }
 0x43d   : > { %v1241_v32 = vpop.f32.mrf.mxu0 }
 0x43e   : > { %6795 = vmatprep.mubr.msk.f32.mxu1 %vm500_vm3, %v1241_v32 }
 0x43f   : > { %6796 = vmatmul.mubr.msk.f32.vlgmr.msra.gmra.mxu1 %vm500_vm3, %v6790_v30 }
 0x440   : > { %6799 = vmatpush3.msra.mxu1 %v7419_v26  ;;  %6814 = vmatprep.mubr.msk.f32.mxu1 %vm331_vm2, %v1335_v34 }
 0x441   : > { %6800 = vmatprep.subr.mxu1 %v7421_v29 }
 0x442   : > { %6801 = vmatpush3.msra.mxu1 %v7421_v29 }
 0x443   : > { %6802 = vmatprep.subr.mxu1 %v7427_v31 }
 0x444   : > { %6803 = vmatpush3.msra.mxu1 %v7427_v31 }
 0x445   : > { %6804 = vmatprep.subr.mxu1 %v7433_v33 }
 0x446   : > { %6805 = vmatpush3.msra.mxu1 %v7433_v33 }
 0x447   : > { %6806 = vmatprep.subr.mxu1 %v7439_v35 }
 0x448   : > { %6807 = vmatpush3.msra.mxu1 %v7439_v35 }
 0x449   : > { %6808 = vmatprep.subr.mxu1 %v7445_v37 }
 0x44a   : > { %6809 = vmatpush3.msra.mxu1 %v7445_v37 }
 0x44b   : > { %6810 = vmatprep.subr.mxu1 %v7451_v38 }
 0x44c   : > { %6811 = vmatpush3.msra.mxu1 %v7451_v38 }
 0x44d   : > { %6812 = vmatprep.subr.mxu1 %v7457_v39 }
 0x44e   : > { %6813 = vmatpush3.msra.mxu1 %v7457_v39 }
 0x44f   : > { %6815 = vmatmul.mubr.msk.f32.vlgmr.msra.gmra.mxu1 %vm331_vm2, %v1336_v36  ;;  %6843 = vmatprep.subr.mxu1 %v1587_v40 }
 0x450   : > { %6844 = vmatpush3.msra.mxu1 %v1587_v40 }
 0x451   : > { %6845 = vmatprep.subr.mxu1 %v1586_v41 }
 0x452   : > { %6846 = vmatpush3.msra.mxu1 %v1586_v41 }
 0x453   : > { %6850 = vmatprep.subr.mxu1 %v7419_v26 }
 0x4ff   : > { %v6797_v42 = vpop.f32.mrf.mxu1 }
 0x500   : > { %v1334_v43 = vadd.f32 %v6797_v42, %v1166_v25 }
 0x501   : > { %v1324_v44 = vpop.f32.mrf.mxu1 }
 0x502   : > { %v1333_v45 = vadd.f32 %v1324_v44, %v1165_v28 }
 0x50f   : > { %v6816_v46 = vpop.f32.mrf.mxu1 }
 0x511   : > { %v1409_v47 = vpop.f32.mrf.mxu1 }
 0x512   : > { %6821 = vmatprep.mubr.msk.f32.mxu0 %vm500_vm3, %v1409_v47 }
 0x513   : > { %6822 = vmatmul.mubr.msk.f32.vlgmr.msra.gmra.mxu0 %vm500_vm3, %v6816_v46 }
 0x514   : > { %6825 = vmatpush3.msra.mxu0 %v7419_v26  ;;  %6840 = vmatprep.mubr.msk.f32.mxu0 %vm331_vm2, %v1503_v48 }
 0x515   : > { %6826 = vmatprep.subr.mxu0 %v7421_v29 }
 0x516   : > { %6827 = vmatpush3.msra.mxu0 %v7421_v29 }
 0x517   : > { %6828 = vmatprep.subr.mxu0 %v7427_v31 }
 0x518   : > { %6829 = vmatpush3.msra.mxu0 %v7427_v31 }
 0x519   : > { %6830 = vmatprep.subr.mxu0 %v7433_v33 }
 0x51a   : > { %6831 = vmatpush3.msra.mxu0 %v7433_v33 }
 0x51b   : > { %6832 = vmatprep.subr.mxu0 %v7439_v35 }
 0x51c   : > { %6833 = vmatpush3.msra.mxu0 %v7439_v35 }
 0x51d   : > { %6834 = vmatprep.subr.mxu0 %v7445_v37 }
 0x51e   : > { %6835 = vmatpush3.msra.mxu0 %v7445_v37 }
 0x51f   : > { %6836 = vmatprep.subr.mxu0 %v7451_v38 }
 0x520   : > { %6837 = vmatpush3.msra.mxu0 %v7451_v38 }
 0x521   : > { %6838 = vmatprep.subr.mxu0 %v7457_v39 }
 0x522   : > { %6839 = vmatpush3.msra.mxu0 %v7457_v39 }
 0x523   : > { %6841 = vmatmul.mubr.msk.f32.vlgmr.msra.gmra.mxu0 %vm331_vm2, %v1504_v49 }
 0x5d3   : > { %v6823_v50 = vpop.f32.mrf.mxu0 }
 0x5d4   : > { %v1502_v51 = vadd.f32 %v6823_v50, %v1334_v43 }
 0x5d5   : > { %v1492_v52 = vpop.f32.mrf.mxu0 }
 0x5d6   : > { %v1501_v53 = vadd.f32 %v1492_v52, %v1333_v45 }
 0x5e3   : > { %v6842_v54 = vpop.f32.mrf.mxu0 }
 0x5e5   : > { %v1577_v55 = vpop.f32.mrf.mxu0 }
 0x5e6   : > { %6847 = vmatprep.mubr.msk.f32.mxu1 %vm500_vm3, %v1577_v55 }
 0x5e7   : > { %6848 = vmatmul.mubr.msk.f32.vlgmr.msra.gmra.mxu1 %vm500_vm3, %v6842_v54 }
 0x5e8   : > { %6851 = vmatpush3.msra.mxu1 %v7419_v26  ;;  %6866 = vmatprep.mubr.msk.f32.mxu1 %vm331_vm2, %v1671_v56  ;;  %v1672_v26 = vld [vmem:[%s8413_s1 + $0xb0] sm:$0xff] }
 0x5e9   : > { %6852 = vmatprep.subr.mxu1 %v7421_v29 }
 0x5ea   : > { %6853 = vmatpush3.msra.mxu1 %v7421_v29  ;;  %v1755_v29 = vld [vmem:[%s8413_s1 + $0x140] sm:$0xff] }
 0x5eb   : > { %6854 = vmatprep.subr.mxu1 %v7427_v31  ;;  %6869 = vmatprep.subr.mxu0 %v1755_v29 }
 0x5ec   : > { %6855 = vmatpush3.msra.mxu1 %v7427_v31  ;;  %6870 = vmatpush3.msra.mxu0 %v1755_v29  ;;  %v1754_v31 = vld [vmem:[%s8413_s1 + $0x138] sm:$0xff] }
 0x5ed   : > { %6856 = vmatprep.subr.mxu1 %v7433_v33  ;;  %6871 = vmatprep.subr.mxu0 %v1754_v31 }
 0x5ee   : > { %6857 = vmatpush3.msra.mxu1 %v7433_v33  ;;  %6872 = vmatpush3.msra.mxu0 %v1754_v31 }
 0x5ef   : > { %6858 = vmatprep.subr.mxu1 %v7439_v35  ;;  %6876 = vmatprep.subr.mxu0 %v1851_v58 }
 0x5f0   : > { %6859 = vmatpush3.msra.mxu1 %v7439_v35 }
 0x5f1   : > { %6860 = vmatprep.subr.mxu1 %v7445_v37 }
 0x5f2   : > { %6861 = vmatpush3.msra.mxu1 %v7445_v37 }
 0x5f3   : > { %6862 = vmatprep.subr.mxu1 %v7451_v38 }
 0x5f4   : > { %6863 = vmatpush3.msra.mxu1 %v7451_v38 }
 0x5f5   : > { %6864 = vmatprep.subr.mxu1 %v7457_v39 }
 0x5f6   : > { %6865 = vmatpush3.msra.mxu1 %v7457_v39 }
 0x5f7   : > { %6867 = vmatmul.mubr.msk.f32.vlgmr.msra.gmra.mxu1 %vm331_vm2, %v1672_v26 }
 0x6a7   : > { %v6849_v33 = vpop.f32.mrf.mxu1 }
 0x6a8   : > { %v1670_v35 = vadd.f32 %v6849_v33, %v1502_v51 }
 0x6a9   : > { %v1660_v37 = vpop.f32.mrf.mxu1 }
 0x6aa   : > { %v1669_v38 = vadd.f32 %v1660_v37, %v1501_v53 }
 0x6b7   : > { %v6868_v57 = vpop.f32.mrf.mxu1 }
 0x6b9   : > { %v1745_v39 = vpop.f32.mrf.mxu1 }
 0x6ba   : > { %6873 = vmatprep.mubr.msk.f32.mxu0 %vm500_vm3, %v1745_v39 }
 0x6bb   : > { %6874 = vmatmul.mubr.msk.f32.vlgmr.msra.gmra.mxu0 %vm500_vm3, %v6868_v57 }
 0x6bc   : > { %6877 = vmatpush3.msra.mxu0 %v1851_v58 }
 0x6bd   : > { %6878 = vmatprep.subr.mxu0 %v1850_v59 }
 0x6be   : > { %6879 = vmatpush3.msra.mxu0 %v1850_v59 }
 0x6bf   : > { %6880 = vmatprep.subr.mxu0 %v1849_v60 }
 0x6c0   : > { %6881 = vmatpush3.msra.mxu0 %v1849_v60 }
 0x6c1   : > { %6882 = vmatprep.subr.mxu0 %v1848_v61 }
 0x6c2   : > { %6883 = vmatpush3.msra.mxu0 %v1848_v61 }
 0x6c3   : > { %6887 = vmatprep.subr.mxu0 %v1946_v7 }
 0x77b   : > { %v6875_v62 = vpop.f32.mrf.mxu0 }
 0x77c   : > { %v1838_v63 = vadd.f32 %v6875_v62, %v1670_v35 }
 0x77d   : > { %v1828_v1 = vpop.f32.mrf.mxu0 }
 0x77e   : > { %v1837_v2 = vadd.f32 %v1828_v1, %v1669_v38  ;;  %v1845_v3 = vadd.f32 %v6200_v0, %v1838_v63 }
 0x780   : > { %v1844_v4 = vadd.f32 %v6200_v0, %v1837_v2  ;;  %v1847_v6 = vmax.f32 %v1845_v3, 0.0 }
 0x782   : > { %v1846_v5 = vmax.f32 %v1844_v4, 0.0 }
 0x784   : > { %6884 = vmatprep.mubr.msk.f32.mxu0 %vm1857_vm4, %v1846_v5 }
 0x785   : > { %6885 = vmatmul.mubr.msk.f32.vlgmr.msra.gmra.mxu0 %vm1857_vm4, %v1847_v6 }
 0x786   : > { %6888 = vmatpush3.msra.mxu0 %v1946_v7  ;;  %v2034_v7 = vld [vmem:[%s8413_s1 + $0x190] sm:$0xff] }
 0x787   : > { %6889 = vmatprep.subr.mxu0 %v1945_v8 }
 0x788   : > { %6890 = vmatpush3.msra.mxu0 %v1945_v8 }
 0x789   : > { %6891 = vmatprep.subr.mxu0 %v1944_v9 }
 0x78a   : > { %6892 = vmatpush3.msra.mxu0 %v1944_v9 }
 0x78b   : > { %6893 = vmatprep.subr.mxu0 %v1943_v10 }
 0x78c   : > { %6894 = vmatpush3.msra.mxu0 %v1943_v10 }
 0x845   : > { %v6886_v12 = vpop.f32.mrf.mxu0 }
 0x846   : > { %v1936_v13 = vadd.f32 %v6886_v12, %v6201_v11 }
 0x847   : > { %v1930_v14 = vpop.f32.mrf.mxu0 }
 0x848   : > { %v1931_v17 = vadd.f32 %v6201_v11, %v1930_v14  ;;  %v7755_v19 = vadd.f32 %v1940_v16, %v1936_v13  ;;  %v2033_v13 = vld [vmem:[%s8413_s1 + $0x188] sm:$0xff] }
 0x84a   : > { %v7753_v18 = vadd.f32 %v1939_v15, %v1931_v17 }
 0x84c   : > { %6895 = vmatprep.mubr.msk.f32.mxu0 %vm1857_vm4, %v7753_v18 }
 0x84d   : > { %6896 = vmatmul.mubr.msk.f32.vlgmr.msra.gmra.mxu0 %vm1857_vm4, %v7755_v19 }
 0x90d   : > { %v6897_v21 = vpop.f32.mrf.mxu0 }
 0x90e   : > { %v7764_v22 = vadd.f32 %v6897_v21, %v6204_v20 }
 0x90f   : > { %v2024_v23 = vpop.f32.mrf.mxu0 }
 0x910   : > { %v7766_v24 = vadd.f32 %v6204_v20, %v2024_v23  ;;  %2243 = vrot.lane.b32.xlu1 %v7764_v22, %s7337_s28  ;;  %2042 = vrot.lane.b32.xlu0 %v7764_v22, %s7338_s29 }
 0x912   : > { %6902 = vmatprep.mubr.msk.f32.mxu1 %vm2044_vm5, %v7766_v24 }
 0x914   : > { %2241 = vrot.lane.b32.xlu1 %v7766_v24, %s7337_s28  ;;  %2040 = vrot.lane.b32.xlu0 %v7766_v24, %s7338_s29 }
 0x918   : > { %2239 = vrot.lane.b32.xlu1 %v7764_v22, %s7339_s30  ;;  %2237 = vrot.lane.b32.xlu0 %v7766_v24, %s7339_s30 }
 0x982   : > { %v2043_v25 = vpop.permute.xlu0 %2042  ;;  %v2244_v27 = vpop.permute.xlu1 %2243 }
 0x983   : > { %6898 = vmatprep.subr.msk.mxu1 %vm2044_vm5, %v2043_v25 }
 0x984   : > { %6899 = vmatpush3.xpose.msk.msra.mxu1 %vm2044_vm5, %v2043_v25 }
 0x986   : > { %v2041_v28 = vpop.permute.xlu0 %2040  ;;  %v2242_v32 = vpop.permute.xlu1 %2241 }
 0x987   : > { %6900 = vmatprep.subr.msk.mxu1 %vm2044_vm5, %v2041_v28 }
 0x988   : > { %6901 = vmatpush3.xpose.msk.msra.mxu1 %vm2044_vm5, %v2041_v28 }
 0x989   : > { %6912 = vmatprep.subr.msk.mxu1 %vm2044_vm5, %v2244_v27 }
 0x98a   : > { %v2238_v30 = vpop.permute.xlu0 %2237  ;;  %v2240_v34 = vpop.permute.xlu1 %2239 }
 0x98b   : > { %6903 = vmatmul.mubr.msk.f32.vlgmr.msra.gmra.mxu1 %vm2044_vm5, %v7764_v22 }
 0x98c   : > { %6913 = vmatpush3.xpose.msk.msra.mxu1 %vm2044_vm5, %v2244_v27  ;;  %6916 = vmatprep.mubr.msk.f32.mxu1 %vm2044_vm5, %v2238_v30 }
 0x98d   : > { %6914 = vmatprep.subr.msk.mxu1 %vm2044_vm5, %v2242_v32 }
 0x990   : > { %6915 = vmatpush3.xpose.msk.msra.mxu1 %vm2044_vm5, %v2242_v32 }
 0x991   : > { %6931 = vmatprep.subr.mxu1 %v2033_v13 }
 0x993   : > { %6917 = vmatmul.mubr.msk.f32.vlgmr.msra.gmra.mxu1 %vm2044_vm5, %v2240_v34 }
 0x994   : > { %6932 = vmatpush3.msra.mxu1 %v2033_v13 }
 0xa4b   : > { %v6904_v36 = vpop.f32.mrf.mxu1 }
 0xa4c   : > { %v2131_v40 = vsel %vm500_vm3, %v6904_v36, -inf }
 0xa4d   : > { %2132 = vmax.xlane.f32.xlu1 %v2131_v40  ;;  %v2119_v41 = vpop.f32.mrf.mxu1 }
 0xa4e   : > { %v2128_v42 = vsel %vm500_vm3, %v2119_v41, -inf }
 0xa4f   : > { %2129 = vmax.xlane.f32.xlu0 %v2128_v42 }
 0xa53   : > { %v6918_v43 = vpop.f32.mrf.mxu1 }
 0xa54   : > { %v2331_v46 = vsel %vm500_vm3, %v6918_v43, -inf }
 0xa55   : > { %v2319_v44 = vpop.f32.mrf.mxu1 }
 0xa56   : > { %v2328_v45 = vsel %vm500_vm3, %v2319_v44, -inf }
 0xa57   : > { %2329 = vmax.xlane.f32.xlu0 %v2328_v45 }
 0xa5b   : > { %2332 = vmax.xlane.f32.xlu0 %v2331_v46 }
 0xa5e   : > { %2152 = vrot.lane.b32.xlu1 %v7764_v22, %s7340_s4 }
 0xad6   : > { %v2133_v47 = vpop.xlane.xlu1 %2132 }
 0xad7   : > { %v2135_v48 = vsub.f32 %v6904_v36, %v2133_v47 }
 0xad8   : > { %v2130_v49 = vpop.xlane.xlu0 %2129 }
 0xad9   : > { %v2138_v50 = vmul.f32 1.442695, %v2135_v48  ;;  %v2134_v51 = vsub.f32 %v2119_v41, %v2130_v49 }
 0xada   : > { %v2153_v52 = vpop.permute.xlu1 %2152 }
 0xadb   : > { %7247 = vpow2.f32 %v2138_v50  ;;  %v2136_v53 = vmul.f32 1.442695, %v2134_v51  ;;  %6905 = vmatprep.subr.mxu0 %v2153_v52 }
 0xadc   : > { %6906 = vmatpush3.msra.mxu0 %v2153_v52 }
 0xadd   : > { %7249 = vpow2.f32 %v2136_v53 }
 0xae0   : > { %v2330_v54 = vpop.xlane.xlu0 %2329 }
 0xae1   : > { %v2334_v57 = vsub.f32 %v2319_v44, %v2330_v54 }
 0xae3   : > { %v2336_v39 = vmul.f32 1.442695, %v2334_v57 }
 0xae4   : > { %v2333_v55 = vpop.xlane.xlu0 %2332 }
 0xae5   : > { %v2335_v56 = vsub.f32 %v6918_v43, %v2333_v55 }
 0xae7   : > { %v2338_v26 = vmul.f32 1.442695, %v2335_v56 }
 0xae8   : > { %v7248_v29 = vpop.eup %7247 }
 0xae9   : > { %7251 = vpow2.f32 %v2338_v26  ;;  %v2143_v31 = vsel %vm500_vm3, %v7248_v29, 0.0 }
 0xaea   : > { %v7250_v33 = vpop.eup %7249  ;;  %2144 = vadd.xlane.f32.xlu0 %v2143_v31  ;;  %7253 = vpow2.f32 %v2336_v39 }
 0xaeb   : > { %v2140_v35 = vsel %vm500_vm3, %v7250_v33, 0.0 }
 0xaec   : > { %2141 = vadd.xlane.f32.xlu1 %v2140_v35 }
 0xaf6   : > { %v7252_v37 = vpop.eup %7251 }
 0xaf7   : > { %v2343_v38 = vsel %vm500_vm3, %v7252_v37, 0.0  ;;  %v7254_v58 = vpop.eup %7253 }
 0xaf8   : > { %2344 = vadd.xlane.f32.xlu0 %v2343_v38  ;;  %v2340_v59 = vsel %vm500_vm3, %v7254_v58, 0.0 }
 0xafd   : > { %2352 = vrot.lane.b32.xlu1 %v7764_v22, %s7341_s5 }
 0xb0e   : > { %2150 = vrot.lane.b32.xlu0 %v7766_v24, %s7340_s4 }
 0xb12   : > { %2605 = vrot.lane.b32.xlu0 %v7764_v22, %s7342_s6 }
 0xb16   : > { %2599 = vrot.lane.b32.xlu0 %v7766_v24, %s7343_s7 }
 0xb1a   : > { %2888 = vrot.lane.b32.xlu0 %v7764_v22, %s7344_s8 }
 0xb1e   : > { %2882 = vrot.lane.b32.xlu0 %v7766_v24, %s7345_s9 }
 0xb21   : > { %2341 = vadd.xlane.f32.xlu1 %v2340_v59 }
 0xb32   : > { %2350 = vrot.lane.b32.xlu1 %v7766_v24, %s7341_s5 }
 0xb36   : > { %2603 = vrot.lane.b32.xlu1 %v7766_v24, %s7342_s6 }
 0xb3a   : > { %2601 = vrot.lane.b32.xlu1 %v7764_v22, %s7343_s7 }
 0xb3e   : > { %2886 = vrot.lane.b32.xlu1 %v7766_v24, %s7344_s8 }
 0xb42   : > { %2884 = vrot.lane.b32.xlu1 %v7764_v22, %s7345_s9 }
 0xb73   : > { %v2145_v60 = vpop.xlane.xlu0 %2144 }
 0xb74   : > { %7255 = vrcp.f32 %v2145_v60  ;;  %v2035_v60 = vld [vmem:[%s8413_s1 + $0x198] sm:$0xff] }
 0xb75   : > { %v2142_v61 = vpop.xlane.xlu1 %2141 }
 0xb76   : > { %7257 = vrcp.f32 %v2142_v61 }
 0xb79   : > { %v2353_v4 = vpop.permute.xlu1 %2352 }
 0xb81   : > { %v2345_v62 = vpop.xlane.xlu0 %2344  ;;  %v7256_v63 = vpop.eup %7255 }
 0xb82   : > { %v2149_v3 = vmul.f32 %v7256_v63, %v7248_v29  ;;  %7259 = vrcp.f32 %v2345_v62 }
 0xb83   : > { %v7258_v0 = vpop.eup %7257 }
 0xb84   : > { %v2148_v1 = vmul.f32 %v7258_v0, %v7250_v33 }
 0xb85   : > { %v2151_v2 = vpop.permute.xlu0 %2150 }
 0xb86   : > { %6907 = vmatprep.subr.mxu0 %v2151_v2  ;;  %6909 = vmatprep.mubr.msk.f32.mxu0 %vm500_vm3, %v2148_v1 }
 0xb87   : > { %6908 = vmatpush3.msra.mxu0 %v2151_v2 }
 0xb88   : > { %6910 = vmatmul.mubr.msk.f32.vlgmr.msra.gmra.mxu0 %vm500_vm3, %v2149_v3  ;;  %6919 = vmatprep.subr.mxu0 %v2353_v4 }
 0xb89   : > { %6920 = vmatpush3.msra.mxu0 %v2353_v4  ;;  %v2606_v12 = vpop.permute.xlu0 %2605 }
 0xb8d   : > { %v2600_v16 = vpop.permute.xlu0 %2599 }
 0xb8f   : > { %v7260_v8 = vpop.eup %7259 }
 0xb90   : > { %v2349_v11 = vmul.f32 %v7260_v8, %v7252_v37 }
 0xb91   : > { %v2889_v23 = vpop.permute.xlu0 %2888 }
 0xb95   : > { %v2883_v27 = vpop.permute.xlu0 %2882 }
 0xbaa   : > { %v2342_v5 = vpop.xlane.xlu1 %2341 }
 0xbab   : > { %7261 = vrcp.f32 %v2342_v5 }
 0xbae   : > { %v2351_v6 = vpop.permute.xlu1 %2350 }
 0xbaf   : > { %6921 = vmatprep.subr.mxu0 %v2351_v6 }
 0xbb0   : > { %6922 = vmatpush3.msra.mxu0 %v2351_v6 }
 0xbb1   : > { %6926 = vmatprep.subr.mxu0 %v2034_v7 }
 0xbb2   : > { %v2604_v20 = vpop.permute.xlu1 %2603 }
 0xbb6   : > { %v2602_v25 = vpop.permute.xlu1 %2601 }
 0xbb8   : > { %v7262_v9 = vpop.eup %7261 }
 0xbb9   : > { %v2348_v10 = vmul.f32 %v7262_v9, %v7254_v58 }
 0xbba   : > { %v2887_v28 = vpop.permute.xlu1 %2886 }
 0xbbb   : > { %6923 = vmatprep.mubr.msk.f32.mxu0 %vm500_vm3, %v2348_v10 }
 0xbbc   : > { %6924 = vmatmul.mubr.msk.f32.vlgmr.msra.gmra.mxu0 %vm500_vm3, %v2349_v11 }
 0xbbd   : > { %6927 = vmatpush3.msra.mxu0 %v2034_v7 }
 0xbbe   : > { %6936 = vmatprep.subr.msk.mxu0 %vm2044_vm5, %v2606_v12  ;;  %v2885_v30 = vpop.permute.xlu1 %2884 }
 0xc48   : > { %v6911_v14 = vpop.f32.mrf.mxu0 }
 0xc4a   : > { %v2228_v15 = vpop.f32.mrf.mxu0 }
 0xc4b   : > { %6933 = vmatprep.mubr.msk.f32.mxu1 %vm2044_vm5, %v2228_v15  ;;  %v2036_v15 = vld [vmem:[%s8413_s1 + $0x1a0] sm:$0xff] }
 0xc4c   : > { %6934 = vmatmul.mubr.msk.f32.vlgmr.msra.gmra.mxu1 %vm2044_vm5, %v6911_v14 }
 0xc7c   : > { %v6925_v17 = vpop.f32.mrf.mxu0 }
 0xc7e   : > { %v2428_v21 = vpop.f32.mrf.mxu0 }
 0xc7f   : > { %6928 = vmatprep.mubr.msk.f32.mxu0 %vm2044_vm5, %v2428_v21 }
 0xc80   : > { %6929 = vmatmul.mubr.msk.f32.vlgmr.msra.gmra.mxu0 %vm2044_vm5, %v6925_v17 }
 0xc81   : > { %6937 = vmatpush3.xpose.msk.msra.mxu0 %vm2044_vm5, %v2606_v12  ;;  %6940 = vmatprep.mubr.msk.f32.mxu0 %vm2044_vm5, %v2600_v16 }
 0xc82   : > { %6938 = vmatprep.subr.msk.mxu0 %vm2044_vm5, %v2604_v20 }
 0xc85   : > { %6939 = vmatpush3.xpose.msk.msra.mxu0 %vm2044_vm5, %v2604_v20 }
 0xc86   : > { %6955 = vmatprep.subr.msk.mxu0 %vm2044_vm5, %v2889_v23 }
 0xc88   : > { %6941 = vmatmul.mubr.msk.f32.vlgmr.msra.gmra.mxu0 %vm2044_vm5, %v2602_v25 }
 0xc89   : > { %6956 = vmatpush3.xpose.msk.msra.mxu0 %vm2044_vm5, %v2889_v23  ;;  %6959 = vmatprep.mubr.msk.f32.mxu0 %vm2044_vm5, %v2883_v27 }
 0xc8a   : > { %6957 = vmatprep.subr.msk.mxu0 %vm2044_vm5, %v2887_v28 }
 0xc8d   : > { %6958 = vmatpush3.xpose.msk.msra.mxu0 %vm2044_vm5, %v2887_v28  ;;  %v6239_v28 = vld [vmem:[%s8414_s2 + $0x1c] ss:$0 sm:$0xff] }
 0xc90   : > { %6960 = vmatmul.mubr.msk.f32.vlgmr.msra.gmra.mxu0 %vm2044_vm5, %v2885_v30 }
 0xd0c   : > { %v6935_v32 = vpop.f32.mrf.mxu1 }
 0xd0e   : > { %v2590_v7 = vpop.f32.mrf.mxu1 }
 0xd40   : > { %v6930_v34 = vpop.f32.mrf.mxu0 }
 0xd41   : > { %v7852_v36 = vadd.f32 %v6935_v32, %v6930_v34 }
 0xd42   : > { %v7854_v40 = vpop.f32.mrf.mxu0 }
 0xd43   : > { %v2591_v17 = vadd.f32 %v2590_v7, %v7854_v40 }
 0xd48   : > { %v6942_v41 = vpop.f32.mrf.mxu0 }
 0xd49   : > { %v2693_v42 = vsel %vm500_vm3, %v6942_v41, -inf }
 0xd4a   : > { %2694 = vmax.xlane.f32.xlu1 %v2693_v42  ;;  %v2681_v43 = vpop.f32.mrf.mxu0 }
 0xd4b   : > { %v2690_v44 = vsel %vm500_vm3, %v2681_v43, -inf }
 0xd4c   : > { %2691 = vmax.xlane.f32.xlu0 %v2690_v44 }
 0xd50   : > { %v6961_v45 = vpop.f32.mrf.mxu0 }
 0xd51   : > { %v2976_v57 = vsel %vm500_vm3, %v6961_v45, -inf }
 0xd52   : > { %v2964_v46 = vpop.f32.mrf.mxu0 }
 0xd53   : > { %v2973_v47 = vsel %vm500_vm3, %v2964_v46, -inf }
 0xd5b   : > { %2714 = vrot.lane.b32.xlu1 %v7764_v22, %s7346_s16 }
 0xd7f   : > { %2974 = vmax.xlane.f32.xlu1 %v2973_v47 }
 0xdd3   : > { %v2695_v48 = vpop.xlane.xlu1 %2694 }
 0xdd4   : > { %v2697_v49 = vsub.f32 %v6942_v41, %v2695_v48 }
 0xdd5   : > { %v2692_v50 = vpop.xlane.xlu0 %2691 }
 0xdd6   : > { %v2700_v51 = vmul.f32 1.442695, %v2697_v49  ;;  %v2696_v52 = vsub.f32 %v2681_v43, %v2692_v50  ;;  %v3219_v50 = vld [vmem:[%s8413_s1 + $0x1b0] sm:$0xff] }
 0xdd7   : > { %v2715_v53 = vpop.permute.xlu1 %2714 }
 0xdd8   : > { %7263 = vpow2.f32 %v2700_v51  ;;  %v2698_v54 = vmul.f32 1.442695, %v2696_v52  ;;  %6943 = vmatprep.subr.mxu1 %v2715_v53  ;;  %v3218_v51 = vld [vmem:[%s8413_s1 + $0x1a8] sm:$0xff]  ;;  %v7348_v52 = vmov 0.0  }
 0xdd9   : > { %6944 = vmatpush3.msra.mxu1 %v2715_v53  ;;  %v3317_v53 = vld [vmem:[%s8413_s1 + $0x200] sm:$0xff] }
 0xdda   : > { %7265 = vpow2.f32 %v2698_v54  ;;  %v3316_v54 = vld [vmem:[%s8413_s1 + $0x1f8] sm:$0xff] }
 0xde5   : > { %v7264_v55 = vpop.eup %7263 }
 0xde6   : > { %v2705_v56 = vsel %vm500_vm3, %v7264_v55, 0.0 }
 0xde7   : > { %v7266_v26 = vpop.eup %7265  ;;  %2706 = vadd.xlane.f32.xlu0 %v2705_v56  ;;  %v3314_v56 = vld [vmem:[%s8413_s1 + $0x1e8] sm:$0xff] }
 0xde8   : > { %v2702_v29 = vsel %vm500_vm3, %v7266_v26, 0.0 }
 0xdeb   : > { %2703 = vadd.xlane.f32.xlu0 %v2702_v29 }
 0xe01   : > { %2712 = vrot.lane.b32.xlu0 %v7766_v24, %s7346_s16 }
 0xe08   : > { %v2975_v31 = vpop.xlane.xlu1 %2974 }
 0xe09   : > { %v2979_v33 = vsub.f32 %v2964_v46, %v2975_v31 }
 0xe0b   : > { %v2981_v35 = vmul.f32 1.442695, %v2979_v33 }
 0xe0d   : > { %7267 = vpow2.f32 %v2981_v35 }
 0xe1a   : > { %v7268_v37 = vpop.eup %7267 }
 0xe1b   : > { %v2985_v38 = vsel %vm500_vm3, %v7268_v37, 0.0 }
 0xe1c   : > { %2986 = vadd.xlane.f32.xlu1 %v2985_v38 }
 0xe20   : > { %2977 = vmax.xlane.f32.xlu0 %v2976_v57 }
 0xe2d   : > { %2997 = vrot.lane.b32.xlu1 %v7764_v22, %s7347_s17 }
 0xe70   : > { %v2707_v39 = vpop.xlane.xlu0 %2706 }
 0xe71   : > { %7269 = vrcp.f32 %v2707_v39 }
 0xe74   : > { %v2704_v58 = vpop.xlane.xlu0 %2703 }
 0xe75   : > { %7271 = vrcp.f32 %v2704_v58 }
 0xe78   : > { %v2713_v59 = vpop.permute.xlu0 %2712 }
 0xe79   : > { %6945 = vmatprep.subr.mxu1 %v2713_v59 }
 0xe7a   : > { %6946 = vmatpush3.msra.mxu1 %v2713_v59 }
 0xe7b   : > { %6950 = vmatprep.subr.mxu1 %v2035_v60 }
 0xe7e   : > { %v7270_v61 = vpop.eup %7269 }
 0xe7f   : > { %v2711_v0 = vmul.f32 %v7270_v61, %v7264_v55  ;;  %v3315_v55 = vld [vmem:[%s8413_s1 + $0x1f0] sm:$0xff] }
 0xe82   : > { %v7272_v62 = vpop.eup %7271 }
 0xe83   : > { %v2710_v63 = vmul.f32 %v7272_v62, %v7266_v26 }
 0xe85   : > { %6947 = vmatprep.mubr.msk.f32.mxu1 %vm500_vm3, %v2710_v63 }
 0xe86   : > { %6948 = vmatmul.mubr.msk.f32.vlgmr.msra.gmra.mxu1 %vm500_vm3, %v2711_v0 }
 0xe87   : > { %6951 = vmatpush3.msra.mxu1 %v2035_v60 }
 0xea5   : > { %v2987_v22 = vpop.xlane.xlu1 %2986 }
 0xea9   : > { %v2998_v1 = vpop.permute.xlu1 %2997  ;;  %v2978_v2 = vpop.xlane.xlu0 %2977 }
 0xeaa   : > { %v2980_v3 = vsub.f32 %v6961_v45, %v2978_v2  ;;  %6962 = vmatprep.subr.mxu1 %v2998_v1 }
 0xeac   : > { %v2983_v4 = vmul.f32 1.442695, %v2980_v3 }
 0xeae   : > { %7273 = vpow2.f32 %v2983_v4 }
 0xeaf   : > { %7275 = vrcp.f32 %v2987_v22 }
 0xebb   : > { %v7274_v5 = vpop.eup %7273 }
 0xebc   : > { %v2988_v6 = vsel %vm500_vm3, %v7274_v5, 0.0  ;;  %v7276_v8 = vpop.eup %7275 }
 0xebd   : > { %2989 = vadd.xlane.f32.xlu0 %v2988_v6  ;;  %v2993_v12 = vmul.f32 %v7276_v8, %v7268_v37  ;;  %v6241_v6 = vld [vmem:[%s8414_s2 + $0x1e] ss:$0 sm:$0xff] }
 0xed3   : > { %2995 = vrot.lane.b32.xlu0 %v7766_v24, %s7347_s17 }
 0xf46   : > { %v6949_v9 = vpop.f32.mrf.mxu1  ;;  %v2990_v10 = vpop.xlane.xlu0 %2989 }
 0xf47   : > { %7277 = vrcp.f32 %v2990_v10  ;;  %v3456_v10 = vld [vmem:[%s8413_s1 + $0x220] sm:$0xff] }
 0xf48   : > { %v2790_v11 = vpop.f32.mrf.mxu1 }
 0xf49   : > { %6952 = vmatprep.mubr.msk.f32.mxu1 %vm2044_vm5, %v2790_v11  ;;  %v3455_v11 = vld [vmem:[%s8413_s1 + $0x218] sm:$0xff] }
 0xf4a   : > { %6953 = vmatmul.mubr.msk.f32.vlgmr.msra.gmra.mxu1 %vm2044_vm5, %v6949_v9  ;;  %v2996_v13 = vpop.permute.xlu0 %2995 }
 0xf4b   : > { %6963 = vmatpush3.msra.mxu1 %v2998_v1  ;;  %6966 = vmatprep.mubr.msk.f32.mxu1 %vm500_vm3, %v2993_v12  ;;  %v6240_v1 = vld [vmem:[%s8414_s2 + $0x1d] ss:$0 sm:$0xff]  ;;  %v3454_v12 = vld [vmem:[%s8413_s1 + $0x210] sm:$0xff] }
 0xf4c   : > { %6964 = vmatprep.subr.mxu1 %v2996_v13 }
 0xf4d   : > { %6965 = vmatpush3.msra.mxu1 %v2996_v13  ;;  %v3453_v13 = vld [vmem:[%s8413_s1 + $0x208] sm:$0xff] }
 0xf4e   : > { %6969 = vmatprep.subr.mxu1 %v2036_v15 }
 0xf54   : > { %v7278_v14 = vpop.eup %7277 }
 0xf55   : > { %v2994_v24 = vmul.f32 %v7278_v14, %v7274_v5  ;;  %v7955_v14 = vld [vmem:[%s8414_s2 + $0x10] sm:$0xff] }
 0xf57   : > { %6967 = vmatmul.mubr.msk.f32.vlgmr.msra.gmra.mxu1 %vm500_vm3, %v2994_v24  ;;  %v3313_v24 = vld [vmem:[%s8413_s1 + $0x1e0] sm:$0xff] }
 0xf58   : > { %6970 = vmatpush3.msra.mxu1 %v2036_v15  ;;  %v3312_v15 = vld [vmem:[%s8413_s1 + $0x1d8] sm:$0xff] }
 0xf59   : > { %6985 = vmatprep.subr.mxu1 %v3317_v53 }
0x100a   : > { %v6954_v16 = vpop.f32.mrf.mxu1 }
0x100b   : > { %v2881_v20 = vadd.f32 %v6954_v16, %v7852_v36  ;;  %v3311_v16 = vld [vmem:[%s8413_s1 + $0x1d0] sm:$0xff] }
0x100c   : > { %v2871_v21 = vpop.f32.mrf.mxu1 }
0x100d   : > { %v2880_v23 = vadd.f32 %v2871_v21, %v2591_v17  ;;  %v3310_v17 = vld [vmem:[%s8413_s1 + $0x1c8] sm:$0xff] }
0x1017   : > { %v6968_v25 = vpop.f32.mrf.mxu1 }
0x1019   : > { %v3073_v27 = vpop.f32.mrf.mxu1 }
0x101a   : > { %6971 = vmatprep.mubr.msk.f32.mxu1 %vm2044_vm5, %v3073_v27 }
0x101b   : > { %6972 = vmatmul.mubr.msk.f32.vlgmr.msra.gmra.mxu1 %vm2044_vm5, %v6968_v25 }
0x101c   : > { %6986 = vmatpush3.msra.mxu1 %v3317_v53 }
0x101d   : > { %6987 = vmatprep.subr.mxu1 %v3316_v54 }
0x101e   : > { %6988 = vmatpush3.msra.mxu1 %v3316_v54 }
0x101f   : > { %6989 = vmatprep.subr.mxu1 %v3315_v55 }
0x1020   : > { %6990 = vmatpush3.msra.mxu1 %v3315_v55 }
0x1021   : > { %6991 = vmatprep.subr.mxu1 %v3314_v56 }
0x1022   : > { %6992 = vmatpush3.msra.mxu1 %v3314_v56 }
0x1023   : > { %6993 = vmatprep.subr.mxu1 %v3313_v24 }
0x1024   : > { %6994 = vmatpush3.msra.mxu1 %v3313_v24 }
0x1025   : > { %6995 = vmatprep.subr.mxu1 %v3312_v15 }
0x1026   : > { %6996 = vmatpush3.msra.mxu1 %v3312_v15 }
0x1027   : > { %6997 = vmatprep.subr.mxu1 %v3311_v16 }
0x1028   : > { %6998 = vmatpush3.msra.mxu1 %v3311_v16 }
0x1029   : > { %6999 = vmatprep.subr.mxu1 %v3310_v17 }
0x102a   : > { %7000 = vmatpush3.msra.mxu1 %v3310_v17 }
0x102b   : > { %7020 = vmatprep.subr.mxu1 %v7348_v52 }
0x10db   : > { %v6973_v30 = vpop.f32.mrf.mxu1 }
0x10dc   : > { %v3164_v32 = vadd.f32 %v6973_v30, %v2881_v20  ;;  %v6242_v20 = vld [vmem:[%s8414_s2 + $0x1f] ss:$0 sm:$0xff] }
0x10dd   : > { %v3154_v34 = vpop.f32.mrf.mxu1 }
0x10de   : > { %v3170_v41 = vadd.f32 %v6239_v28, %v3164_v32  ;;  %v3163_v42 = vadd.f32 %v3154_v34, %v2880_v23  ;;  %v6250_v32 = vld [vmem:[%s8414_s2 + $0x23] ss:$0 sm:$0xff] }
0x10e0   : > { %v3172_v40 = vadd.f32 %v3170_v41, %v7755_v19  ;;  %v3169_v36 = vadd.f32 %v6239_v28, %v3163_v42  ;;  %v3221_v19 = vld [vmem:[%s8413_s1 + $0x1c0] sm:$0xff] }
0x10e1   : > { %6974 = vmatprep.subr.mxu0 %v3221_v19 }
0x10e2   : > { %v3171_v43 = vadd.f32 %v3169_v36, %v7753_v18  ;;  %v3178_v44 = vsel %vm1857_vm4, %v3172_v40, 0.0  ;;  %v3185_v45 = vmul.f32 %v3172_v40, %v3172_v40  ;;  %v3220_v18 = vld [vmem:[%s8413_s1 + $0x1b8] sm:$0xff]  ;;  %6975 = vmatpush3.msra.mxu0 %v3221_v19 }
0x10e3   : > { %3179 = vadd.xlane.f32.xlu0 %v3178_v44  ;;  %6976 = vmatprep.subr.mxu0 %v3220_v18 }
0x10e4   : > { %v3175_v46 = vsel %vm1857_vm4, %v3171_v43, 0.0  ;;  %v3184_v47 = vmul.f32 %v3171_v43, %v3171_v43  ;;  %v3189_v48 = vsel %vm1857_vm4, %v3185_v45, 0.0  ;;  %6977 = vmatpush3.msra.mxu0 %v3220_v18 }
0x10e5   : > { %3176 = vadd.xlane.f32.xlu1 %v3175_v46  ;;  %6978 = vmatprep.subr.mxu0 %v3219_v50 }
0x10e6   : > { %v3186_v49 = vsel %vm1857_vm4, %v3184_v47, 0.0  ;;  %6979 = vmatpush3.msra.mxu0 %v3219_v50 }
0x10e7   : > { %3190 = vadd.xlane.f32.xlu0 %v3189_v48  ;;  %6980 = vmatprep.subr.mxu0 %v3218_v51 }
0x10e8   : > { %6981 = vmatpush3.msra.mxu0 %v3218_v51 }
0x10e9   : > { %3187 = vadd.xlane.f32.xlu1 %v3186_v49  ;;  %7004 = vmatprep.subr.mxu0 %v7348_v52 }
0x116c   : > { %v3180_v26 = vpop.xlane.xlu0 %3179 }
0x116d   : > { %v3183_v29 = vmul.f32 0.03125, %v3180_v26 }
0x116e   : > { %v3177_v31 = vpop.xlane.xlu1 %3176 }
0x116f   : > { %v3182_v33 = vmul.f32 0.03125, %v3177_v31  ;;  %v3195_v37 = vmul.f32 %v3183_v29, %v3183_v29  ;;  %v3199_v63 = vsub.f32 %v3172_v40, %v3183_v29 }
0x1170   : > { %v3191_v35 = vpop.xlane.xlu0 %3190 }
0x1171   : > { %v3193_v38 = vmul.f32 0.03125, %v3191_v35  ;;  %v3194_v39 = vmul.f32 %v3182_v33, %v3182_v33  ;;  %v3198_v22 = vsub.f32 %v3171_v43, %v3182_v33 }
0x1172   : > { %v3188_v57 = vpop.xlane.xlu1 %3187 }
0x1173   : > { %v3197_v58 = vsub.f32 %v3193_v38, %v3195_v37  ;;  %v3192_v59 = vmul.f32 0.03125, %v3188_v57 }
0x1175   : > { %v3201_v60 = vadd.f32 1e-05, %v3197_v58  ;;  %v3196_v61 = vsub.f32 %v3192_v59, %v3194_v39  ;;  %v3535_v59 = vld [vmem:[%s8413_s1 + $0x228] sm:$0xff] }
0x1177   : > { %7279 = vrsqrt.f32 %v3201_v60  ;;  %v3200_v62 = vadd.f32 1e-05, %v3196_v61  ;;  %v3536_v60 = vld [vmem:[%s8413_s1 + $0x230] sm:$0xff] }
0x1179   : > { %7281 = vrsqrt.f32 %v3200_v62 }
0x1184   : > { %v7280_v0 = vpop.eup %7279 }
0x1185   : > { %v3205_v2 = vmul.f32 %v7280_v0, %v3199_v63 }
0x1186   : > { %v7282_v3 = vpop.eup %7281 }
0x1187   : > { %v3204_v4 = vmul.f32 %v7282_v3, %v3198_v22  ;;  %v3211_v5 = vmul.f32 %v6240_v1, %v3205_v2 }
0x1189   : > { %v3210_v7 = vmul.f32 %v6240_v1, %v3204_v4  ;;  %v7930_v9 = vadd.f32 %v6241_v6, %v3211_v5 }
0x118b   : > { %v7928_v8 = vadd.f32 %v6241_v6, %v3210_v7 }
0x118d   : > { %6982 = vmatprep.mubr.msk.f32.mxu0 %vm1857_vm4, %v7928_v8 }
0x118e   : > { %6983 = vmatmul.mubr.msk.f32.vlgmr.msra.gmra.mxu0 %vm1857_vm4, %v7930_v9 }
0x118f   : > { %7005 = vmatpush3.msra.mxu0 %v3456_v10  ;;  %7012 = vmatprep.mubr.msk.f32.mxu0 %vm7349_vm6, %v7348_v52 }
0x1190   : > { %7006 = vmatprep.subr.mxu0 %v7348_v52 }
0x1191   : > { %7007 = vmatpush3.msra.mxu0 %v3455_v11 }
0x1192   : > { %7008 = vmatprep.subr.mxu0 %v7348_v52 }
0x1193   : > { %7009 = vmatpush3.msra.mxu0 %v3454_v12 }
0x1194   : > { %7010 = vmatprep.subr.mxu0 %v7348_v52 }
0x1195   : > { %7011 = vmatpush3.msra.mxu0 %v3453_v13 }
0x1196   : > { %7013 = vmatmul.mubr.msk.f32.vlgmr.msra.gmra.mxu0 %vm1857_vm4, %v7955_v14  ;;  %7015 = vmatprep.subr.mxu0 %v7348_v52 }
0x1197   : > { %7017 = vmatprep.mubr.msk.f32.mxu0 %vm7349_vm6, %v7348_v52 }
0x124e   : > { %v6984_v21 = vpop.f32.mrf.mxu0 }
0x124f   : > { %v3305_v23 = vadd.f32 %v6984_v21, %v6242_v20 }
0x1250   : > { %v3299_v25 = vpop.f32.mrf.mxu0 }
0x1251   : > { %v3300_v27 = vadd.f32 %v6242_v20, %v3299_v25  ;;  %v3309_v30 = vmax.f32 %v3305_v23, 0.0 }
0x1253   : > { %v3308_v28 = vmax.f32 %v3300_v27, 0.0 }
0x1255   : > { %7001 = vmatprep.mubr.msk.f32.mxu1 %vm331_vm2, %v3308_v28 }
0x1256   : > { %v3531_v34 = vpop.f32.mrf.mxu0  ;;  %7002 = vmatmul.mubr.msk.f32.vlgmr.msra.gmra.mxu1 %vm331_vm2, %v3309_v30 }
0x1257   : > { %v7984_v41 = vadd.f32 %v6250_v32, %v3531_v34  ;;  %7022 = vmatprep.mubr.msk.f32.mxu1 %vm7349_vm6, %v7348_v52  ;;  %v3537_v32 = vld [vmem:[%s8413_s1 + $0x238] sm:$0xff] }
0x1258   : > { %v7014_v42 = vpop.f32.mrf.mxu0 }
0x1259   : > { %3706 = vrot.lane.b32.xlu0 %v7984_v41, %s7337_s28  ;;  %3541 = vrot.lane.b32.xlu1 %v7984_v41, %s7338_s29 }
0x125d   : > { %3704 = vrot.lane.b32.xlu1 %v7984_v41, %s7339_s30 }
0x12cb   : > { %v3542_v40 = vpop.permute.xlu1 %3541  ;;  %v3707_v36 = vpop.permute.xlu0 %3706 }
0x12cc   : > { %7016 = vmatpush3.xpose.msk.msra.mxu0 %vm2044_vm5, %v3542_v40 }
0x12cd   : > { %7025 = vmatprep.subr.mxu0 %v7348_v52 }
0x12cf   : > { %7018 = vmatmul.mubr.msk.f32.vlgmr.msra.gmra.mxu0 %vm2044_vm5, %v7984_v41  ;;  %v3705_v43 = vpop.permute.xlu1 %3704 }
0x12d0   : > { %7026 = vmatpush3.xpose.msk.msra.mxu0 %vm2044_vm5, %v3707_v36  ;;  %7027 = vmatprep.mubr.msk.f32.mxu0 %vm7349_vm6, %v7348_v52 }
0x12d1   : > { %7035 = vmatprep.subr.mxu0 %v7348_v52 }
0x12d3   : > { %7028 = vmatmul.mubr.msk.f32.vlgmr.msra.gmra.mxu0 %vm2044_vm5, %v3705_v43 }
0x12d4   : > { %7037 = vmatprep.mubr.msk.f32.mxu0 %vm7349_vm6, %v7348_v52  ;;  %7036 = vmatpush3.msra.mxu0 %v3536_v60 }
0x12d5   : > { %7045 = vmatprep.subr.mxu0 %v7348_v52 }
0x1316   : > { %v8033_v61 = vpop.f32.mrf.mxu1 }
0x1318   : > { %v8035_v62 = vpop.f32.mrf.mxu1 }
0x138f   : > { %v3613_v44 = vpop.f32.mrf.mxu0 }
0x1390   : > { %v3617_v45 = vsel %vm2044_vm5, %v3613_v44, -inf }
0x1391   : > { %3618 = vmax.xlane.f32.xlu1 %v3617_v45  ;;  %v7019_v46 = vpop.f32.mrf.mxu0 }
0x1393   : > { %v3778_v47 = vpop.f32.mrf.mxu0 }
0x1394   : > { %v3782_v48 = vsel %vm2044_vm5, %v3778_v47, -inf }
0x1395   : > { %3783 = vmax.xlane.f32.xlu0 %v3782_v48  ;;  %v7029_v49 = vpop.f32.mrf.mxu0  ;;  %v3399_v48 = vadd.f32 %v8035_v62, %v7928_v8 }
0x141a   : > { %v3619_v19 = vpop.xlane.xlu1 %3618 }
0x141b   : > { %v3620_v18 = vsub.f32 %v3613_v44, %v3619_v19  ;;  %v6247_v19 = vld [vmem:[%s8414_s2 + $0x20] ss:$0 sm:$0xff] }
0x141d   : > { %v3621_v50 = vmul.f32 1.442695, %v3620_v18  ;;  %v3400_v18 = vadd.f32 %v8033_v61, %v7930_v9 }
0x141e   : > { %v3784_v51 = vpop.xlane.xlu0 %3783 }
0x141f   : > { %7283 = vpow2.f32 %v3621_v50  ;;  %v3785_v53 = vsub.f32 %v3778_v47, %v3784_v51  ;;  %v3407_v51 = vadd.f32 %v6247_v19, %v3400_v18 }
0x1421   : > { %v3786_v54 = vmul.f32 1.442695, %v3785_v53 }
0x1423   : > { %7285 = vpow2.f32 %v3786_v54  ;;  %v3413_v54 = vsel %vm1857_vm4, %v3407_v51, 0.0 }
0x142c   : > { %v7284_v55 = vpop.eup %7283 }
0x142d   : > { %v3623_v56 = vsel %vm2044_vm5, %v7284_v55, 0.0 }
0x142e   : > { %3624 = vadd.xlane.f32.xlu0 %v3623_v56  ;;  %v3419_v56 = vmul.f32 %v3407_v51, %v3407_v51 }
0x1430   : > { %v7286_v26 = vpop.eup %7285 }
0x1431   : > { %v3788_v29 = vsel %vm2044_vm5, %v7286_v26, 0.0 }
0x1432   : > { %3789 = vadd.xlane.f32.xlu1 %v3788_v29 }
0x1443   : > { %3793 = vrot.lane.b32.xlu1 %v7984_v41, %s7341_s5  ;;  %s168_s5 = scalar_lea.vmem %s8415_s3, %s6153_s23 }
0x1444   : > { %3628 = vrot.lane.b32.xlu0 %v7984_v41, %s7340_s4 }
0x1447   : > { %4017 = vrot.lane.b32.xlu1 %v7984_v41, %s7342_s6 }
0x1448   : > { %4015 = vrot.lane.b32.xlu0 %v7984_v41, %s7343_s7 }
0x14b7   : > { %v3625_v31 = vpop.xlane.xlu0 %3624 }
0x14b8   : > { %7287 = vrcp.f32 %v3625_v31 }
0x14bb   : > { %v3790_v33 = vpop.xlane.xlu1 %3789  ;;  %v3629_v35 = vpop.permute.xlu0 %3628 }
0x14bc   : > { %7289 = vrcp.f32 %v3790_v33  ;;  %7021 = vmatpush3.msra.mxu1 %v3629_v35  ;;  %v3538_v33 = vld [vmem:[%s8413_s1 + $0x240] sm:$0xff] }
0x14bd   : > { %7030 = vmatprep.subr.mxu1 %v7348_v52 }
0x14bf   : > { %v3794_v57 = vpop.permute.xlu1 %3793  ;;  %v4016_v3 = vpop.permute.xlu0 %4015 }
0x14c3   : > { %v4018_v1 = vpop.permute.xlu1 %4017 }
0x14c5   : > { %v7288_v37 = vpop.eup %7287 }
0x14c6   : > { %v3627_v38 = vmul.f32 %v7288_v37, %v7284_v55 }
0x14c8   : > { %7023 = vmatmul.mubr.msk.f32.vlgmr.msra.gmra.mxu1 %vm2044_vm5, %v3627_v38 }
0x14c9   : > { %v7290_v39 = vpop.eup %7289  ;;  %7031 = vmatpush3.msra.mxu1 %v3794_v57  ;;  %7032 = vmatprep.mubr.msk.f32.mxu1 %vm7349_vm6, %v7348_v52  ;;  %v4611_v57 = vld [vmem:[%s8413_s1 + $0x280] sm:$0xff] }
0x14ca   : > { %v3792_v58 = vmul.f32 %v7290_v39, %v7286_v26  ;;  %7040 = vmatprep.subr.mxu1 %v7348_v52  ;;  %v3423_v26 = vsel %vm1857_vm4, %v3419_v56, 0.0 }
0x14cc   : > { %7033 = vmatmul.mubr.msk.f32.vlgmr.msra.gmra.mxu1 %vm2044_vm5, %v3792_v58 }
0x14cd   : > { %7042 = vmatprep.mubr.msk.f32.mxu1 %vm7349_vm6, %v7348_v52  ;;  %7041 = vmatpush3.msra.mxu1 %v3535_v59 }
0x14ce   : > { %7050 = vmatprep.subr.mxu1 %v7348_v52 }
0x1588   : > { %v3700_v63 = vpop.f32.mrf.mxu1 }
0x1589   : > { %7043 = vmatmul.mubr.msk.f32.vlgmr.msra.gmra.mxu1 %vm2044_vm5, %v3700_v63 }
0x158a   : > { %v7024_v0 = vpop.f32.mrf.mxu1  ;;  %7052 = vmatprep.mubr.msk.f32.mxu1 %vm7349_vm6, %v7348_v52 }
0x158c   : > { %v3865_v22 = vpop.f32.mrf.mxu1 }
0x158d   : > { %7038 = vmatmul.mubr.msk.f32.vlgmr.msra.gmra.mxu0 %vm2044_vm5, %v3865_v22 }
0x158e   : > { %7046 = vmatpush3.xpose.msk.msra.mxu0 %vm2044_vm5, %v4018_v1  ;;  %v7034_v2 = vpop.f32.mrf.mxu1  ;;  %7047 = vmatprep.mubr.msk.f32.mxu0 %vm7349_vm6, %v7348_v52 }
0x158f   : > { %7055 = vmatprep.subr.mxu0 %v7348_v52 }
0x1591   : > { %7048 = vmatmul.mubr.msk.f32.vlgmr.msra.gmra.mxu0 %vm2044_vm5, %v4016_v3 }
0x1592   : > { %7057 = vmatprep.mubr.msk.f32.mxu0 %vm7349_vm6, %v7348_v52  ;;  %7056 = vmatpush3.msra.mxu0 %v3537_v32  ;;  %v6268_v32 = vld [vmem:[%s8414_s2 + $0x24] ss:$0 sm:$0xff] }
0x1593   : > { %7065 = vmatprep.subr.mxu0 %v7348_v52 }
0x1649   : > { %v4011_v4 = vpop.f32.mrf.mxu1 }
0x164b   : > { %v7044_v5 = vpop.f32.mrf.mxu1 }
0x164d   : > { %v3938_v6 = vpop.f32.mrf.mxu0 }
0x164e   : > { %v8048_v7 = vadd.f32 %v4011_v4, %v3938_v6 }
0x164f   : > { %v7039_v10 = vpop.f32.mrf.mxu0 }
0x1651   : > { %v4089_v11 = vpop.f32.mrf.mxu0 }
0x1652   : > { %v4093_v12 = vsel %vm2044_vm5, %v4089_v11, -inf }
0x1653   : > { %4094 = vmax.xlane.f32.xlu1 %v4093_v12  ;;  %v7049_v13 = vpop.f32.mrf.mxu0 }
0x1664   : > { %4256 = vrot.lane.b32.xlu1 %v7984_v41, %s7344_s8 }
0x1668   : > { %4254 = vrot.lane.b32.xlu1 %v7984_v41, %s7345_s9 }
0x16dc   : > { %v4095_v24 = vpop.xlane.xlu1 %4094 }
0x16dd   : > { %v4096_v15 = vsub.f32 %v4089_v11, %v4095_v24  ;;  %v6248_v11 = vld [vmem:[%s8414_s2 + $0x21] ss:$0 sm:$0xff] }
0x16df   : > { %v4097_v16 = vmul.f32 1.442695, %v4096_v15  ;;  %v6249_v15 = vld [vmem:[%s8414_s2 + $0x22] ss:$0 sm:$0xff] }
0x16e0   : > { %v4257_v27 = vpop.permute.xlu1 %4256 }
0x16e1   : > { %7291 = vpow2.f32 %v4097_v16 }
0x16e4   : > { %v4255_v30 = vpop.permute.xlu1 %4254 }
0x16ee   : > { %v7292_v17 = vpop.eup %7291 }
0x16ef   : > { %v4099_v20 = vsel %vm2044_vm5, %v7292_v17, 0.0 }
0x16f0   : > { %4100 = vadd.xlane.f32.xlu0 %v4099_v20  ;;  %v4610_v20 = vld [vmem:[%s8413_s1 + $0x278] sm:$0xff] }
0x1706   : > { %4104 = vrot.lane.b32.xlu0 %v7984_v41, %s7346_s16 }
0x1779   : > { %v4101_v21 = vpop.xlane.xlu0 %4100 }
0x177a   : > { %7293 = vrcp.f32 %v4101_v21 }
0x177d   : > { %v4105_v23 = vpop.permute.xlu0 %4104 }
0x177e   : > { %7051 = vmatpush3.msra.mxu1 %v4105_v23 }
0x177f   : > { %7060 = vmatprep.subr.mxu1 %v7348_v52 }
0x1787   : > { %v7294_v25 = vpop.eup %7293 }
0x1788   : > { %v4103_v28 = vmul.f32 %v7294_v25, %v7292_v17  ;;  %v4609_v25 = vld [vmem:[%s8413_s1 + $0x270] sm:$0xff] }
0x178a   : > { %7053 = vmatmul.mubr.msk.f32.vlgmr.msra.gmra.mxu1 %vm2044_vm5, %v4103_v28  ;;  %v4608_v28 = vld [vmem:[%s8413_s1 + $0x268] sm:$0xff] }
0x178b   : > { %7061 = vmatpush3.xpose.msk.msra.mxu1 %vm2044_vm5, %v4257_v27  ;;  %7062 = vmatprep.mubr.msk.f32.mxu1 %vm7349_vm6, %v7348_v52 }
0x178c   : > { %7070 = vmatprep.subr.mxu1 %v7348_v52 }
0x178e   : > { %7063 = vmatmul.mubr.msk.f32.vlgmr.msra.gmra.mxu1 %vm2044_vm5, %v4255_v30 }
0x178f   : > { %7072 = vmatprep.mubr.msk.f32.mxu1 %vm7349_vm6, %v7348_v52  ;;  %7071 = vmatpush3.msra.mxu1 %v3538_v33  ;;  %v6270_v33 = vld [vmem:[%s8414_s2 + $0x26] ss:$0 sm:$0xff] }
0x1790   : > { %7086 = vmatprep.subr.mxu1 %v4611_v57 }
0x184a   : > { %v4176_v34 = vpop.f32.mrf.mxu1 }
0x184b   : > { %7058 = vmatmul.mubr.msk.f32.vlgmr.msra.gmra.mxu0 %vm2044_vm5, %v4176_v34 }
0x184c   : > { %v7054_v42 = vpop.f32.mrf.mxu1  ;;  %7067 = vmatprep.mubr.msk.f32.mxu0 %vm7349_vm6, %v7348_v52 }
0x184e   : > { %v4328_v40 = vpop.f32.mrf.mxu1 }
0x184f   : > { %v4332_v36 = vsel %vm2044_vm5, %v4328_v40, -inf }
0x1850   : > { %4333 = vmax.xlane.f32.xlu0 %v4332_v36  ;;  %v7064_v43 = vpop.f32.mrf.mxu1 }
0x1866   : > { %4343 = vrot.lane.b32.xlu0 %v7984_v41, %s7347_s17  ;;  %v3406_v41 = vadd.f32 %v6247_v19, %v3399_v48  ;;  %v4528_v48 = vld [vmem:[%s8413_s1 + $0x258] sm:$0xff]  ;;  %v4527_v19 = vld [vmem:[%s8413_s1 + $0x250] sm:$0xff] }
0x1868   : > { %v3410_v53 = vsel %vm1857_vm4, %v3406_v41, 0.0  ;;  %v3418_v55 = vmul.f32 %v3406_v41, %v3406_v41 }
0x186a   : > { %v3420_v8 = vsel %vm1857_vm4, %v3418_v55, 0.0 }
0x18d9   : > { %v4334_v44 = vpop.xlane.xlu0 %4333 }
0x18da   : > { %v4335_v45 = vsub.f32 %v4328_v40, %v4334_v44 }
0x18dc   : > { %v4336_v46 = vmul.f32 1.442695, %v4335_v45 }
0x18dd   : > { %v4344_v47 = vpop.permute.xlu0 %4343 }
0x18de   : > { %7295 = vpow2.f32 %v4336_v46  ;;  %7066 = vmatpush3.msra.mxu0 %v4344_v47  ;;  %v4529_v47 = vld [vmem:[%s8413_s1 + $0x260] sm:$0xff] }
0x18df   : > { %7075 = vmatprep.subr.mxu0 %v7348_v52 }
0x18eb   : > { %v7296_v49 = vpop.eup %7295 }
0x18ec   : > { %v4338_v50 = vsel %vm2044_vm5, %v7296_v49, 0.0 }
0x18ed   : > { %4339 = vadd.xlane.f32.xlu1 %v4338_v50 }
0x18f1   : > { %3411 = vadd.xlane.f32.xlu1 %v3410_v53 }
0x18f5   : > { %3414 = vadd.xlane.f32.xlu1 %v3413_v54 }
0x18f9   : > { %3421 = vadd.xlane.f32.xlu1 %v3420_v8 }
0x18fd   : > { %3424 = vadd.xlane.f32.xlu1 %v3423_v26 }
0x190b   : > { %v4249_v9 = vpop.f32.mrf.mxu0 }
0x190c   : > { %v4253_v29 = vadd.f32 %v4249_v9, %v8048_v7 }
0x190d   : > { %v7059_v31 = vpop.f32.mrf.mxu0 }
0x1976   : > { %v4340_v35 = vpop.xlane.xlu1 %4339 }
0x1977   : > { %7297 = vrcp.f32 %v4340_v35 }
0x197a   : > { %v3412_v39 = vpop.xlane.xlu1 %3411 }
0x197b   : > { %v3416_v60 = vmul.f32 0.03125, %v3412_v39  ;;  %v6271_v39 = vld [vmem:[%s8414_s2 + $0x27] ss:$0 sm:$0xff] }
0x197d   : > { %v3428_v62 = vmul.f32 %v3416_v60, %v3416_v60  ;;  %v3432_v7 = vsub.f32 %v3406_v41, %v3416_v60  ;;  %v4526_v41 = vld [vmem:[%s8413_s1 + $0x248] sm:$0xff] }
0x197e   : > { %v3415_v58 = vpop.xlane.xlu1 %3414 }
0x197f   : > { %v3417_v22 = vmul.f32 0.03125, %v3415_v58 }
0x1981   : > { %v3429_v3 = vmul.f32 %v3417_v22, %v3417_v22  ;;  %v3433_v24 = vsub.f32 %v3407_v51, %v3417_v22 }
0x1982   : > { %v3422_v59 = vpop.xlane.xlu1 %3421 }
0x1983   : > { %v3426_v61 = vmul.f32 0.03125, %v3422_v59 }
0x1984   : > { %v7298_v37 = vpop.eup %7297 }
0x1985   : > { %v4342_v38 = vmul.f32 %v7298_v37, %v7296_v49  ;;  %v3430_v63 = vsub.f32 %v3426_v61, %v3428_v62 }
0x1986   : > { %v3425_v0 = vpop.xlane.xlu1 %3424 }
0x1987   : > { %7068 = vmatmul.mubr.msk.f32.vlgmr.msra.gmra.mxu0 %vm2044_vm5, %v4342_v38  ;;  %v3427_v1 = vmul.f32 0.03125, %v3425_v0  ;;  %v3434_v2 = vadd.f32 1e-05, %v3430_v63 }
0x1988   : > { %7083 = vmatprep.mubr.msk.f32.mxu0 %vm7349_vm6, %v7348_v52  ;;  %7076 = vmatpush3.msra.mxu0 %v4529_v47 }
0x1989   : > { %v3431_v4 = vsub.f32 %v3427_v1, %v3429_v3  ;;  %7299 = vrsqrt.f32 %v3434_v2  ;;  %7077 = vmatprep.subr.mxu0 %v7348_v52 }
0x198a   : > { %7078 = vmatpush3.msra.mxu0 %v4528_v48 }
0x198b   : > { %v3435_v5 = vadd.f32 1e-05, %v3431_v4  ;;  %7079 = vmatprep.subr.mxu0 %v7348_v52 }
0x198c   : > { %7080 = vmatpush3.msra.mxu0 %v4527_v19 }
0x198d   : > { %7301 = vrsqrt.f32 %v3435_v5  ;;  %7081 = vmatprep.subr.mxu0 %v7348_v52 }
0x198e   : > { %7082 = vmatpush3.msra.mxu0 %v4526_v41 }
0x198f   : > { %7097 = vmatprep.subr.mxu0 %v7348_v52 }
0x1996   : > { %v7300_v6 = vpop.eup %7299 }
0x1997   : > { %v3438_v10 = vmul.f32 %v7300_v6, %v3432_v7 }
0x1999   : > { %v3444_v13 = vmul.f32 %v6248_v11, %v3438_v10 }
0x199a   : > { %v7302_v12 = vpop.eup %7301 }
0x199b   : > { %v3439_v16 = vmul.f32 %v7302_v12, %v3433_v24  ;;  %v3450_v21 = vadd.f32 %v6249_v15, %v3444_v13  ;;  %v4698_v24 = vld [vmem:[%s8413_s1 + $0x288] sm:$0xff] }
0x199d   : > { %v3445_v27 = vmul.f32 %v6248_v11, %v3439_v16 }
0x199f   : > { %v3451_v30 = vadd.f32 %v6249_v15, %v3445_v27 }
0x1a47   : > { %v4415_v17 = vpop.f32.mrf.mxu0 }
0x1a48   : > { %7073 = vmatmul.mubr.msk.f32.vlgmr.msra.gmra.mxu1 %vm2044_vm5, %v4415_v17 }
0x1a49   : > { %7087 = vmatpush3.msra.mxu1 %v4611_v57  ;;  %v7069_v23 = vpop.f32.mrf.mxu0  ;;  %7094 = vmatprep.mubr.msk.f32.mxu1 %vm1857_vm4, %v3450_v21 }
0x1a4a   : > { %7088 = vmatprep.subr.mxu1 %v4610_v20 }
0x1a4b   : > { %7089 = vmatpush3.msra.mxu1 %v4610_v20 }
0x1a4c   : > { %7090 = vmatprep.subr.mxu1 %v4609_v25 }
0x1a4d   : > { %7091 = vmatpush3.msra.mxu1 %v4609_v25 }
0x1a4e   : > { %7092 = vmatprep.subr.mxu1 %v4608_v28 }
0x1a4f   : > { %7093 = vmatpush3.msra.mxu1 %v4608_v28 }
0x1a50   : > { %7095 = vmatmul.mubr.msk.f32.vlgmr.msra.gmra.mxu1 %vm1857_vm4, %v3451_v30  ;;  %7104 = vmatprep.subr.mxu1 %v7348_v52 }
0x1a51   : > { %7108 = vmatprep.mubr.msk.f32.mxu1 %vm7349_vm6, %v7348_v52 }
0x1b08   : > { %v4488_v34 = vpop.f32.mrf.mxu1 }
0x1b09   : > { %v4492_v42 = vadd.f32 %v4488_v34, %v4253_v29  ;;  %v6269_v29 = vld [vmem:[%s8414_s2 + $0x25] ss:$0 sm:$0xff] }
0x1b0a   : > { %v7074_v40 = vpop.f32.mrf.mxu1 }
0x1b0b   : > { %v4497_v36 = vadd.f32 %v6268_v32, %v4492_v42 }
0x1b0d   : > { %v4498_v43 = vadd.f32 %v4497_v36, %v7955_v14  ;;  %v6273_v14 = vld [vmem:[%s8414_s2 + $0x28] ss:$0 sm:$0xff] }
0x1b0f   : > { %v4501_v44 = vsel %vm1857_vm4, %v4498_v43, 0.0  ;;  %v4505_v45 = vmul.f32 %v4498_v43, %v4498_v43 }
0x1b10   : > { %4502 = vadd.xlane.f32.xlu1 %v4501_v44  ;;  %v7096_v49 = vpop.f32.mrf.mxu1 }
0x1b11   : > { %v4506_v46 = vsel %vm1857_vm4, %v4505_v45, 0.0  ;;  %v8140_v18 = vadd.f32 %v7096_v49, %v6273_v14  ;;  %v4699_v45 = vld [vmem:[%s8413_s1 + $0x290] sm:$0xff] }
0x1b12   : > { %4507 = vadd.xlane.f32.xlu0 %v4506_v46  ;;  %v4689_v38 = vpop.f32.mrf.mxu1 }
0x1b13   : > { %v8165_v57 = vadd.f32 %v6273_v14, %v4689_v38 }
0x1b28   : > { %4876 = vrot.lane.b32.xlu0 %v8140_v18, %s7339_s30 }
0x1b99   : > { %v4503_v50 = vpop.xlane.xlu1 %4502 }
0x1b9a   : > { %v4504_v51 = vmul.f32 0.03125, %v4503_v50 }
0x1b9b   : > { %v4508_v53 = vpop.xlane.xlu0 %4507 }
0x1b9c   : > { %v4510_v54 = vmul.f32 %v4504_v51, %v4504_v51  ;;  %v4509_v55 = vmul.f32 0.03125, %v4508_v53  ;;  %v4512_v26 = vsub.f32 %v4498_v43, %v4504_v51 }
0x1b9e   : > { %v4511_v8 = vsub.f32 %v4509_v55, %v4510_v54 }
0x1b9f   : > { %v4877_v12 = vpop.permute.xlu0 %4876 }
0x1ba0   : > { %v4513_v56 = vadd.f32 1e-05, %v4511_v8 }
0x1ba2   : > { %7303 = vrsqrt.f32 %v4513_v56 }
0x1baf   : > { %v7304_v9 = vpop.eup %7303 }
0x1bb0   : > { %v4515_v31 = vmul.f32 %v7304_v9, %v4512_v26 }
0x1bb2   : > { %v4520_v35 = vmul.f32 %v6269_v29, %v4515_v31 }
0x1bb4   : > { %v8156_v37 = vadd.f32 %v6270_v33, %v4520_v35 }
0x1bb6   : > { %7084 = vmatmul.mubr.msk.f32.vlgmr.msra.gmra.mxu0 %vm1857_vm4, %v8156_v37 }
0x1bb7   : > { %7098 = vmatpush3.xpose.msk.msra.mxu0 %vm2044_vm5, %v8140_v18  ;;  %7101 = vmatprep.mubr.msk.f32.mxu0 %vm7349_vm6, %v7348_v52 }
0x1bb8   : > { %7099 = vmatprep.subr.mxu0 %v7348_v52 }
0x1bbb   : > { %7100 = vmatpush3.xpose.msk.msra.mxu0 %vm2044_vm5, %v8165_v57 }
0x1bbc   : > { %7118 = vmatprep.subr.mxu0 %v7348_v52 }
0x1c76   : > { %v4604_v58 = vpop.f32.mrf.mxu0 }
0x1c77   : > { %v4605_v59 = vadd.f32 %v6271_v39, %v4604_v58 }
0x1c78   : > { %v7085_v60 = vpop.f32.mrf.mxu0 }
0x1c79   : > { %7102 = vmatmul.mubr.msk.f32.vlgmr.msra.gmra.mxu0 %vm2044_vm5, %v4605_v59 }
0x1c7a   : > { %7122 = vmatprep.mubr.msk.f32.mxu0 %vm7349_vm6, %v7348_v52 }
0x1d39   : > { %v4778_v61 = vpop.f32.mrf.mxu0 }
0x1d3a   : > { %v4782_v62 = vsel %vm500_vm3, %v4778_v61, -inf }
0x1d3b   : > { %4783 = vmax.xlane.f32.xlu1 %v4782_v62  ;;  %v7103_v63 = vpop.f32.mrf.mxu0 }
0x1d4c   : > { %4795 = vrot.lane.b32.xlu1 %v8140_v18, %s7338_s29 }
0x1d50   : > { %4793 = vrot.lane.b32.xlu1 %v8165_v57, %s7338_s29 }
0x1d54   : > { %4874 = vrot.lane.b32.xlu1 %v8165_v57, %s7339_s30 }
0x1dc4   : > { %v4784_v0 = vpop.xlane.xlu1 %4783 }
0x1dc5   : > { %v4785_v22 = vsub.f32 %v4778_v61, %v4784_v0 }
0x1dc7   : > { %v4786_v1 = vmul.f32 1.442695, %v4785_v22 }
0x1dc8   : > { %v4796_v2 = vpop.permute.xlu1 %4795 }
0x1dc9   : > { %7305 = vpow2.f32 %v4786_v1  ;;  %7105 = vmatpush3.msra.mxu1 %v4796_v2  ;;  %v4700_v1 = vld [vmem:[%s8413_s1 + $0x298] sm:$0xff] }
0x1dca   : > { %7106 = vmatprep.subr.mxu1 %v7348_v52 }
0x1dcc   : > { %v4794_v3 = vpop.permute.xlu1 %4793 }
0x1dcd   : > { %7107 = vmatpush3.msra.mxu1 %v4794_v3 }
0x1dce   : > { %7111 = vmatprep.subr.mxu1 %v7348_v52 }
0x1dd0   : > { %v4875_v6 = vpop.permute.xlu1 %4874 }
0x1dd6   : > { %v7306_v4 = vpop.eup %7305 }
0x1dd7   : > { %v4788_v5 = vsel %vm500_vm3, %v7306_v4, 0.0 }
0x1dd8   : > { %4789 = vadd.xlane.f32.xlu1 %v4788_v5 }
0x1de9   : > { %4872 = vrot.lane.b32.xlu1 %v4605_v59, %s7339_s30 }
0x1e61   : > { %v4790_v7 = vpop.xlane.xlu1 %4789 }
0x1e62   : > { %7307 = vrcp.f32 %v4790_v7 }
0x1e65   : > { %v4873_v13 = vpop.permute.xlu1 %4872 }
0x1e6f   : > { %v7308_v10 = vpop.eup %7307 }
0x1e70   : > { %v4792_v11 = vmul.f32 %v7308_v10, %v7306_v4  ;;  %v4701_v10 = vld [vmem:[%s8413_s1 + $0x2a0] sm:$0xff] }
0x1e72   : > { %7109 = vmatmul.mubr.msk.f32.vlgmr.msra.gmra.mxu1 %vm500_vm3, %v4792_v11 }
0x1e73   : > { %7112 = vmatpush3.xpose.msk.msra.mxu1 %vm2044_vm5, %v4877_v12  ;;  %7115 = vmatprep.mubr.msk.f32.mxu1 %vm7349_vm6, %v7348_v52 }
0x1e74   : > { %7113 = vmatprep.subr.mxu1 %v7348_v52 }
0x1e77   : > { %7114 = vmatpush3.xpose.msk.msra.mxu1 %vm2044_vm5, %v4875_v6 }
0x1e78   : > { %7130 = vmatprep.subr.mxu1 %v7348_v52 }
0x1e7a   : > { %7116 = vmatmul.mubr.msk.f32.vlgmr.msra.gmra.mxu1 %vm2044_vm5, %v4873_v13 }
0x1e7b   : > { %7132 = vmatprep.mubr.msk.f32.mxu1 %vm7349_vm6, %v7348_v52  ;;  %7131 = vmatpush3.msra.mxu1 %v4698_v24 }
0x1e7c   : > { %7142 = vmatprep.subr.mxu1 %v7348_v52 }
0x1f32   : > { %v4868_v15 = vpop.f32.mrf.mxu1 }
0x1f33   : > { %7133 = vmatmul.mubr.msk.f32.vlgmr.msra.gmra.mxu1 %vm2044_vm5, %v4868_v15 }
0x1f34   : > { %v7110_v16 = vpop.f32.mrf.mxu1  ;;  %7146 = vmatprep.mubr.msk.f32.mxu1 %vm7349_vm6, %v7348_v52 }
0x1f3a   : > { %v4950_v17 = vpop.f32.mrf.mxu1 }
0x1f3b   : > { %v4954_v20 = vsel %vm500_vm3, %v4950_v17, -inf }
0x1f3c   : > { %4955 = vmax.xlane.f32.xlu1 %v4954_v20  ;;  %v7117_v21 = vpop.f32.mrf.mxu1 }
0x1f4d   : > { %4967 = vrot.lane.b32.xlu1 %v8140_v18, %s7337_s28 }
0x1f51   : > { %5194 = vrot.lane.b32.xlu1 %v8140_v18, %s7343_s7 }
0x1f55   : > { %5192 = vrot.lane.b32.xlu1 %v8165_v57, %s7343_s7 }
0x1f59   : > { %5190 = vrot.lane.b32.xlu1 %v4605_v59, %s7343_s7 }
0x1f5d   : > { %5440 = vrot.lane.b32.xlu1 %v8140_v18, %s7345_s9 }
0x1f61   : > { %5436 = vrot.lane.b32.xlu1 %v4605_v59, %s7345_s9 }
0x1fc5   : > { %v4956_v23 = vpop.xlane.xlu1 %4955 }
0x1fc6   : > { %v4957_v25 = vsub.f32 %v4950_v17, %v4956_v23  ;;  %v6296_v17 = vld [vmem:[%s8414_s2 + $0x29] ss:$0 sm:$0xff] }
0x1fc8   : > { %v4958_v27 = vmul.f32 1.442695, %v4957_v25 }
0x1fc9   : > { %v4968_v28 = vpop.permute.xlu1 %4967 }
0x1fca   : > { %7309 = vpow2.f32 %v4958_v27  ;;  %7119 = vmatpush3.msra.mxu0 %v4968_v28 }
0x1fcb   : > { %7120 = vmatprep.subr.mxu0 %v7348_v52 }
0x1fcd   : > { %v5195_v46 = vpop.permute.xlu1 %5194 }
0x1fd1   : > { %v5193_v47 = vpop.permute.xlu1 %5192 }
0x1fd5   : > { %v5191_v14 = vpop.permute.xlu1 %5190 }
0x1fd7   : > { %v7310_v30 = vpop.eup %7309 }
0x1fd8   : > { %v4960_v32 = vsel %vm500_vm3, %v7310_v30, 0.0 }
0x1fd9   : > { %4961 = vadd.xlane.f32.xlu0 %v4960_v32  ;;  %v5441_v19 = vpop.permute.xlu1 %5440 }
0x1fdd   : > { %v5437_v50 = vpop.permute.xlu1 %5436 }
0x1fef   : > { %4965 = vrot.lane.b32.xlu0 %v8165_v57, %s7337_s28 }
0x1ff3   : > { %5438 = vrot.lane.b32.xlu0 %v8165_v57, %s7345_s9  ;;  %v8221_v34 = vpop.f32.mrf.mxu1 }
0x1ff5   : > { %v7134_v42 = vpop.f32.mrf.mxu1 }
0x1ff6   : > { %v5717_v42 = vld [vmem:[%s8413_s1 + $0x2b8] sm:$0xff] }
0x2062   : > { %v4962_v40 = vpop.xlane.xlu0 %4961 }
0x2063   : > { %7311 = vrcp.f32 %v4962_v40  ;;  %v5715_v40 = vld [vmem:[%s8413_s1 + $0x2a8] sm:$0xff] }
0x2066   : > { %v4966_v36 = vpop.permute.xlu0 %4965 }
0x2067   : > { %7121 = vmatpush3.msra.mxu0 %v4966_v36  ;;  %v5805_v36 = vld [vmem:[%s8413_s1 + $0x300] sm:$0xff] }
0x2068   : > { %7125 = vmatprep.subr.mxu0 %v7348_v52 }
0x206a   : > { %v5439_v41 = vpop.permute.xlu0 %5438 }
0x2070   : > { %v7312_v43 = vpop.eup %7311 }
0x2071   : > { %v4964_v44 = vmul.f32 %v7312_v43, %v7310_v30  ;;  %v5804_v43 = vld [vmem:[%s8413_s1 + $0x2f8] sm:$0xff] }
0x2073   : > { %7123 = vmatmul.mubr.msk.f32.vlgmr.msra.gmra.mxu0 %vm500_vm3, %v4964_v44  ;;  %v5803_v44 = vld [vmem:[%s8413_s1 + $0x2f0] sm:$0xff] }
0x2074   : > { %7126 = vmatpush3.msra.mxu0 %v4699_v45  ;;  %7127 = vmatprep.mubr.msk.f32.mxu0 %vm7349_vm6, %v7348_v52  ;;  %v5802_v45 = vld [vmem:[%s8413_s1 + $0x2e8] sm:$0xff] }
0x2075   : > { %7135 = vmatprep.subr.mxu0 %v7348_v52 }
0x2133   : > { %v5040_v48 = vpop.f32.mrf.mxu0 }
0x2134   : > { %7128 = vmatmul.mubr.msk.f32.vlgmr.msra.gmra.mxu0 %vm2044_vm5, %v5040_v48 }
0x2135   : > { %7136 = vmatpush3.xpose.msk.msra.mxu0 %vm2044_vm5, %v5195_v46  ;;  %v7124_v49 = vpop.f32.mrf.mxu0  ;;  %7139 = vmatprep.mubr.msk.f32.mxu0 %vm7349_vm6, %v7348_v52  ;;  %v5801_v46 = vld [vmem:[%s8413_s1 + $0x2e0] sm:$0xff] }
0x2136   : > { %7137 = vmatprep.subr.mxu0 %v7348_v52 }
0x2139   : > { %7138 = vmatpush3.xpose.msk.msra.mxu0 %vm2044_vm5, %v5193_v47 }
0x213a   : > { %7154 = vmatprep.subr.mxu0 %v7348_v52 }
0x213c   : > { %7140 = vmatmul.mubr.msk.f32.vlgmr.msra.gmra.mxu0 %vm2044_vm5, %v5191_v14 }
0x213d   : > { %7155 = vmatpush3.xpose.msk.msra.mxu0 %vm2044_vm5, %v5441_v19  ;;  %7158 = vmatprep.mubr.msk.f32.mxu0 %vm7349_vm6, %v7348_v52 }
0x213e   : > { %7156 = vmatprep.subr.mxu0 %v7348_v52 }
0x2141   : > { %7157 = vmatpush3.xpose.msk.msra.mxu0 %vm2044_vm5, %v5439_v41 }
0x2142   : > { %7173 = vmatprep.subr.mxu0 %v7348_v52 }
0x2144   : > { %7159 = vmatmul.mubr.msk.f32.vlgmr.msra.gmra.mxu0 %vm2044_vm5, %v5437_v50 }
0x2145   : > { %7181 = vmatprep.mubr.msk.f32.mxu0 %vm7349_vm6, %v7348_v52 }
0x21f4   : > { %v5113_v51 = vpop.f32.mrf.mxu0 }
0x21f5   : > { %v5187_v11 = vadd.f32 %v8221_v34, %v5113_v51  ;;  %v5718_v34 = vld [vmem:[%s8413_s1 + $0x2c0] sm:$0xff] }
0x21f6   : > { %v7129_v53 = vpop.f32.mrf.mxu0  ;;  %7174 = vmatpush3.msra.mxu0 %v5718_v34 }
0x21f7   : > { %7175 = vmatprep.subr.mxu0 %v7348_v52 }
0x21f8   : > { %7176 = vmatpush3.msra.mxu0 %v5717_v42 }
0x21f9   : > { %7177 = vmatprep.subr.mxu0 %v7348_v52 }
0x21fc   : > { %v5268_v54 = vpop.f32.mrf.mxu0 }
0x21fd   : > { %v5272_v55 = vsel %vm500_vm3, %v5268_v54, -inf }
0x21fe   : > { %5273 = vmax.xlane.f32.xlu0 %v5272_v55  ;;  %v7141_v8 = vpop.f32.mrf.mxu0 }
0x21ff   : > { %v6298_v8 = vld [vmem:[%s8414_s2 + $0x2b] ss:$0 sm:$0xff] }
0x2204   : > { %v5514_v56 = vpop.f32.mrf.mxu0 }
0x2205   : > { %v5518_v9 = vsel %vm500_vm3, %v5514_v56, -inf }
0x2206   : > { %v7160_v26 = vpop.f32.mrf.mxu0 }
0x2214   : > { %5285 = vrot.lane.b32.xlu0 %v8140_v18, %s7342_s6 }
0x2233   : > { %5519 = vmax.xlane.f32.xlu0 %v5518_v9  ;;  %v5800_v9 = vld [vmem:[%s8413_s1 + $0x2d8] sm:$0xff] }
0x2249   : > { %5531 = vrot.lane.b32.xlu0 %v8140_v18, %s7344_s8 }
0x2287   : > { %v5274_v29 = vpop.xlane.xlu0 %5273 }
0x2288   : > { %v5275_v31 = vsub.f32 %v5268_v54, %v5274_v29  ;;  %v6297_v54 = vld [vmem:[%s8414_s2 + $0x2a] ss:$0 sm:$0xff]  ;;  %v5799_v29 = vld [vmem:[%s8413_s1 + $0x2d0] sm:$0xff] }
0x228a   : > { %v5276_v33 = vmul.f32 1.442695, %v5275_v31  ;;  %v5798_v31 = vld [vmem:[%s8413_s1 + $0x2c8] sm:$0xff] }
0x228b   : > { %v5286_v35 = vpop.permute.xlu0 %5285 }
0x228c   : > { %7313 = vpow2.f32 %v5276_v33  ;;  %7143 = vmatpush3.msra.mxu1 %v5286_v35  ;;  %v6299_v33 = vld [vmem:[%s8414_s2 + $0x2c] ss:$0 sm:$0xff] }
0x228d   : > { %7144 = vmatprep.subr.mxu1 %v7348_v52 }
0x2299   : > { %v7314_v38 = vpop.eup %7313 }
0x229a   : > { %v5278_v39 = vsel %vm500_vm3, %v7314_v38, 0.0 }
0x229b   : > { %5279 = vadd.xlane.f32.xlu1 %v5278_v39 }
0x22ac   : > { %5283 = vrot.lane.b32.xlu1 %v8165_v57, %s7342_s6 }
0x22bc   : > { %v5520_v58 = vpop.xlane.xlu0 %5519 }
0x22bd   : > { %v5521_v59 = vsub.f32 %v5514_v56, %v5520_v58 }
0x22bf   : > { %v5522_v60 = vmul.f32 1.442695, %v5521_v59 }
0x22c0   : > { %v5532_v4 = vpop.permute.xlu0 %5531 }
0x22c1   : > { %7315 = vpow2.f32 %v5522_v60  ;;  %v6302_v60 = vld [vmem:[%s8414_s2 + $0x2d] ss:$0 sm:$0xff] }
0x22ce   : > { %v7316_v18 = vpop.eup %7315 }
0x22cf   : > { %v5524_v61 = vsel %vm500_vm3, %v7316_v18, 0.0 }
0x22d0   : > { %5525 = vadd.xlane.f32.xlu1 %v5524_v61 }
0x22e1   : > { %5529 = vrot.lane.b32.xlu1 %v8165_v57, %s7344_s8 }
0x2324   : > { %v5280_v62 = vpop.xlane.xlu1 %5279 }
0x2325   : > { %7317 = vrcp.f32 %v5280_v62 }
0x2328   : > { %v5284_v63 = vpop.permute.xlu1 %5283 }
0x2329   : > { %7145 = vmatpush3.msra.mxu1 %v5284_v63 }
0x232a   : > { %7149 = vmatprep.subr.mxu1 %v7348_v52 }
0x2332   : > { %v7318_v0 = vpop.eup %7317 }
0x2333   : > { %v5282_v22 = vmul.f32 %v7318_v0, %v7314_v38 }
0x2335   : > { %7147 = vmatmul.mubr.msk.f32.vlgmr.msra.gmra.mxu1 %vm500_vm3, %v5282_v22 }
0x2336   : > { %7150 = vmatpush3.msra.mxu1 %v4700_v1  ;;  %7151 = vmatprep.mubr.msk.f32.mxu1 %vm7349_vm6, %v7348_v52  ;;  %v5916_v1 = vld [vmem:[%s8413_s1 + $0x320] sm:$0xff] }
0x2337   : > { %7161 = vmatprep.subr.mxu1 %v7348_v52 }
0x2359   : > { %v5526_v57 = vpop.xlane.xlu1 %5525 }
0x235a   : > { %7319 = vrcp.f32 %v5526_v57  ;;  %v5915_v57 = vld [vmem:[%s8413_s1 + $0x318] sm:$0xff] }
0x235d   : > { %v5530_v6 = vpop.permute.xlu1 %5529 }
0x2367   : > { %v7320_v2 = vpop.eup %7319 }
0x2368   : > { %v5528_v7 = vmul.f32 %v7320_v2, %v7316_v18  ;;  %v5914_v2 = vld [vmem:[%s8413_s1 + $0x310] sm:$0xff] }
0x23f5   : > { %v5358_v3 = vpop.f32.mrf.mxu1 }
0x23f6   : > { %7152 = vmatmul.mubr.msk.f32.vlgmr.msra.gmra.mxu1 %vm2044_vm5, %v5358_v3  ;;  %v5913_v3 = vld [vmem:[%s8413_s1 + $0x308] sm:$0xff] }
0x23f7   : > { %7162 = vmatpush3.msra.mxu1 %v5532_v4  ;;  %v7148_v5 = vpop.f32.mrf.mxu1  ;;  %7165 = vmatprep.mubr.msk.f32.mxu1 %vm7349_vm6, %v7348_v52 }
0x23f8   : > { %7163 = vmatprep.subr.mxu1 %v7348_v52 }
0x23f9   : > { %7164 = vmatpush3.msra.mxu1 %v5530_v6 }
0x23fa   : > { %7166 = vmatmul.mubr.msk.f32.vlgmr.msra.gmra.mxu1 %vm500_vm3, %v5528_v7  ;;  %7168 = vmatprep.subr.mxu1 %v7348_v52 }
0x23fb   : > { %7170 = vmatprep.mubr.msk.f32.mxu1 %vm7349_vm6, %v7348_v52  ;;  %7169 = vmatpush3.msra.mxu1 %v4701_v10 }
0x23fc   : > { %7184 = vmatprep.subr.mxu1 %v7348_v52 }
0x24b6   : > { %v5431_v12 = vpop.f32.mrf.mxu1 }
0x24b7   : > { %v5435_v13 = vadd.f32 %v5431_v12, %v5187_v11 }
0x24b8   : > { %v7153_v24 = vpop.f32.mrf.mxu1 }
0x24ba   : > { %v5604_v15 = vpop.f32.mrf.mxu1 }
0x24bb   : > { %7171 = vmatmul.mubr.msk.f32.vlgmr.msra.gmra.mxu1 %vm2044_vm5, %v5604_v15  ;;  %v6303_v15 = vld [vmem:[%s8414_s2 + $0x2e] ss:$0 sm:$0xff] }
0x24bc   : > { %v7167_v16 = vpop.f32.mrf.mxu1  ;;  %7200 = vmatprep.mubr.msk.f32.mxu1 %vm7349_vm6, %v7348_v52  ;;  %7185 = vmatpush3.msra.mxu1 %v5805_v36  ;;  %v6307_v36 = vld [vmem:[%s8414_s2 + $0x31] ss:$0 sm:$0xff] }
0x24bd   : > { %7186 = vmatprep.subr.mxu1 %v7348_v52 }
0x24be   : > { %7187 = vmatpush3.msra.mxu1 %v5804_v43 }
0x24bf   : > { %7188 = vmatprep.subr.mxu1 %v7348_v52 }
0x24c0   : > { %7189 = vmatpush3.msra.mxu1 %v5803_v44 }
0x24c1   : > { %7190 = vmatprep.subr.mxu1 %v7348_v52 }
0x24c2   : > { %7191 = vmatpush3.msra.mxu1 %v5802_v45 }
0x24c3   : > { %7192 = vmatprep.subr.mxu1 %v7348_v52 }
0x24c4   : > { %7193 = vmatpush3.msra.mxu1 %v5801_v46 }
0x24c5   : > { %7194 = vmatprep.subr.mxu1 %v7348_v52 }
0x24c6   : > { %7195 = vmatpush3.msra.mxu1 %v5800_v9 }
0x24c7   : > { %7196 = vmatprep.subr.mxu1 %v7348_v52 }
0x24c8   : > { %7197 = vmatpush3.msra.mxu1 %v5799_v29 }
0x24c9   : > { %7198 = vmatprep.subr.mxu1 %v7348_v52 }
0x24ca   : > { %7199 = vmatpush3.msra.mxu1 %v5798_v31 }
0x257b   : > { %v5677_v20 = vpop.f32.mrf.mxu1 }
0x257c   : > { %v5681_v21 = vadd.f32 %v5677_v20, %v5435_v13 }
0x257d   : > { %v7172_v23 = vpop.f32.mrf.mxu1 }
0x257e   : > { %v5686_v25 = vadd.f32 %v6296_v17, %v5681_v21  ;;  %v6304_v17 = vld [vmem:[%s8414_s2 + $0x2f] ss:$0 sm:$0xff]  ;;  %v5999_v23 = vld [vmem:[%s8413_s1 + $0x340] sm:$0xff] }
0x2580   : > { %v5687_v27 = vadd.f32 %v5686_v25, %v8156_v37  ;;  %v5716_v37 = vld [vmem:[%s8413_s1 + $0x2b0] sm:$0xff]  ;;  %v5998_v25 = vld [vmem:[%s8413_s1 + $0x338] sm:$0xff] }
0x2581   : > { %7178 = vmatpush3.msra.mxu0 %v5716_v37 }
0x2582   : > { %v5690_v28 = vsel %vm1857_vm4, %v5687_v27, 0.0  ;;  %v5694_v30 = vmul.f32 %v5687_v27, %v5687_v27  ;;  %7179 = vmatprep.subr.mxu0 %v7348_v52 }
0x2583   : > { %5691 = vadd.xlane.f32.xlu0 %v5690_v28  ;;  %7180 = vmatpush3.msra.mxu0 %v5715_v40  ;;  %v5996_v28 = vld [vmem:[%s8413_s1 + $0x328] sm:$0xff] }
0x2584   : > { %v5695_v32 = vsel %vm1857_vm4, %v5694_v30, 0.0  ;;  %7203 = vmatprep.subr.mxu0 %v7348_v52  ;;  %v6305_v30 = vld [vmem:[%s8414_s2 + $0x30] ss:$0 sm:$0xff] }
0x2585   : > { %5696 = vadd.xlane.f32.xlu1 %v5695_v32 }
0x260c   : > { %v5692_v47 = vpop.xlane.xlu0 %5691 }
0x260d   : > { %v5693_v48 = vmul.f32 0.03125, %v5692_v47 }
0x260e   : > { %v5697_v49 = vpop.xlane.xlu1 %5696 }
0x260f   : > { %v5699_v14 = vmul.f32 %v5693_v48, %v5693_v48  ;;  %v5698_v19 = vmul.f32 0.03125, %v5697_v49  ;;  %v5701_v51 = vsub.f32 %v5687_v27, %v5693_v48  ;;  %v5997_v27 = vld [vmem:[%s8413_s1 + $0x330] sm:$0xff] }
0x2611   : > { %v5700_v41 = vsub.f32 %v5698_v19, %v5699_v14 }
0x2613   : > { %v5702_v50 = vadd.f32 1e-05, %v5700_v41 }
0x2615   : > { %7321 = vrsqrt.f32 %v5702_v50 }
0x2622   : > { %v7322_v53 = vpop.eup %7321 }
0x2623   : > { %v5704_v55 = vmul.f32 %v7322_v53, %v5701_v51 }
0x2625   : > { %v5709_v56 = vmul.f32 %v6297_v54, %v5704_v55 }
0x2627   : > { %v5714_v26 = vadd.f32 %v6298_v8, %v5709_v56 }
0x2629   : > { %7182 = vmatmul.mubr.msk.f32.vlgmr.msra.gmra.mxu0 %vm1857_vm4, %v5714_v26 }
0x262a   : > { %7211 = vmatprep.mubr.msk.f32.mxu0 %vm7349_vm6, %v7348_v52  ;;  %7204 = vmatpush3.msra.mxu0 %v5916_v1 }
0x262b   : > { %7205 = vmatprep.subr.mxu0 %v7348_v52 }
0x262c   : > { %7206 = vmatpush3.msra.mxu0 %v5915_v57 }
0x262d   : > { %7207 = vmatprep.subr.mxu0 %v7348_v52 }
0x262e   : > { %7208 = vmatpush3.msra.mxu0 %v5914_v2 }
0x262f   : > { %7209 = vmatprep.subr.mxu0 %v7348_v52 }
0x2630   : > { %7210 = vmatpush3.msra.mxu0 %v5913_v3 }
0x2631   : > { %7214 = vmatprep.subr.mxu0 %v7348_v52 }
0x26e9   : > { %v5793_v35 = vpop.f32.mrf.mxu0 }
0x26ea   : > { %v5794_v38 = vadd.f32 %v6299_v33, %v5793_v35 }
0x26eb   : > { %v7183_v39 = vpop.f32.mrf.mxu0 }
0x26ec   : > { %v5797_v58 = vmax.f32 %v5794_v38, 0.0 }
0x26ee   : > { %7201 = vmatmul.mubr.msk.f32.vlgmr.msra.gmra.mxu1 %vm331_vm2, %v5797_v58 }
0x27ae   : > { %v5875_v59 = vpop.f32.mrf.mxu1 }
0x27af   : > { %v5879_v18 = vadd.f32 %v5875_v59, %v5714_v26 }
0x27b0   : > { %v7202_v61 = vpop.f32.mrf.mxu1 }
0x27b1   : > { %v5885_v62 = vadd.f32 %v6302_v60, %v5879_v18 }
0x27b3   : > { %v5888_v63 = vsel %vm1857_vm4, %v5885_v62, 0.0  ;;  %v5892_v0 = vmul.f32 %v5885_v62, %v5885_v62 }
0x27b4   : > { %5889 = vadd.xlane.f32.xlu0 %v5888_v63 }
0x27b5   : > { %v5893_v22 = vsel %vm1857_vm4, %v5892_v0, 0.0 }
0x27b8   : > { %5894 = vadd.xlane.f32.xlu0 %v5893_v22 }
0x283d   : > { %v5890_v4 = vpop.xlane.xlu0 %5889 }
0x283e   : > { %v5891_v5 = vmul.f32 0.03125, %v5890_v4 }
0x2840   : > { %v5897_v7 = vmul.f32 %v5891_v5, %v5891_v5  ;;  %v5899_v13 = vsub.f32 %v5885_v62, %v5891_v5 }
0x2841   : > { %v5895_v6 = vpop.xlane.xlu0 %5894 }
0x2842   : > { %v5896_v10 = vmul.f32 0.03125, %v5895_v6 }
0x2844   : > { %v5898_v11 = vsub.f32 %v5896_v10, %v5897_v7 }
0x2846   : > { %v5900_v12 = vadd.f32 1e-05, %v5898_v11 }
0x2848   : > { %7323 = vrsqrt.f32 %v5900_v12 }
0x2855   : > { %v7324_v24 = vpop.eup %7323 }
0x2856   : > { %v5902_v16 = vmul.f32 %v7324_v24, %v5899_v13 }
0x2858   : > { %v5907_v20 = vmul.f32 %v6303_v15, %v5902_v16 }
0x285a   : > { %v5912_v21 = vadd.f32 %v6304_v17, %v5907_v20 }
0x285c   : > { %7212 = vmatmul.mubr.msk.f32.vlgmr.msra.gmra.mxu0 %vm1857_vm4, %v5912_v21 }
0x285d   : > { %7222 = vmatprep.mubr.msk.f32.mxu0 %vm7349_vm6, %v7348_v52  ;;  %7215 = vmatpush3.msra.mxu0 %v5999_v23 }
0x285e   : > { %7216 = vmatprep.subr.mxu0 %v7348_v52 }
0x285f   : > { %7217 = vmatpush3.msra.mxu0 %v5998_v25 }
0x2860   : > { %7218 = vmatprep.subr.mxu0 %v7348_v52 }
0x2861   : > { %7219 = vmatpush3.msra.mxu0 %v5997_v27 }
0x2862   : > { %7220 = vmatprep.subr.mxu0 %v7348_v52 }
0x2863   : > { %7221 = vmatpush3.msra.mxu0 %v5996_v28 }
0x291c   : > { %v5991_v32 = vpop.f32.mrf.mxu0 }
0x291d   : > { %v5992_v34 = vadd.f32 %v6305_v30, %v5991_v32 }
0x291e   : > { %v7213_v42 = vpop.f32.mrf.mxu0 }
0x291f   : > { %v5995_v37 = vmax.f32 %v5992_v34, 0.0 }
0x2921   : > { %6006 = vrot.lane.b32.xlu0 %v5995_v37, %s7339_s30 }
0x2993   : > { %v6007_v40 = vpop.permute.xlu0 %6006 }
0x2994   : > { %7223 = vmatmul.mubr.msk.f32.vlgmr.msra.gmra.mxu0 %vm1857_vm4, %v6007_v40 }
0x2a54   : > { %v6076_v52 = vpop.f32.mrf.mxu0 }
0x2a55   : > { %v6077_v43 = vadd.f32 %v6307_v36, %v6076_v52 }
0x2a56   : > { %v7224_v44 = vpop.f32.mrf.mxu0 }
0x2a57   : > { %v6309_v45 = vmul.f32 -1.442695, %v6077_v43 }
0x2a59   : > { %7325 = vpow2.f32 %v6309_v45 }
0x2a66   : > { %v7326_v46 = vpop.eup %7325 }
0x2a67   : > { %v6083_v47 = vadd.f32 1.0, %v7326_v46 }
0x2a69   : > { %7327 = vrcp.f32 %v6083_v47 }
0x2a76   : > { %v7328_v48 = vpop.eup %7327 }
0x2a77   : > { %6087 = vrot.lane.b32.xlu1 %v7328_v48, %s7350_s22 }
0x2ae9   : > { %v6088_v49 = vpop.permute.xlu1 %6087 }
0x2aea   : > { %v6090_v14 = vsel %vm2044_vm5, %v5992_v34, %v6088_v49 }
0x2aeb   : > { %6092 = vst.msk [vmem:[%s168_s5] sm:$0xff] %vm6091_vm7, %v6090_v14 }
0x2aec PF: > { %s13_s12 = sadd.s32 1, %s7335_s12  }
0x2aed   : > { %p10_p4 = scmp.ge.s32.totalorder %s13_s12, 4  }
0x2aef   :  { %12 = sbr.rel (!%p10_p4) target bundleno = 1 (0x1), region = 62 }

</bundles_post_ra>
